<compile_context>
chip_gen: v7x
topology: tpu7x:2x2x1
jax: 0.10.0
libtpu: 0.0.40
codegen_flags: <defaults>
</compile_context>

<pallas_src>
import jax
import jax.numpy as jnp
from jax import lax
from jax.experimental import pallas as pl
from jax.experimental.pallas import tpu as pltpu

# ---- static model config (matches PWaveCNN defaults, window_size=32) ----
WINDOW = 32
C_IN = 3
F1, F2, F3 = 48, 48, 16
K1 = K2 = K3 = 4
FC1, FC2 = 24, 12
L1 = WINDOW - K1 + 1          # 29
L2 = L1 - K2 + 1              # 26
L3 = L2 - K3 + 1              # 23
FLAT = F3 * L3                # 368

MAX_TILE_B = 512              # safe working set on v5e/v6e/v7x with bf16 slabs


def _choose_tile_b(B):
    """Lane-dense batch tile: >=128, <=512, and for small batches pick a tile
    near ceil(B/2) so the 'parallel' grid has >=2 steps (v7x has 2 TCs)."""
    half = (B + 1) // 2
    t = ((half + 127) // 128) * 128
    return min(MAX_TILE_B, max(128, t))


def _make_kernel(T):
    def kernel(x_ref, w1_ref, b1_ref, w2_ref, b2_ref, w3_ref, b3_ref,
               wf1_ref, bf1_ref, wf2_ref, bf2_ref, wf3_ref, bf3_ref,
               o_ref, im2_ref, im3_ref, h3r_ref):
        x = x_ref[...]                                     # (C_IN, WINDOW*T) bf16

        # --- conv1: K shifted, lane-aligned MXU matmuls (contraction only 3) ---
        a1 = jnp.dot(w1_ref[0], x[:, 0:L1 * T],
                     preferred_element_type=jnp.float32)
        for k in range(1, K1):
            a1 = a1 + jnp.dot(w1_ref[k], x[:, k * T:(k + L1) * T],
                              preferred_element_type=jnp.float32)
        h1 = jnp.maximum(a1 + b1_ref[...], 0.0).astype(jnp.bfloat16)  # (F1, L1*T)

        # --- conv2: im2col (k-major) into VMEM scratch -> one 192-deep matmul ---
        for k in range(K2):
            im2_ref[k * F1:(k + 1) * F1, :] = h1[:, k * T:(k + L2) * T]
        a2 = jnp.dot(w2_ref[...], im2_ref[...],
                     preferred_element_type=jnp.float32)
        h2 = jnp.maximum(a2 + b2_ref[...], 0.0).astype(jnp.bfloat16)  # (F2, L2*T)
        # dropout1: identity at inference

        # --- conv3: im2col -> one matmul; bias+ReLU fused into fc1 re-layout ---
        for k in range(K3):
            im3_ref[k * F2:(k + 1) * F2, :] = h2[:, k * T:(k + L3) * T]
        a3 = jnp.dot(w3_ref[...], im3_ref[...],
                     preferred_element_type=jnp.float32)              # (F3, L3*T)
        b3v = b3_ref[...]
        for l in range(L3):
            h3r_ref[l * F3:(l + 1) * F3, :] = jnp.maximum(
                a3[:, l * T:(l + 1) * T] + b3v, 0.0).astype(jnp.bfloat16)

        # --- fully connected layers (batch in lanes) ---
        z1 = jnp.dot(wf1_ref[...], h3r_ref[...],
                     preferred_element_type=jnp.float32)
        f1 = jnp.maximum(z1 + bf1_ref[...], 0.0).astype(jnp.bfloat16)  # (FC1, T)
        # dropout2: identity at inference
        z2 = jnp.dot(wf2_ref[...], f1, preferred_element_type=jnp.float32)
        f2 = jnp.maximum(z2 + bf2_ref[...], 0.0).astype(jnp.bfloat16)  # (FC2, T)
        z3 = jnp.dot(wf3_ref[...], f2,
                     preferred_element_type=jnp.float32) + bf3_ref[...]
        o_ref[...] = pl.reciprocal(1.0 + jnp.exp(-z3), approx=True)    # sigmoid

    return kernel


def pwave_cnn(x, params):
    B = x.shape[0]
    w1, b1, w2, b2, w3, b3, wf1, bf1, wf2, bf2, wf3, bf3 = params

    tile_b = _choose_tile_b(B)
    nt = pl.cdiv(B, tile_b)
    Bp = nt * tile_b

    # Lane-pack the batch: x_tiles[i, c, w*tile_b + b] = x[i*tile_b + b, c, w]
    x_pad = jnp.pad(x, ((0, Bp - B), (0, 0), (0, 0)))
    x_tiles = (x_pad.reshape(nt, tile_b, C_IN, WINDOW)
               .transpose(0, 2, 3, 1)
               .reshape(nt, C_IN, WINDOW * tile_b)
               .astype(jnp.bfloat16))

    # conv1 weights kept per-tap: (F1, C_IN, K1) -> (K1, F1, C_IN)
    w1_t = jnp.transpose(w1, (2, 0, 1)).astype(jnp.bfloat16)
    # conv2/conv3 im2col weights, k-major flatten: w_r[f, k*F_in + c] = w[f, c, k]
    w2_r = jnp.transpose(w2, (0, 2, 1)).reshape(F2, K2 * F1).astype(jnp.bfloat16)
    w3_r = jnp.transpose(w3, (0, 2, 1)).reshape(F3, K3 * F2).astype(jnp.bfloat16)
    # fc1 weight permuted to match the (l-major, f-minor) h3r layout:
    # wf1_p[j, l*F3 + f] = wf1[j, f*L3 + l]   (PyTorch channel-major flatten)
    wf1_p = (wf1.reshape(FC1, F3, L3).transpose(0, 2, 1)
             .reshape(FC1, L3 * F3).astype(jnp.bfloat16))
    wf2_c = wf2.astype(jnp.bfloat16)
    wf3_c = wf3.astype(jnp.bfloat16)

    out = pl.pallas_call(
        _make_kernel(tile_b),
        out_shape=jax.ShapeDtypeStruct((1, Bp), jnp.float32),
        grid_spec=pltpu.PrefetchScalarGridSpec(
            num_scalar_prefetch=0,
            grid=(nt,),
            in_specs=[
                pl.BlockSpec((None, C_IN, WINDOW * tile_b),
                             lambda i: (i, 0, 0)),
                pl.BlockSpec((K1, F1, C_IN), lambda i: (0, 0, 0)),
                pl.BlockSpec((F1, 1), lambda i: (0, 0)),
                pl.BlockSpec((F2, K2 * F1), lambda i: (0, 0)),
                pl.BlockSpec((F2, 1), lambda i: (0, 0)),
                pl.BlockSpec((F3, K3 * F2), lambda i: (0, 0)),
                pl.BlockSpec((F3, 1), lambda i: (0, 0)),
                pl.BlockSpec((FC1, L3 * F3), lambda i: (0, 0)),
                pl.BlockSpec((FC1, 1), lambda i: (0, 0)),
                pl.BlockSpec((FC2, FC1), lambda i: (0, 0)),
                pl.BlockSpec((FC2, 1), lambda i: (0, 0)),
                pl.BlockSpec((1, FC2), lambda i: (0, 0)),
                pl.BlockSpec((1, 1), lambda i: (0, 0)),
            ],
            out_specs=pl.BlockSpec((1, tile_b), lambda i: (0, i)),
            scratch_shapes=[
                pltpu.VMEM((K2 * F1, L2 * tile_b), jnp.bfloat16),   # im2col conv2
                pltpu.VMEM((K3 * F2, L3 * tile_b), jnp.bfloat16),   # im2col conv3
                pltpu.VMEM((L3 * F3, tile_b), jnp.bfloat16),        # fc1 input slab
            ],
        ),
        compiler_params=pltpu.CompilerParams(
            dimension_semantics=("parallel",),
            vmem_limit_bytes=32 * 1024 * 1024),
    )(x_tiles, w1_t, b1.reshape(F1, 1), w2_r, b2.reshape(F2, 1),
      w3_r, b3.reshape(F3, 1),
      wf1_p, bf1.reshape(FC1, 1), wf2_c, bf2.reshape(FC2, 1),
      wf3_c, bf3.reshape(1, 1))

    return out[0, :B].reshape(B, 1)


def reference(x, params):
    """Pure-JAX f32 reference matching PyTorch semantics (dropout = identity)."""
    w1, b1, w2, b2, w3, b3, wf1, bf1, wf2, bf2, wf3, bf3 = params

    def conv1d(h, w, b):
        y = lax.conv_general_dilated(h, w, window_strides=(1,),
                                     padding='VALID',
                                     dimension_numbers=('NCH', 'OIH', 'NCH'))
        return y + b[None, :, None]

    h = jax.nn.relu(conv1d(x, w1, b1))
    h = jax.nn.relu(conv1d(h, w2, b2))
    h = jax.nn.relu(conv1d(h, w3, b3))
    h = h.reshape(h.shape[0], -1)
    h = jax.nn.relu(h @ wf1.T + bf1)
    h = jax.nn.relu(h @ wf2.T + bf2)
    return jax.nn.sigmoid(h @ wf3.T + bf3)


def init_params(key):
    ks = jax.random.split(key, 12)

    def u(k, shape, fan_in):
        bound = 1.0 / jnp.sqrt(fan_in)
        return jax.random.uniform(k, shape, jnp.float32, -bound, bound)

    w1 = u(ks[0], (F1, C_IN, K1), C_IN * K1)
    b1 = u(ks[1], (F1,), C_IN * K1)
    w2 = u(ks[2], (F2, F1, K2), F1 * K2)
    b2 = u(ks[3], (F2,), F1 * K2)
    w3 = u(ks[4], (F3, F2, K3), F2 * K3)
    b3 = u(ks[5], (F3,), F2 * K3)
    wf1 = u(ks[6], (FC1, FLAT), FLAT)
    bf1 = u(ks[7], (FC1,), FLAT)
    wf2 = u(ks[8], (FC2, FC1), FC1)
    bf2 = u(ks[9], (FC2,), FC1)
    wf3 = u(ks[10], (1, FC2), FC2)
    bf3 = u(ks[11], (1,), FC2)
    return (w1, b1, w2, b2, w3, b3, wf1, bf1, wf2, bf2, wf3, bf3)


if __name__ == "__main__":
    key = jax.random.PRNGKey(0)
    kx, kx2, kp = jax.random.split(key, 3)
    params = init_params(kp)
    fwd = jax.jit(pwave_cnn)

    # Small batch (single padded batch tile).
    B = 2
    x = jax.random.normal(kx, (B, C_IN, WINDOW), jnp.float32)
    out = jax.block_until_ready(fwd(x, params))
    ref = reference(x, params)
    assert out.shape == (B, 1)
    # bf16 matmul operands with f32 accumulation -> loosened tolerance.
    assert jnp.allclose(out, ref, atol=2e-2, rtol=2e-2), (out, ref)

    # Ragged batch with 2 grid steps (exercises batch tiling/padding + megacore).
    B2 = 260
    x2 = jax.random.normal(kx2, (B2, C_IN, WINDOW), jnp.float32)
    out2 = jax.block_until_ready(fwd(x2, params))
    ref2 = reference(x2, params)
    assert out2.shape == (B2, 1)
    assert jnp.allclose(out2, ref2, atol=2e-2, rtol=2e-2)

    # TODO(synk): dropout layers are compiled out (inference mode); training-mode
    # stochastic masks would use pltpu.prng_seed / pltpu.prng_random_bits.
    print("KERNEL_OK")
</pallas_src>

<mosaic_0001>
module attributes {stable_mosaic.version = 11 : i64} {
  func.func @kernel(%arg0: i32, %arg1: memref<1x3x4096xbf16, #tpu.memory_space<vmem>>, %arg2: memref<4x48x3xbf16, #tpu.memory_space<vmem>>, %arg3: memref<48x1xf32, #tpu.memory_space<vmem>>, %arg4: memref<48x192xbf16, #tpu.memory_space<vmem>>, %arg5: memref<48x1xf32, #tpu.memory_space<vmem>>, %arg6: memref<16x192xbf16, #tpu.memory_space<vmem>>, %arg7: memref<16x1xf32, #tpu.memory_space<vmem>>, %arg8: memref<24x368xbf16, #tpu.memory_space<vmem>>, %arg9: memref<24x1xf32, #tpu.memory_space<vmem>>, %arg10: memref<12x24xbf16, #tpu.memory_space<vmem>>, %arg11: memref<12x1xf32, #tpu.memory_space<vmem>>, %arg12: memref<1x12xbf16, #tpu.memory_space<vmem>>, %arg13: memref<1x1xf32, #tpu.memory_space<vmem>>, %arg14: memref<1x128xf32, #tpu.memory_space<vmem>>, %arg15: memref<192x3328xbf16, #tpu.memory_space<vmem>>, %arg16: memref<192x2944xbf16, #tpu.memory_space<vmem>>, %arg17: memref<368x128xbf16, #tpu.memory_space<vmem>>) attributes {dimension_semantics = [#tpu.dimension_semantics<parallel>], iteration_bounds = array<i64: 1>, scalar_prefetch = 0 : i64, scratch_operands = 3 : i64, tpu.core_type = #tpu.core_type<tc>, window_params = [{transform_indices = @transform_0, window_bounds = array<i64: 1, 3, 4096>}, {pipeline_mode = #tpu.pipeline_mode<synchronous>, transform_indices = @transform_1, window_bounds = array<i64: 4, 48, 3>}, {pipeline_mode = #tpu.pipeline_mode<synchronous>, transform_indices = @transform_2, window_bounds = array<i64: 48, 1>}, {pipeline_mode = #tpu.pipeline_mode<synchronous>, transform_indices = @transform_3, window_bounds = array<i64: 48, 192>}, {pipeline_mode = #tpu.pipeline_mode<synchronous>, transform_indices = @transform_4, window_bounds = array<i64: 48, 1>}, {pipeline_mode = #tpu.pipeline_mode<synchronous>, transform_indices = @transform_5, window_bounds = array<i64: 16, 192>}, {pipeline_mode = #tpu.pipeline_mode<synchronous>, transform_indices = @transform_6, window_bounds = array<i64: 16, 1>}, {pipeline_mode = #tpu.pipeline_mode<synchronous>, transform_indices = @transform_7, window_bounds = array<i64: 24, 368>}, {pipeline_mode = #tpu.pipeline_mode<synchronous>, transform_indices = @transform_8, window_bounds = array<i64: 24, 1>}, {pipeline_mode = #tpu.pipeline_mode<synchronous>, transform_indices = @transform_9, window_bounds = array<i64: 12, 24>}, {pipeline_mode = #tpu.pipeline_mode<synchronous>, transform_indices = @transform_10, window_bounds = array<i64: 12, 1>}, {pipeline_mode = #tpu.pipeline_mode<synchronous>, transform_indices = @transform_11, window_bounds = array<i64: 1, 12>}, {pipeline_mode = #tpu.pipeline_mode<synchronous>, transform_indices = @transform_12, window_bounds = array<i64: 1, 1>}, {transform_indices = @transform_13, window_bounds = array<i64: 1, 128>}]} {
    %c0 = arith.constant 0 : index
    %c0_0 = arith.constant 0 : index
    %c0_1 = arith.constant 0 : index
    %0 = vector.load %arg1[%c0, %c0_0, %c0_1] : memref<1x3x4096xbf16, #tpu.memory_space<vmem>>, vector<1x3x4096xbf16>
    %1 = vector.shape_cast %0 : vector<1x3x4096xbf16> to vector<3x4096xbf16>
    %c0_2 = arith.constant 0 : index
    %c0_3 = arith.constant 0 : index
    %c0_4 = arith.constant 0 : index
    %2 = vector.load %arg2[%c0_2, %c0_3, %c0_4] : memref<4x48x3xbf16, #tpu.memory_space<vmem>>, vector<1x48x3xbf16>
    %3 = vector.shape_cast %2 : vector<1x48x3xbf16> to vector<48x3xbf16>
    %4 = vector.extract_strided_slice %1 {offsets = [0, 0], sizes = [3, 3712], strides = [1, 1]} : vector<3x4096xbf16> to vector<3x3712xbf16>
    %cst = arith.constant dense<0.000000e+00> : vector<48x3712xf32>
    %5 = tpu.matmul %3, %4, %cst {dimension_numbers = #tpu.dot_dimension_numbers<[1], [0], [0], [1], [0, 0, 1, 1], [], []>} : vector<48x3xbf16>, vector<3x3712xbf16>, vector<48x3712xf32> -> vector<48x3712xf32>
    %c1 = arith.constant 1 : index
    %c0_5 = arith.constant 0 : index
    %c0_6 = arith.constant 0 : index
    %6 = vector.load %arg2[%c1, %c0_5, %c0_6] : memref<4x48x3xbf16, #tpu.memory_space<vmem>>, vector<1x48x3xbf16>
    %7 = vector.shape_cast %6 : vector<1x48x3xbf16> to vector<48x3xbf16>
    %8 = vector.extract_strided_slice %1 {offsets = [0, 128], sizes = [3, 3712], strides = [1, 1]} : vector<3x4096xbf16> to vector<3x3712xbf16>
    %cst_7 = arith.constant dense<0.000000e+00> : vector<48x3712xf32>
    %9 = tpu.matmul %7, %8, %cst_7 {dimension_numbers = #tpu.dot_dimension_numbers<[1], [0], [0], [1], [0, 0, 1, 1], [], []>} : vector<48x3xbf16>, vector<3x3712xbf16>, vector<48x3712xf32> -> vector<48x3712xf32>
    %10 = arith.addf %5, %9 : vector<48x3712xf32>
    %c2 = arith.constant 2 : index
    %c0_8 = arith.constant 0 : index
    %c0_9 = arith.constant 0 : index
    %11 = vector.load %arg2[%c2, %c0_8, %c0_9] : memref<4x48x3xbf16, #tpu.memory_space<vmem>>, vector<1x48x3xbf16>
    %12 = vector.shape_cast %11 : vector<1x48x3xbf16> to vector<48x3xbf16>
    %13 = vector.extract_strided_slice %1 {offsets = [0, 256], sizes = [3, 3712], strides = [1, 1]} : vector<3x4096xbf16> to vector<3x3712xbf16>
    %cst_10 = arith.constant dense<0.000000e+00> : vector<48x3712xf32>
    %14 = tpu.matmul %12, %13, %cst_10 {dimension_numbers = #tpu.dot_dimension_numbers<[1], [0], [0], [1], [0, 0, 1, 1], [], []>} : vector<48x3xbf16>, vector<3x3712xbf16>, vector<48x3712xf32> -> vector<48x3712xf32>
    %15 = arith.addf %10, %14 : vector<48x3712xf32>
    %c3 = arith.constant 3 : index
    %c0_11 = arith.constant 0 : index
    %c0_12 = arith.constant 0 : index
    %16 = vector.load %arg2[%c3, %c0_11, %c0_12] : memref<4x48x3xbf16, #tpu.memory_space<vmem>>, vector<1x48x3xbf16>
    %17 = vector.shape_cast %16 : vector<1x48x3xbf16> to vector<48x3xbf16>
    %18 = vector.extract_strided_slice %1 {offsets = [0, 384], sizes = [3, 3712], strides = [1, 1]} : vector<3x4096xbf16> to vector<3x3712xbf16>
    %cst_13 = arith.constant dense<0.000000e+00> : vector<48x3712xf32>
    %19 = tpu.matmul %17, %18, %cst_13 {dimension_numbers = #tpu.dot_dimension_numbers<[1], [0], [0], [1], [0, 0, 1, 1], [], []>} : vector<48x3xbf16>, vector<3x3712xbf16>, vector<48x3712xf32> -> vector<48x3712xf32>
    %20 = arith.addf %15, %19 : vector<48x3712xf32>
    %c0_14 = arith.constant 0 : index
    %c0_15 = arith.constant 0 : index
    %21 = vector.load %arg3[%c0_14, %c0_15] : memref<48x1xf32, #tpu.memory_space<vmem>>, vector<48x1xf32>
    %22 = vector.broadcast %21 : vector<48x1xf32> to vector<48x3712xf32>
    %23 = arith.addf %20, %22 : vector<48x3712xf32>
    %cst_16 = arith.constant 0.000000e+00 : f32
    %24 = vector.broadcast %cst_16 : f32 to vector<48x3712xf32>
    %25 = arith.maximumf %23, %24 : vector<48x3712xf32>
    %26 = arith.truncf %25 : vector<48x3712xf32> to vector<48x3712xbf16>
    %27 = vector.extract_strided_slice %26 {offsets = [0, 0], sizes = [48, 3328], strides = [1, 1]} : vector<48x3712xbf16> to vector<48x3328xbf16>
    %c0_17 = arith.constant 0 : index
    %c0_18 = arith.constant 0 : index
    %28 = vector.load %arg15[%c0_17, %c0_18] : memref<192x3328xbf16, #tpu.memory_space<vmem>>, vector<48x3328xbf16>
    tpu.vector_store %arg15[%c0_17, %c0_18], %27 {strides = array<i32>} : memref<192x3328xbf16, #tpu.memory_space<vmem>>, vector<48x3328xbf16>,
    %29 = vector.extract_strided_slice %26 {offsets = [0, 128], sizes = [48, 3328], strides = [1, 1]} : vector<48x3712xbf16> to vector<48x3328xbf16>
    %c48 = arith.constant 48 : index
    %c0_19 = arith.constant 0 : index
    %30 = vector.load %arg15[%c48, %c0_19] : memref<192x3328xbf16, #tpu.memory_space<vmem>>, vector<48x3328xbf16>
    tpu.vector_store %arg15[%c48, %c0_19], %29 {strides = array<i32>} : memref<192x3328xbf16, #tpu.memory_space<vmem>>, vector<48x3328xbf16>,
    %31 = vector.extract_strided_slice %26 {offsets = [0, 256], sizes = [48, 3328], strides = [1, 1]} : vector<48x3712xbf16> to vector<48x3328xbf16>
    %c96 = arith.constant 96 : index
    %c0_20 = arith.constant 0 : index
    %32 = vector.load %arg15[%c96, %c0_20] : memref<192x3328xbf16, #tpu.memory_space<vmem>>, vector<48x3328xbf16>
    tpu.vector_store %arg15[%c96, %c0_20], %31 {strides = array<i32>} : memref<192x3328xbf16, #tpu.memory_space<vmem>>, vector<48x3328xbf16>,
    %33 = vector.extract_strided_slice %26 {offsets = [0, 384], sizes = [48, 3328], strides = [1, 1]} : vector<48x3712xbf16> to vector<48x3328xbf16>
    %c144 = arith.constant 144 : index
    %c0_21 = arith.constant 0 : index
    %34 = vector.load %arg15[%c144, %c0_21] : memref<192x3328xbf16, #tpu.memory_space<vmem>>, vector<48x3328xbf16>
    tpu.vector_store %arg15[%c144, %c0_21], %33 {strides = array<i32>} : memref<192x3328xbf16, #tpu.memory_space<vmem>>, vector<48x3328xbf16>,
    %c0_22 = arith.constant 0 : index
    %c0_23 = arith.constant 0 : index
    %35 = vector.load %arg4[%c0_22, %c0_23] : memref<48x192xbf16, #tpu.memory_space<vmem>>, vector<48x192xbf16>
    %c0_24 = arith.constant 0 : index
    %c0_25 = arith.constant 0 : index
    %36 = vector.load %arg15[%c0_24, %c0_25] : memref<192x3328xbf16, #tpu.memory_space<vmem>>, vector<192x3328xbf16>
    %cst_26 = arith.constant dense<0.000000e+00> : vector<48x3328xf32>
    %37 = tpu.matmul %35, %36, %cst_26 {dimension_numbers = #tpu.dot_dimension_numbers<[1], [0], [0], [1], [0, 0, 1, 1], [], []>} : vector<48x192xbf16>, vector<192x3328xbf16>, vector<48x3328xf32> -> vector<48x3328xf32>
    %c0_27 = arith.constant 0 : index
    %c0_28 = arith.constant 0 : index
    %38 = vector.load %arg5[%c0_27, %c0_28] : memref<48x1xf32, #tpu.memory_space<vmem>>, vector<48x1xf32>
    %39 = vector.broadcast %38 : vector<48x1xf32> to vector<48x3328xf32>
    %40 = arith.addf %37, %39 : vector<48x3328xf32>
    %cst_29 = arith.constant 0.000000e+00 : f32
    %41 = vector.broadcast %cst_29 : f32 to vector<48x3328xf32>
    %42 = arith.maximumf %40, %41 : vector<48x3328xf32>
    %43 = arith.truncf %42 : vector<48x3328xf32> to vector<48x3328xbf16>
    %44 = vector.extract_strided_slice %43 {offsets = [0, 0], sizes = [48, 2944], strides = [1, 1]} : vector<48x3328xbf16> to vector<48x2944xbf16>
    %c0_30 = arith.constant 0 : index
    %c0_31 = arith.constant 0 : index
    %45 = vector.load %arg16[%c0_30, %c0_31] : memref<192x2944xbf16, #tpu.memory_space<vmem>>, vector<48x2944xbf16>
    tpu.vector_store %arg16[%c0_30, %c0_31], %44 {strides = array<i32>} : memref<192x2944xbf16, #tpu.memory_space<vmem>>, vector<48x2944xbf16>,
    %46 = vector.extract_strided_slice %43 {offsets = [0, 128], sizes = [48, 2944], strides = [1, 1]} : vector<48x3328xbf16> to vector<48x2944xbf16>
    %c48_32 = arith.constant 48 : index
    %c0_33 = arith.constant 0 : index
    %47 = vector.load %arg16[%c48_32, %c0_33] : memref<192x2944xbf16, #tpu.memory_space<vmem>>, vector<48x2944xbf16>
    tpu.vector_store %arg16[%c48_32, %c0_33], %46 {strides = array<i32>} : memref<192x2944xbf16, #tpu.memory_space<vmem>>, vector<48x2944xbf16>,
    %48 = vector.extract_strided_slice %43 {offsets = [0, 256], sizes = [48, 2944], strides = [1, 1]} : vector<48x3328xbf16> to vector<48x2944xbf16>
    %c96_34 = arith.constant 96 : index
    %c0_35 = arith.constant 0 : index
    %49 = vector.load %arg16[%c96_34, %c0_35] : memref<192x2944xbf16, #tpu.memory_space<vmem>>, vector<48x2944xbf16>
    tpu.vector_store %arg16[%c96_34, %c0_35], %48 {strides = array<i32>} : memref<192x2944xbf16, #tpu.memory_space<vmem>>, vector<48x2944xbf16>,
    %50 = vector.extract_strided_slice %43 {offsets = [0, 384], sizes = [48, 2944], strides = [1, 1]} : vector<48x3328xbf16> to vector<48x2944xbf16>
    %c144_36 = arith.constant 144 : index
    %c0_37 = arith.constant 0 : index
    %51 = vector.load %arg16[%c144_36, %c0_37] : memref<192x2944xbf16, #tpu.memory_space<vmem>>, vector<48x2944xbf16>
    tpu.vector_store %arg16[%c144_36, %c0_37], %50 {strides = array<i32>} : memref<192x2944xbf16, #tpu.memory_space<vmem>>, vector<48x2944xbf16>,
    %c0_38 = arith.constant 0 : index
    %c0_39 = arith.constant 0 : index
    %52 = vector.load %arg6[%c0_38, %c0_39] : memref<16x192xbf16, #tpu.memory_space<vmem>>, vector<16x192xbf16>
    %c0_40 = arith.constant 0 : index
    %c0_41 = arith.constant 0 : index
    %53 = vector.load %arg16[%c0_40, %c0_41] : memref<192x2944xbf16, #tpu.memory_space<vmem>>, vector<192x2944xbf16>
    %cst_42 = arith.constant dense<0.000000e+00> : vector<16x2944xf32>
    %54 = tpu.matmul %52, %53, %cst_42 {dimension_numbers = #tpu.dot_dimension_numbers<[1], [0], [0], [1], [0, 0, 1, 1], [], []>} : vector<16x192xbf16>, vector<192x2944xbf16>, vector<16x2944xf32> -> vector<16x2944xf32>
    %c0_43 = arith.constant 0 : index
    %c0_44 = arith.constant 0 : index
    %55 = vector.load %arg7[%c0_43, %c0_44] : memref<16x1xf32, #tpu.memory_space<vmem>>, vector<16x1xf32>
    %56 = vector.extract_strided_slice %54 {offsets = [0, 0], sizes = [16, 128], strides = [1, 1]} : vector<16x2944xf32> to vector<16x128xf32>
    %57 = vector.broadcast %55 : vector<16x1xf32> to vector<16x128xf32>
    %58 = arith.addf %56, %57 : vector<16x128xf32>
    %cst_45 = arith.constant 0.000000e+00 : f32
    %59 = vector.broadcast %cst_45 : f32 to vector<16x128xf32>
    %60 = arith.maximumf %58, %59 : vector<16x128xf32>
    %61 = arith.truncf %60 : vector<16x128xf32> to vector<16x128xbf16>
    %c0_46 = arith.constant 0 : index
    %c0_47 = arith.constant 0 : index
    %62 = vector.load %arg17[%c0_46, %c0_47] : memref<368x128xbf16, #tpu.memory_space<vmem>>, vector<16x128xbf16>
    tpu.vector_store %arg17[%c0_46, %c0_47], %61 {strides = array<i32>} : memref<368x128xbf16, #tpu.memory_space<vmem>>, vector<16x128xbf16>,
    %63 = vector.extract_strided_slice %54 {offsets = [0, 128], sizes = [16, 128], strides = [1, 1]} : vector<16x2944xf32> to vector<16x128xf32>
    %64 = vector.broadcast %55 : vector<16x1xf32> to vector<16x128xf32>
    %65 = arith.addf %63, %64 : vector<16x128xf32>
    %cst_48 = arith.constant 0.000000e+00 : f32
    %66 = vector.broadcast %cst_48 : f32 to vector<16x128xf32>
    %67 = arith.maximumf %65, %66 : vector<16x128xf32>
    %68 = arith.truncf %67 : vector<16x128xf32> to vector<16x128xbf16>
    %c16 = arith.constant 16 : index
    %c0_49 = arith.constant 0 : index
    %69 = vector.load %arg17[%c16, %c0_49] : memref<368x128xbf16, #tpu.memory_space<vmem>>, vector<16x128xbf16>
    tpu.vector_store %arg17[%c16, %c0_49], %68 {strides = array<i32>} : memref<368x128xbf16, #tpu.memory_space<vmem>>, vector<16x128xbf16>,
    %70 = vector.extract_strided_slice %54 {offsets = [0, 256], sizes = [16, 128], strides = [1, 1]} : vector<16x2944xf32> to vector<16x128xf32>
    %71 = vector.broadcast %55 : vector<16x1xf32> to vector<16x128xf32>
    %72 = arith.addf %70, %71 : vector<16x128xf32>
    %cst_50 = arith.constant 0.000000e+00 : f32
    %73 = vector.broadcast %cst_50 : f32 to vector<16x128xf32>
    %74 = arith.maximumf %72, %73 : vector<16x128xf32>
    %75 = arith.truncf %74 : vector<16x128xf32> to vector<16x128xbf16>
    %c32 = arith.constant 32 : index
    %c0_51 = arith.constant 0 : index
    %76 = vector.load %arg17[%c32, %c0_51] : memref<368x128xbf16, #tpu.memory_space<vmem>>, vector<16x128xbf16>
    tpu.vector_store %arg17[%c32, %c0_51], %75 {strides = array<i32>} : memref<368x128xbf16, #tpu.memory_space<vmem>>, vector<16x128xbf16>,
    %77 = vector.extract_strided_slice %54 {offsets = [0, 384], sizes = [16, 128], strides = [1, 1]} : vector<16x2944xf32> to vector<16x128xf32>
    %78 = vector.broadcast %55 : vector<16x1xf32> to vector<16x128xf32>
    %79 = arith.addf %77, %78 : vector<16x128xf32>
    %cst_52 = arith.constant 0.000000e+00 : f32
    %80 = vector.broadcast %cst_52 : f32 to vector<16x128xf32>
    %81 = arith.maximumf %79, %80 : vector<16x128xf32>
    %82 = arith.truncf %81 : vector<16x128xf32> to vector<16x128xbf16>
    %c48_53 = arith.constant 48 : index
    %c0_54 = arith.constant 0 : index
    %83 = vector.load %arg17[%c48_53, %c0_54] : memref<368x128xbf16, #tpu.memory_space<vmem>>, vector<16x128xbf16>
    tpu.vector_store %arg17[%c48_53, %c0_54], %82 {strides = array<i32>} : memref<368x128xbf16, #tpu.memory_space<vmem>>, vector<16x128xbf16>,
    %84 = vector.extract_strided_slice %54 {offsets = [0, 512], sizes = [16, 128], strides = [1, 1]} : vector<16x2944xf32> to vector<16x128xf32>
    %85 = vector.broadcast %55 : vector<16x1xf32> to vector<16x128xf32>
    %86 = arith.addf %84, %85 : vector<16x128xf32>
    %cst_55 = arith.constant 0.000000e+00 : f32
    %87 = vector.broadcast %cst_55 : f32 to vector<16x128xf32>
    %88 = arith.maximumf %86, %87 : vector<16x128xf32>
    %89 = arith.truncf %88 : vector<16x128xf32> to vector<16x128xbf16>
    %c64 = arith.constant 64 : index
    %c0_56 = arith.constant 0 : index
    %90 = vector.load %arg17[%c64, %c0_56] : memref<368x128xbf16, #tpu.memory_space<vmem>>, vector<16x128xbf16>
    tpu.vector_store %arg17[%c64, %c0_56], %89 {strides = array<i32>} : memref<368x128xbf16, #tpu.memory_space<vmem>>, vector<16x128xbf16>,
    %91 = vector.extract_strided_slice %54 {offsets = [0, 640], sizes = [16, 128], strides = [1, 1]} : vector<16x2944xf32> to vector<16x128xf32>
    %92 = vector.broadcast %55 : vector<16x1xf32> to vector<16x128xf32>
    %93 = arith.addf %91, %92 : vector<16x128xf32>
    %cst_57 = arith.constant 0.000000e+00 : f32
    %94 = vector.broadcast %cst_57 : f32 to vector<16x128xf32>
    %95 = arith.maximumf %93, %94 : vector<16x128xf32>
    %96 = arith.truncf %95 : vector<16x128xf32> to vector<16x128xbf16>
    %c80 = arith.constant 80 : index
    %c0_58 = arith.constant 0 : index
    %97 = vector.load %arg17[%c80, %c0_58] : memref<368x128xbf16, #tpu.memory_space<vmem>>, vector<16x128xbf16>
    tpu.vector_store %arg17[%c80, %c0_58], %96 {strides = array<i32>} : memref<368x128xbf16, #tpu.memory_space<vmem>>, vector<16x128xbf16>,
    %98 = vector.extract_strided_slice %54 {offsets = [0, 768], sizes = [16, 128], strides = [1, 1]} : vector<16x2944xf32> to vector<16x128xf32>
    %99 = vector.broadcast %55 : vector<16x1xf32> to vector<16x128xf32>
    %100 = arith.addf %98, %99 : vector<16x128xf32>
    %cst_59 = arith.constant 0.000000e+00 : f32
    %101 = vector.broadcast %cst_59 : f32 to vector<16x128xf32>
    %102 = arith.maximumf %100, %101 : vector<16x128xf32>
    %103 = arith.truncf %102 : vector<16x128xf32> to vector<16x128xbf16>
    %c96_60 = arith.constant 96 : index
    %c0_61 = arith.constant 0 : index
    %104 = vector.load %arg17[%c96_60, %c0_61] : memref<368x128xbf16, #tpu.memory_space<vmem>>, vector<16x128xbf16>
    tpu.vector_store %arg17[%c96_60, %c0_61], %103 {strides = array<i32>} : memref<368x128xbf16, #tpu.memory_space<vmem>>, vector<16x128xbf16>,
    %105 = vector.extract_strided_slice %54 {offsets = [0, 896], sizes = [16, 128], strides = [1, 1]} : vector<16x2944xf32> to vector<16x128xf32>
    %106 = vector.broadcast %55 : vector<16x1xf32> to vector<16x128xf32>
    %107 = arith.addf %105, %106 : vector<16x128xf32>
    %cst_62 = arith.constant 0.000000e+00 : f32
    %108 = vector.broadcast %cst_62 : f32 to vector<16x128xf32>
    %109 = arith.maximumf %107, %108 : vector<16x128xf32>
    %110 = arith.truncf %109 : vector<16x128xf32> to vector<16x128xbf16>
    %c112 = arith.constant 112 : index
    %c0_63 = arith.constant 0 : index
    %111 = vector.load %arg17[%c112, %c0_63] : memref<368x128xbf16, #tpu.memory_space<vmem>>, vector<16x128xbf16>
    tpu.vector_store %arg17[%c112, %c0_63], %110 {strides = array<i32>} : memref<368x128xbf16, #tpu.memory_space<vmem>>, vector<16x128xbf16>,
    %112 = vector.extract_strided_slice %54 {offsets = [0, 1024], sizes = [16, 128], strides = [1, 1]} : vector<16x2944xf32> to vector<16x128xf32>
    %113 = vector.broadcast %55 : vector<16x1xf32> to vector<16x128xf32>
    %114 = arith.addf %112, %113 : vector<16x128xf32>
    %cst_64 = arith.constant 0.000000e+00 : f32
    %115 = vector.broadcast %cst_64 : f32 to vector<16x128xf32>
    %116 = arith.maximumf %114, %115 : vector<16x128xf32>
    %117 = arith.truncf %116 : vector<16x128xf32> to vector<16x128xbf16>
    %c128 = arith.constant 128 : index
    %c0_65 = arith.constant 0 : index
    %118 = vector.load %arg17[%c128, %c0_65] : memref<368x128xbf16, #tpu.memory_space<vmem>>, vector<16x128xbf16>
    tpu.vector_store %arg17[%c128, %c0_65], %117 {strides = array<i32>} : memref<368x128xbf16, #tpu.memory_space<vmem>>, vector<16x128xbf16>,
    %119 = vector.extract_strided_slice %54 {offsets = [0, 1152], sizes = [16, 128], strides = [1, 1]} : vector<16x2944xf32> to vector<16x128xf32>
    %120 = vector.broadcast %55 : vector<16x1xf32> to vector<16x128xf32>
    %121 = arith.addf %119, %120 : vector<16x128xf32>
    %cst_66 = arith.constant 0.000000e+00 : f32
    %122 = vector.broadcast %cst_66 : f32 to vector<16x128xf32>
    %123 = arith.maximumf %121, %122 : vector<16x128xf32>
    %124 = arith.truncf %123 : vector<16x128xf32> to vector<16x128xbf16>
    %c144_67 = arith.constant 144 : index
    %c0_68 = arith.constant 0 : index
    %125 = vector.load %arg17[%c144_67, %c0_68] : memref<368x128xbf16, #tpu.memory_space<vmem>>, vector<16x128xbf16>
    tpu.vector_store %arg17[%c144_67, %c0_68], %124 {strides = array<i32>} : memref<368x128xbf16, #tpu.memory_space<vmem>>, vector<16x128xbf16>,
    %126 = vector.extract_strided_slice %54 {offsets = [0, 1280], sizes = [16, 128], strides = [1, 1]} : vector<16x2944xf32> to vector<16x128xf32>
    %127 = vector.broadcast %55 : vector<16x1xf32> to vector<16x128xf32>
    %128 = arith.addf %126, %127 : vector<16x128xf32>
    %cst_69 = arith.constant 0.000000e+00 : f32
    %129 = vector.broadcast %cst_69 : f32 to vector<16x128xf32>
    %130 = arith.maximumf %128, %129 : vector<16x128xf32>
    %131 = arith.truncf %130 : vector<16x128xf32> to vector<16x128xbf16>
    %c160 = arith.constant 160 : index
    %c0_70 = arith.constant 0 : index
    %132 = vector.load %arg17[%c160, %c0_70] : memref<368x128xbf16, #tpu.memory_space<vmem>>, vector<16x128xbf16>
    tpu.vector_store %arg17[%c160, %c0_70], %131 {strides = array<i32>} : memref<368x128xbf16, #tpu.memory_space<vmem>>, vector<16x128xbf16>,
    %133 = vector.extract_strided_slice %54 {offsets = [0, 1408], sizes = [16, 128], strides = [1, 1]} : vector<16x2944xf32> to vector<16x128xf32>
    %134 = vector.broadcast %55 : vector<16x1xf32> to vector<16x128xf32>
    %135 = arith.addf %133, %134 : vector<16x128xf32>
    %cst_71 = arith.constant 0.000000e+00 : f32
    %136 = vector.broadcast %cst_71 : f32 to vector<16x128xf32>
    %137 = arith.maximumf %135, %136 : vector<16x128xf32>
    %138 = arith.truncf %137 : vector<16x128xf32> to vector<16x128xbf16>
    %c176 = arith.constant 176 : index
    %c0_72 = arith.constant 0 : index
    %139 = vector.load %arg17[%c176, %c0_72] : memref<368x128xbf16, #tpu.memory_space<vmem>>, vector<16x128xbf16>
    tpu.vector_store %arg17[%c176, %c0_72], %138 {strides = array<i32>} : memref<368x128xbf16, #tpu.memory_space<vmem>>, vector<16x128xbf16>,
    %140 = vector.extract_strided_slice %54 {offsets = [0, 1536], sizes = [16, 128], strides = [1, 1]} : vector<16x2944xf32> to vector<16x128xf32>
    %141 = vector.broadcast %55 : vector<16x1xf32> to vector<16x128xf32>
    %142 = arith.addf %140, %141 : vector<16x128xf32>
    %cst_73 = arith.constant 0.000000e+00 : f32
    %143 = vector.broadcast %cst_73 : f32 to vector<16x128xf32>
    %144 = arith.maximumf %142, %143 : vector<16x128xf32>
    %145 = arith.truncf %144 : vector<16x128xf32> to vector<16x128xbf16>
    %c192 = arith.constant 192 : index
    %c0_74 = arith.constant 0 : index
    %146 = vector.load %arg17[%c192, %c0_74] : memref<368x128xbf16, #tpu.memory_space<vmem>>, vector<16x128xbf16>
    tpu.vector_store %arg17[%c192, %c0_74], %145 {strides = array<i32>} : memref<368x128xbf16, #tpu.memory_space<vmem>>, vector<16x128xbf16>,
    %147 = vector.extract_strided_slice %54 {offsets = [0, 1664], sizes = [16, 128], strides = [1, 1]} : vector<16x2944xf32> to vector<16x128xf32>
    %148 = vector.broadcast %55 : vector<16x1xf32> to vector<16x128xf32>
    %149 = arith.addf %147, %148 : vector<16x128xf32>
    %cst_75 = arith.constant 0.000000e+00 : f32
    %150 = vector.broadcast %cst_75 : f32 to vector<16x128xf32>
    %151 = arith.maximumf %149, %150 : vector<16x128xf32>
    %152 = arith.truncf %151 : vector<16x128xf32> to vector<16x128xbf16>
    %c208 = arith.constant 208 : index
    %c0_76 = arith.constant 0 : index
    %153 = vector.load %arg17[%c208, %c0_76] : memref<368x128xbf16, #tpu.memory_space<vmem>>, vector<16x128xbf16>
    tpu.vector_store %arg17[%c208, %c0_76], %152 {strides = array<i32>} : memref<368x128xbf16, #tpu.memory_space<vmem>>, vector<16x128xbf16>,
    %154 = vector.extract_strided_slice %54 {offsets = [0, 1792], sizes = [16, 128], strides = [1, 1]} : vector<16x2944xf32> to vector<16x128xf32>
    %155 = vector.broadcast %55 : vector<16x1xf32> to vector<16x128xf32>
    %156 = arith.addf %154, %155 : vector<16x128xf32>
    %cst_77 = arith.constant 0.000000e+00 : f32
    %157 = vector.broadcast %cst_77 : f32 to vector<16x128xf32>
    %158 = arith.maximumf %156, %157 : vector<16x128xf32>
    %159 = arith.truncf %158 : vector<16x128xf32> to vector<16x128xbf16>
    %c224 = arith.constant 224 : index
    %c0_78 = arith.constant 0 : index
    %160 = vector.load %arg17[%c224, %c0_78] : memref<368x128xbf16, #tpu.memory_space<vmem>>, vector<16x128xbf16>
    tpu.vector_store %arg17[%c224, %c0_78], %159 {strides = array<i32>} : memref<368x128xbf16, #tpu.memory_space<vmem>>, vector<16x128xbf16>,
    %161 = vector.extract_strided_slice %54 {offsets = [0, 1920], sizes = [16, 128], strides = [1, 1]} : vector<16x2944xf32> to vector<16x128xf32>
    %162 = vector.broadcast %55 : vector<16x1xf32> to vector<16x128xf32>
    %163 = arith.addf %161, %162 : vector<16x128xf32>
    %cst_79 = arith.constant 0.000000e+00 : f32
    %164 = vector.broadcast %cst_79 : f32 to vector<16x128xf32>
    %165 = arith.maximumf %163, %164 : vector<16x128xf32>
    %166 = arith.truncf %165 : vector<16x128xf32> to vector<16x128xbf16>
    %c240 = arith.constant 240 : index
    %c0_80 = arith.constant 0 : index
    %167 = vector.load %arg17[%c240, %c0_80] : memref<368x128xbf16, #tpu.memory_space<vmem>>, vector<16x128xbf16>
    tpu.vector_store %arg17[%c240, %c0_80], %166 {strides = array<i32>} : memref<368x128xbf16, #tpu.memory_space<vmem>>, vector<16x128xbf16>,
    %168 = vector.extract_strided_slice %54 {offsets = [0, 2048], sizes = [16, 128], strides = [1, 1]} : vector<16x2944xf32> to vector<16x128xf32>
    %169 = vector.broadcast %55 : vector<16x1xf32> to vector<16x128xf32>
    %170 = arith.addf %168, %169 : vector<16x128xf32>
    %cst_81 = arith.constant 0.000000e+00 : f32
    %171 = vector.broadcast %cst_81 : f32 to vector<16x128xf32>
    %172 = arith.maximumf %170, %171 : vector<16x128xf32>
    %173 = arith.truncf %172 : vector<16x128xf32> to vector<16x128xbf16>
    %c256 = arith.constant 256 : index
    %c0_82 = arith.constant 0 : index
    %174 = vector.load %arg17[%c256, %c0_82] : memref<368x128xbf16, #tpu.memory_space<vmem>>, vector<16x128xbf16>
    tpu.vector_store %arg17[%c256, %c0_82], %173 {strides = array<i32>} : memref<368x128xbf16, #tpu.memory_space<vmem>>, vector<16x128xbf16>,
    %175 = vector.extract_strided_slice %54 {offsets = [0, 2176], sizes = [16, 128], strides = [1, 1]} : vector<16x2944xf32> to vector<16x128xf32>
    %176 = vector.broadcast %55 : vector<16x1xf32> to vector<16x128xf32>
    %177 = arith.addf %175, %176 : vector<16x128xf32>
    %cst_83 = arith.constant 0.000000e+00 : f32
    %178 = vector.broadcast %cst_83 : f32 to vector<16x128xf32>
    %179 = arith.maximumf %177, %178 : vector<16x128xf32>
    %180 = arith.truncf %179 : vector<16x128xf32> to vector<16x128xbf16>
    %c272 = arith.constant 272 : index
    %c0_84 = arith.constant 0 : index
    %181 = vector.load %arg17[%c272, %c0_84] : memref<368x128xbf16, #tpu.memory_space<vmem>>, vector<16x128xbf16>
    tpu.vector_store %arg17[%c272, %c0_84], %180 {strides = array<i32>} : memref<368x128xbf16, #tpu.memory_space<vmem>>, vector<16x128xbf16>,
    %182 = vector.extract_strided_slice %54 {offsets = [0, 2304], sizes = [16, 128], strides = [1, 1]} : vector<16x2944xf32> to vector<16x128xf32>
    %183 = vector.broadcast %55 : vector<16x1xf32> to vector<16x128xf32>
    %184 = arith.addf %182, %183 : vector<16x128xf32>
    %cst_85 = arith.constant 0.000000e+00 : f32
    %185 = vector.broadcast %cst_85 : f32 to vector<16x128xf32>
    %186 = arith.maximumf %184, %185 : vector<16x128xf32>
    %187 = arith.truncf %186 : vector<16x128xf32> to vector<16x128xbf16>
    %c288 = arith.constant 288 : index
    %c0_86 = arith.constant 0 : index
    %188 = vector.load %arg17[%c288, %c0_86] : memref<368x128xbf16, #tpu.memory_space<vmem>>, vector<16x128xbf16>
    tpu.vector_store %arg17[%c288, %c0_86], %187 {strides = array<i32>} : memref<368x128xbf16, #tpu.memory_space<vmem>>, vector<16x128xbf16>,
    %189 = vector.extract_strided_slice %54 {offsets = [0, 2432], sizes = [16, 128], strides = [1, 1]} : vector<16x2944xf32> to vector<16x128xf32>
    %190 = vector.broadcast %55 : vector<16x1xf32> to vector<16x128xf32>
    %191 = arith.addf %189, %190 : vector<16x128xf32>
    %cst_87 = arith.constant 0.000000e+00 : f32
    %192 = vector.broadcast %cst_87 : f32 to vector<16x128xf32>
    %193 = arith.maximumf %191, %192 : vector<16x128xf32>
    %194 = arith.truncf %193 : vector<16x128xf32> to vector<16x128xbf16>
    %c304 = arith.constant 304 : index
    %c0_88 = arith.constant 0 : index
    %195 = vector.load %arg17[%c304, %c0_88] : memref<368x128xbf16, #tpu.memory_space<vmem>>, vector<16x128xbf16>
    tpu.vector_store %arg17[%c304, %c0_88], %194 {strides = array<i32>} : memref<368x128xbf16, #tpu.memory_space<vmem>>, vector<16x128xbf16>,
    %196 = vector.extract_strided_slice %54 {offsets = [0, 2560], sizes = [16, 128], strides = [1, 1]} : vector<16x2944xf32> to vector<16x128xf32>
    %197 = vector.broadcast %55 : vector<16x1xf32> to vector<16x128xf32>
    %198 = arith.addf %196, %197 : vector<16x128xf32>
    %cst_89 = arith.constant 0.000000e+00 : f32
    %199 = vector.broadcast %cst_89 : f32 to vector<16x128xf32>
    %200 = arith.maximumf %198, %199 : vector<16x128xf32>
    %201 = arith.truncf %200 : vector<16x128xf32> to vector<16x128xbf16>
    %c320 = arith.constant 320 : index
    %c0_90 = arith.constant 0 : index
    %202 = vector.load %arg17[%c320, %c0_90] : memref<368x128xbf16, #tpu.memory_space<vmem>>, vector<16x128xbf16>
    tpu.vector_store %arg17[%c320, %c0_90], %201 {strides = array<i32>} : memref<368x128xbf16, #tpu.memory_space<vmem>>, vector<16x128xbf16>,
    %203 = vector.extract_strided_slice %54 {offsets = [0, 2688], sizes = [16, 128], strides = [1, 1]} : vector<16x2944xf32> to vector<16x128xf32>
    %204 = vector.broadcast %55 : vector<16x1xf32> to vector<16x128xf32>
    %205 = arith.addf %203, %204 : vector<16x128xf32>
    %cst_91 = arith.constant 0.000000e+00 : f32
    %206 = vector.broadcast %cst_91 : f32 to vector<16x128xf32>
    %207 = arith.maximumf %205, %206 : vector<16x128xf32>
    %208 = arith.truncf %207 : vector<16x128xf32> to vector<16x128xbf16>
    %c336 = arith.constant 336 : index
    %c0_92 = arith.constant 0 : index
    %209 = vector.load %arg17[%c336, %c0_92] : memref<368x128xbf16, #tpu.memory_space<vmem>>, vector<16x128xbf16>
    tpu.vector_store %arg17[%c336, %c0_92], %208 {strides = array<i32>} : memref<368x128xbf16, #tpu.memory_space<vmem>>, vector<16x128xbf16>,
    %210 = vector.extract_strided_slice %54 {offsets = [0, 2816], sizes = [16, 128], strides = [1, 1]} : vector<16x2944xf32> to vector<16x128xf32>
    %211 = vector.broadcast %55 : vector<16x1xf32> to vector<16x128xf32>
    %212 = arith.addf %210, %211 : vector<16x128xf32>
    %cst_93 = arith.constant 0.000000e+00 : f32
    %213 = vector.broadcast %cst_93 : f32 to vector<16x128xf32>
    %214 = arith.maximumf %212, %213 : vector<16x128xf32>
    %215 = arith.truncf %214 : vector<16x128xf32> to vector<16x128xbf16>
    %c352 = arith.constant 352 : index
    %c0_94 = arith.constant 0 : index
    %216 = vector.load %arg17[%c352, %c0_94] : memref<368x128xbf16, #tpu.memory_space<vmem>>, vector<16x128xbf16>
    tpu.vector_store %arg17[%c352, %c0_94], %215 {strides = array<i32>} : memref<368x128xbf16, #tpu.memory_space<vmem>>, vector<16x128xbf16>,
    %c0_95 = arith.constant 0 : index
    %c0_96 = arith.constant 0 : index
    %217 = vector.load %arg8[%c0_95, %c0_96] : memref<24x368xbf16, #tpu.memory_space<vmem>>, vector<24x368xbf16>
    %c0_97 = arith.constant 0 : index
    %c0_98 = arith.constant 0 : index
    %218 = vector.load %arg17[%c0_97, %c0_98] : memref<368x128xbf16, #tpu.memory_space<vmem>>, vector<368x128xbf16>
    %cst_99 = arith.constant dense<0.000000e+00> : vector<24x128xf32>
    %219 = tpu.matmul %217, %218, %cst_99 {dimension_numbers = #tpu.dot_dimension_numbers<[1], [0], [0], [1], [0, 0, 1, 1], [], []>} : vector<24x368xbf16>, vector<368x128xbf16>, vector<24x128xf32> -> vector<24x128xf32>
    %c0_100 = arith.constant 0 : index
    %c0_101 = arith.constant 0 : index
    %220 = vector.load %arg9[%c0_100, %c0_101] : memref<24x1xf32, #tpu.memory_space<vmem>>, vector<24x1xf32>
    %221 = vector.broadcast %220 : vector<24x1xf32> to vector<24x128xf32>
    %222 = arith.addf %219, %221 : vector<24x128xf32>
    %cst_102 = arith.constant 0.000000e+00 : f32
    %223 = vector.broadcast %cst_102 : f32 to vector<24x128xf32>
    %224 = arith.maximumf %222, %223 : vector<24x128xf32>
    %225 = arith.truncf %224 : vector<24x128xf32> to vector<24x128xbf16>
    %c0_103 = arith.constant 0 : index
    %c0_104 = arith.constant 0 : index
    %226 = vector.load %arg10[%c0_103, %c0_104] : memref<12x24xbf16, #tpu.memory_space<vmem>>, vector<12x24xbf16>
    %cst_105 = arith.constant dense<0.000000e+00> : vector<12x128xf32>
    %227 = tpu.matmul %226, %225, %cst_105 {dimension_numbers = #tpu.dot_dimension_numbers<[1], [0], [0], [1], [0, 0, 1, 1], [], []>} : vector<12x24xbf16>, vector<24x128xbf16>, vector<12x128xf32> -> vector<12x128xf32>
    %c0_106 = arith.constant 0 : index
    %c0_107 = arith.constant 0 : index
    %228 = vector.load %arg11[%c0_106, %c0_107] : memref<12x1xf32, #tpu.memory_space<vmem>>, vector<12x1xf32>
    %229 = vector.broadcast %228 : vector<12x1xf32> to vector<12x128xf32>
    %230 = arith.addf %227, %229 : vector<12x128xf32>
    %cst_108 = arith.constant 0.000000e+00 : f32
    %231 = vector.broadcast %cst_108 : f32 to vector<12x128xf32>
    %232 = arith.maximumf %230, %231 : vector<12x128xf32>
    %233 = arith.truncf %232 : vector<12x128xf32> to vector<12x128xbf16>
    %c0_109 = arith.constant 0 : index
    %c0_110 = arith.constant 0 : index
    %234 = vector.load %arg12[%c0_109, %c0_110] : memref<1x12xbf16, #tpu.memory_space<vmem>>, vector<1x12xbf16>
    %cst_111 = arith.constant dense<0.000000e+00> : vector<1x128xf32>
    %235 = tpu.matmul %234, %233, %cst_111 {dimension_numbers = #tpu.dot_dimension_numbers<[1], [0], [0], [1], [0, 0, 1, 1], [], []>} : vector<1x12xbf16>, vector<12x128xbf16>, vector<1x128xf32> -> vector<1x128xf32>
    %c0_112 = arith.constant 0 : index
    %c0_113 = arith.constant 0 : index
    %236 = vector.load %arg13[%c0_112, %c0_113] : memref<1x1xf32, #tpu.memory_space<vmem>>, vector<1x1xf32>
    %237 = vector.broadcast %236 : vector<1x1xf32> to vector<1x128xf32>
    %238 = arith.addf %235, %237 : vector<1x128xf32>
    %cst_114 = arith.constant 0.000000e+00 : f32
    %239 = vector.broadcast %cst_114 : f32 to vector<1x128xf32>
    %240 = arith.subf %239, %238 : vector<1x128xf32>
    %241 = math.exp %240 : vector<1x128xf32>
    %cst_115 = arith.constant 1.000000e+00 : f32
    %242 = vector.broadcast %cst_115 : f32 to vector<1x128xf32>
    %243 = arith.addf %242, %241 : vector<1x128xf32>
    %244 = tpu.reciprocal %243 {approx = true} : vector<1x128xf32> -> vector<1x128xf32>
    %c0_116 = arith.constant 0 : index
    %c0_117 = arith.constant 0 : index
    %245 = vector.load %arg14[%c0_116, %c0_117] : memref<1x128xf32, #tpu.memory_space<vmem>>, vector<1x128xf32>
    tpu.vector_store %arg14[%c0_116, %c0_117], %244 {strides = array<i32>} : memref<1x128xf32, #tpu.memory_space<vmem>>, vector<1x128xf32>,
    return
  }
  func.func @transform_0(%arg0: i32) -> (i32, i32, i32) {
    %c0_i32 = arith.constant 0 : i32
    %c0_i32_0 = arith.constant 0 : i32
    %c0_i32_1 = arith.constant 0 : i32
    return %arg0, %c0_i32, %c0_i32_0 : i32, i32, i32
  }
  func.func @transform_1(%arg0: i32) -> (i32, i32, i32) {
    %c0_i32 = arith.constant 0 : i32
    %c0_i32_0 = arith.constant 0 : i32
    %c0_i32_1 = arith.constant 0 : i32
    %c0_i32_2 = arith.constant 0 : i32
    return %c0_i32, %c0_i32_0, %c0_i32_1 : i32, i32, i32
  }
  func.func @transform_2(%arg0: i32) -> (i32, i32) {
    %c0_i32 = arith.constant 0 : i32
    %c0_i32_0 = arith.constant 0 : i32
    %c0_i32_1 = arith.constant 0 : i32
    return %c0_i32, %c0_i32_0 : i32, i32
  }
  func.func @transform_3(%arg0: i32) -> (i32, i32) {
    %c0_i32 = arith.constant 0 : i32
    %c0_i32_0 = arith.constant 0 : i32
    %c0_i32_1 = arith.constant 0 : i32
    return %c0_i32, %c0_i32_0 : i32, i32
  }
  func.func @transform_4(%arg0: i32) -> (i32, i32) {
    %c0_i32 = arith.constant 0 : i32
    %c0_i32_0 = arith.constant 0 : i32
    %c0_i32_1 = arith.constant 0 : i32
    return %c0_i32, %c0_i32_0 : i32, i32
  }
  func.func @transform_5(%arg0: i32) -> (i32, i32) {
    %c0_i32 = arith.constant 0 : i32
    %c0_i32_0 = arith.constant 0 : i32
    %c0_i32_1 = arith.constant 0 : i32
    return %c0_i32, %c0_i32_0 : i32, i32
  }
  func.func @transform_6(%arg0: i32) -> (i32, i32) {
    %c0_i32 = arith.constant 0 : i32
    %c0_i32_0 = arith.constant 0 : i32
    %c0_i32_1 = arith.constant 0 : i32
    return %c0_i32, %c0_i32_0 : i32, i32
  }
  func.func @transform_7(%arg0: i32) -> (i32, i32) {
    %c0_i32 = arith.constant 0 : i32
    %c0_i32_0 = arith.constant 0 : i32
    %c0_i32_1 = arith.constant 0 : i32
    return %c0_i32, %c0_i32_0 : i32, i32
  }
  func.func @transform_8(%arg0: i32) -> (i32, i32) {
    %c0_i32 = arith.constant 0 : i32
    %c0_i32_0 = arith.constant 0 : i32
    %c0_i32_1 = arith.constant 0 : i32
    return %c0_i32, %c0_i32_0 : i32, i32
  }
  func.func @transform_9(%arg0: i32) -> (i32, i32) {
    %c0_i32 = arith.constant 0 : i32
    %c0_i32_0 = arith.constant 0 : i32
    %c0_i32_1 = arith.constant 0 : i32
    return %c0_i32, %c0_i32_0 : i32, i32
  }
  func.func @transform_10(%arg0: i32) -> (i32, i32) {
    %c0_i32 = arith.constant 0 : i32
    %c0_i32_0 = arith.constant 0 : i32
    %c0_i32_1 = arith.constant 0 : i32
    return %c0_i32, %c0_i32_0 : i32, i32
  }
  func.func @transform_11(%arg0: i32) -> (i32, i32) {
    %c0_i32 = arith.constant 0 : i32
    %c0_i32_0 = arith.constant 0 : i32
    %c0_i32_1 = arith.constant 0 : i32
    return %c0_i32, %c0_i32_0 : i32, i32
  }
  func.func @transform_12(%arg0: i32) -> (i32, i32) {
    %c0_i32 = arith.constant 0 : i32
    %c0_i32_0 = arith.constant 0 : i32
    %c0_i32_1 = arith.constant 0 : i32
    return %c0_i32, %c0_i32_0 : i32, i32
  }
  func.func @transform_13(%arg0: i32) -> (i32, i32) {
    %c0_i32 = arith.constant 0 : i32
    %c0_i32_0 = arith.constant 0 : i32
    return %c0_i32, %arg0 : i32, i32
  }
}

</mosaic_0001>

<bundles_post_ra>
// kernel: pwave_cnn.1
= control target key start
LH: loop header
LB: loop body
LE: loop exit
PB: predicated region body
PF: predicated region fallthrough
CT: control target
= control target key end

     0   :  { %v95_v0 = vlaneseq  ;;  %vm228_vm0 = vcmask 1040384   ;;  %v9293_v2 = vmov 1983009808   ;;  %vm229_vm1 = vcmask 1041408   ;;  %s11974_s0 = inlined_call_operand.vmem [shape: bf16[1,3,4096], index: 0, kind: input, shape index: {}]   ;;  %s11975_s1 = inlined_call_operand.vmem [shape: bf16[4,48,3], index: 1, kind: input, shape index: {}]   ;;  %s11976_s2 = inlined_call_operand.vmem [shape: f32[48,1], index: 2, kind: input, shape index: {}]   ;;  %s11977_s4 = inlined_call_operand.vmem [shape: f32[48,1], index: 4, kind: input, shape index: {}]   ;;  %s11978_s6 = inlined_call_operand.vmem [shape: f32[16,1], index: 6, kind: input, shape index: {}]   ;;  %s11979_s8 = inlined_call_operand.vmem [shape: f32[24,1], index: 8, kind: input, shape index: {}]   ;;  %s11980_s12 = inlined_call_operand.<no memory space> [shape: f32[1,1], index: 12, kind: input, shape index: {}]   ;;  %s11981_s10 = inlined_call_operand.vmem [shape: f32[12,1], index: 10, kind: input, shape index: {}]   ;;  %s11982_s3 = inlined_call_operand.vmem [shape: bf16[48,192], index: 3, kind: input, shape index: {}]   ;;  %s11983_s5 = inlined_call_operand.vmem [shape: bf16[16,192], index: 5, kind: input, shape index: {}]   ;;  %s11984_s7 = inlined_call_operand.vmem [shape: bf16[24,368], index: 7, kind: input, shape index: {}]   ;;  %s11985_s9 = inlined_call_operand.vmem [shape: bf16[12,24], index: 9, kind: input, shape index: {}]   ;;  %s11986_s11 = inlined_call_operand.vmem [shape: bf16[1,12], index: 11, kind: input, shape index: {}]   ;;  %s11987_s13 = inlined_call_operand.vmem [shape: f32[1,128], index: 13, kind: output, shape index: {}]  }
   0x1   :  { %v47_v1 = vld [vmem:[%s11974_s0] sm:$0xff]  ;;  %v93_v3 = vunpack.c.l.s4 %v9293_v2  ;;  %v48_v5 = vld [vmem:[%s11974_s0 + $0x8] sm:$0xff]  ;;  %v11990_v6 = vmov 0   ;;  %v9295_v9 = vmov 65535   ;;  %v49_v13 = vld [vmem:[%s11974_s0 + $0x10] sm:$0xff]  ;;  %vm218_vm2 = vcmask 23552  }
   0x2   :  { %v9371_v4 = vshrl.u32 %v95_v0, 7  ;;  %351 = vmatprep.mubr.bf16.mxu0 %v11990_v6  ;;  %414 = vmatprep.mubr.bf16.mxu1 %v11990_v6  ;;  %v91_v7 = vcombine.high %v47_v1, %v47_v1  ;;  %v230_v10 = vsel %vm228_vm0, 4294967295, %v9295_v9  ;;  %v108_v11 = vcombine.high %v48_v5, %v48_v5  ;;  %v50_v16 = vld [vmem:[%s11974_s0 + $0x18] sm:$0xff]  ;;  %v9456_v39 = vld [vmem:[%s11975_s1 + $0x20] sm:$0xff]   ;;  %v9467_v40 = vld [vmem:[%s11975_s1 + $0x28] sm:$0xff]  }
   0x3   :  { %v94_v8 = vunpack.c.0.s8 %v93_v3  ;;  %9239 = vset.pattern.permute.xlu0 %v11990_v6  ;;  %9240 = vset.pattern.permute.xlu1 %v11990_v6  ;;  %v9386_v14 = vsel %vm229_vm1, %v230_v10, 0  ;;  %v125_v15 = vcombine.high %v49_v13, %v49_v13  ;;  %v9425_v34 = vld [vmem:[%s11975_s1 + $0x18] sm:$0xff]   ;;  %v142_v41 = vcombine.high %v50_v16, %v50_v16  ;;  %v51_v42 = vld [vmem:[%s11974_s0 + $0x20] sm:$0xff]  ;;  %v52_v52 = vld [vmem:[%s11974_s0 + $0x28] sm:$0xff] }
   0x4   :  { %12009 = vst [vmem:[#allocation6_spill] sm:$0xff] %v9371_v4  ;;  %v159_v51 = vcombine.high %v51_v42, %v51_v42  ;;  %v176_v61 = vcombine.high %v52_v52, %v52_v52  ;;  %v53_v62 = vld [vmem:[%s11974_s0 + $0x30] sm:$0xff]  ;;  %v9593_v10 = vld [vmem:[%s11974_s0 + $0x38] sm:$0xff]  ;;  %vm9297_vm3 = vmmov 0   ;;  %vm5691_vm4 = vcmask 523264  }
   0x5   :  { %v9381_v12 = vsub.s32 %v94_v8, %v9371_v4  ;;  %v193_v9 = vcombine.high %v53_v62, %v53_v62  ;;  %vm8056_vm5 = vcmask 916480   ;;  %vm8187_vm6 = vcmask 1043456  }
   0x6   :  { %vm8183_vm7 = vcmask 195584   ;;  %vm8250_vm8 = vcmask 1045504   ;;  %vm8246_vm9 = vcmask 97280  }
   0x7   :  { %v105_v17 = vrot.slane %v91_v7, %v9381_v12  ;;  %v115_v18 = vrot.slane %v48_v5, %v9381_v12  ;;  %v9394_v19 = vrot.slane %v47_v1, %v9381_v12  ;;  %v122_v20 = vrot.slane %v108_v11, %v9381_v12 }
   0x8   :  { %v132_v21 = vrot.slane %v49_v13, %v9381_v12  ;;  %v139_v22 = vrot.slane %v125_v15, %v9381_v12  ;;  %v149_v33 = vrot.slane %v50_v16, %v9381_v12  ;;  %v156_v45 = vrot.slane %v142_v41, %v9381_v12 }
   0x9   :  { %v107_v23 = vcombine.high %v105_v17, %v105_v17  ;;  %v9400_v24 = vand.u32 %v9386_v14, %v105_v17  ;;  %v9403_v25 = vand.u32 %v9386_v14, %v115_v18  ;;  %v106_v26 = vcombine.high %v9394_v19, %v9394_v19 }
   0xa   :  { %v9408_v27 = vand.u32 %v9386_v14, %v122_v20  ;;  %v123_v28 = vcombine.high %v115_v18, %v115_v18  ;;  %v9411_v29 = vand.u32 %v9386_v14, %v132_v21  ;;  %v124_v30 = vcombine.high %v122_v20, %v122_v20 }
   0xb   :  { %319 = vmatprep.subr.bf16.mxu0 %v9400_v24  ;;  %382 = vmatprep.subr.bf16.mxu1 %v9403_v25  ;;  %v9416_v31 = vand.u32 %v9386_v14, %v106_v26  ;;  %v9419_v32 = vand.u32 %v9386_v14, %v107_v23  ;;  %v9438_v37 = vand.u32 %v9386_v14, %v139_v22 }
   0xc   :  { %v9430_v35 = vand.u32 %v9386_v14, %v123_v28  ;;  %v9435_v36 = vand.u32 %v9386_v14, %v124_v30  ;;  %v9441_v38 = vand.u32 %v9386_v14, %v149_v33  ;;  %v140_v43 = vcombine.high %v132_v21, %v132_v21 }
   0xd   :  { %320 = vmatpush1.bf16.msra.mxu0 %v9416_v31  ;;  %383 = vmatpush1.bf16.msra.mxu1 %v9419_v32  ;;  %v141_v44 = vcombine.high %v139_v22, %v139_v22  ;;  %v166_v46 = vrot.slane %v51_v42, %v9381_v12  ;;  %v9487_v49 = vand.u32 %v9386_v14, %v156_v45  ;;  %v11988_v30 = vmov 0.0  }
   0xe   :  { %445 = vmatprep.subr.bf16.mxu0 %v9408_v27  ;;  %508 = vmatprep.subr.bf16.mxu1 %v9411_v29  ;;  %v9481_v47 = vand.u32 %v9386_v14, %v140_v43  ;;  %v157_v53 = vcombine.high %v149_v33, %v149_v33  ;;  %v158_v54 = vcombine.high %v156_v45, %v156_v45 }
   0xf   :  { %v9484_v48 = vand.u32 %v9386_v14, %v141_v44  ;;  %v9490_v50 = vand.u32 %v9386_v14, %v166_v46  ;;  %v173_v55 = vrot.slane %v159_v51, %v9381_v12  ;;  %v183_v56 = vrot.slane %v52_v52, %v9381_v12 }
  0x10   :  { %8313 = vmatmul.mubr.msk.bf16.vlgmr.msra.gmra.mrb[0].mxu0 %vm218_vm2, %v9425_v34  ;;  %8316 = vmatmul.mubr.msk.bf16.vlgmr.msra.gmra.mrb[0].mxu1 %vm218_vm2, %v9425_v34  ;;  %v9520_v57 = vand.u32 %v9386_v14, %v157_v53  ;;  %v9523_v58 = vand.u32 %v9386_v14, %v158_v54  ;;  %v174_v63 = vcombine.high %v166_v46, %v166_v46 }
  0x11   :  { %446 = vmatpush1.bf16.msra.mxu0 %v9430_v35  ;;  %361 = vmatprep.mubr.bf16.mxu0 %v11990_v6  ;;  %v9526_v59 = vand.u32 %v9386_v14, %v173_v55  ;;  %v9529_v60 = vand.u32 %v9386_v14, %v183_v56  ;;  %v175_v0 = vcombine.high %v173_v55, %v173_v55 }
  0x12   :  { %424 = vmatprep.mubr.bf16.mxu1 %v11990_v6  ;;  %509 = vmatpush1.bf16.msra.mxu1 %v9435_v36  ;;  %v190_v1 = vrot.slane %v176_v61, %v9381_v12  ;;  %v200_v2 = vrot.slane %v53_v62, %v9381_v12  ;;  %v9559_v3 = vand.u32 %v9386_v14, %v174_v63  ;;  %v4527_v63 = vld [vmem:[%s11976_s2] sm:$0xff] }
  0x13   :  { %571 = vmatprep.subr.bf16.mxu0 %v9438_v37  ;;  %634 = vmatprep.subr.bf16.mxu1 %v9441_v38  ;;  %v9562_v5 = vand.u32 %v9386_v14, %v175_v0  ;;  %v191_v11 = vcombine.high %v183_v56, %v183_v56  ;;  %v207_v15 = vrot.slane %v193_v9, %v9381_v12  ;;  %v4529_v0 = vld [vmem:[%s11976_s2 + $0x10] sm:$0xff]  ;;  %v4531_v9 = vld [vmem:[%s11976_s2 + $0x20] sm:$0xff] }
  0x14   :  { %v9565_v7 = vand.u32 %v9386_v14, %v190_v1  ;;  %v9568_v8 = vand.u32 %v9386_v14, %v200_v2  ;;  %v192_v13 = vcombine.high %v190_v1, %v190_v1  ;;  %v216_v16 = vrot.slane %v9593_v10, %v9381_v12  ;;  %4535 = vperm.xlu0 %9239, %v4527_v63   ;;  %v4528_v1 = vld [vmem:[%s11976_s2 + $0x8] sm:$0xff] }
  0x15   :  { %v9601_v17 = vand.u32 %v9386_v14, %v191_v11  ;;  %v9607_v20 = vand.u32 %v9386_v14, %v207_v15  ;;  %v208_v22 = vcombine.high %v200_v2, %v200_v2  ;;  %v209_v23 = vcombine.high %v207_v15, %v207_v15  ;;  %4545 = vperm.xlu1 %9240, %v4529_v0   ;;  %v4530_v2 = vld [vmem:[%s11976_s2 + $0x18] sm:$0xff]  ;;  %v5628_v11 = vld [vmem:[%s11977_s4] sm:$0xff]  ;;  %v5629_v15 = vld [vmem:[%s11977_s4 + $0x8] sm:$0xff] }
  0x16   :  { %v9604_v18 = vand.u32 %v9386_v14, %v192_v13  ;;  %v9610_v21 = vand.u32 %v9386_v14, %v216_v16  ;;  %v217_v33 = vcombine.high %v216_v16, %v216_v16  ;;  %v1283_v42 = vand.u32 %v9386_v14, %v9394_v19  ;;  %v9708_v19 = vld [vmem:[%s11975_s1 + $0x8] sm:$0xff]   ;;  %v5630_v16 = vld [vmem:[%s11977_s4 + $0x10] sm:$0xff] }
  0x17   :  { %v9635_v26 = vand.u32 %v9386_v14, %v208_v22  ;;  %v9638_v28 = vand.u32 %v9386_v14, %v209_v23  ;;  %v2246_v13 = vcombine.high %v9593_v10, %v9593_v10  ;;  %v5631_v22 = vld [vmem:[%s11977_s4 + $0x18] sm:$0xff]  ;;  %v5632_v23 = vld [vmem:[%s11977_s4 + $0x20] sm:$0xff] }
  0x18   :  { %8314 = vmatmul.mubr.msk.bf16.gmra.mrb[4].mxu0 %vm218_vm2, %v9456_v39  ;;  %8317 = vmatmul.mubr.msk.bf16.gmra.mrb[4].mxu1 %vm218_vm2, %v9456_v39  ;;  %v9663_v41 = vand.u32 %v9386_v14, %v217_v33 }
  0x19   :  { %371 = vmatprep.mubr.bf16.mxu0 %v11990_v6  ;;  %434 = vmatprep.mubr.bf16.mxu1 %v11990_v6  ;;  %v10074_v10 = vrot.slane %v2246_v13, %v9381_v12  ;;  %v5633_v12 = vld [vmem:[%s11977_s4 + $0x28] sm:$0xff] }
  0x1a   :  { %4540 = vperm.xlu0 %9239, %v4528_v1   ;;  %4550 = vperm.xlu1 %9240, %v4530_v2  }
  0x1b   :  { %v10084_v33 = vand.u32 %v10074_v10, %v9386_v14 }
  0x1e   :  { %4555 = vperm.xlu0 %9239, %v4531_v9  }
  0x20   :  { %8315 = vmatmul.mubr.msk.bf16.gmra.mrb[8].mxu0 %vm218_vm2, %v9467_v40  ;;  %8318 = vmatmul.mubr.msk.bf16.gmra.mrb[8].mxu1 %vm218_vm2, %v9467_v40 }
  0x21   :  { %477 = vmatprep.mubr.bf16.mxu0 %v11990_v6  ;;  %540 = vmatprep.mubr.bf16.mxu1 %v11990_v6 }
  0x22   :  { %5636 = vperm.xlu0 %9239, %v5628_v11  }
  0x26   :  { %5646 = vperm.xlu0 %9239, %v5630_v16  }
  0x28   :  { %8319 = vmatmul.mubr.msk.bf16.vlgmr.msra.gmra.mrb[12].mxu0 %vm218_vm2, %v9425_v34  ;;  %8322 = vmatmul.mubr.msk.bf16.vlgmr.msra.gmra.mrb[12].mxu1 %vm218_vm2, %v9425_v34 }
  0x29   :  { %572 = vmatpush1.bf16.msra.mxu0 %v9481_v47  ;;  %487 = vmatprep.mubr.bf16.mxu0 %v11990_v6 }
  0x2a   :  { %550 = vmatprep.mubr.bf16.mxu1 %v11990_v6  ;;  %635 = vmatpush1.bf16.msra.mxu1 %v9484_v48 }
  0x2b   :  { %697 = vmatprep.subr.bf16.mxu0 %v9487_v49  ;;  %760 = vmatprep.subr.bf16.mxu1 %v9490_v50 }
  0x2c   :  { %5656 = vperm.xlu0 %9239, %v5632_v23  }
  0x30   :  { %8320 = vmatmul.mubr.msk.bf16.gmra.mrb[16].mxu0 %vm218_vm2, %v9456_v39  ;;  %8323 = vmatmul.mubr.msk.bf16.gmra.mrb[16].mxu1 %vm218_vm2, %v9456_v39 }
  0x31   :  { %497 = vmatprep.mubr.bf16.mxu0 %v11990_v6  ;;  %560 = vmatprep.mubr.bf16.mxu1 %v11990_v6 }
  0x38   :  { %8321 = vmatmul.mubr.msk.bf16.gmra.mrb[20].mxu0 %vm218_vm2, %v9467_v40  ;;  %8324 = vmatmul.mubr.msk.bf16.gmra.mrb[20].mxu1 %vm218_vm2, %v9467_v40 }
  0x39   :  { %603 = vmatprep.mubr.bf16.mxu0 %v11990_v6  ;;  %666 = vmatprep.mubr.bf16.mxu1 %v11990_v6 }
  0x40   :  { %8325 = vmatmul.mubr.msk.bf16.vlgmr.msra.gmra.mrb[24].mxu0 %vm218_vm2, %v9425_v34  ;;  %8328 = vmatmul.mubr.msk.bf16.vlgmr.msra.gmra.mrb[24].mxu1 %vm218_vm2, %v9425_v34 }
  0x41   :  { %698 = vmatpush1.bf16.msra.mxu0 %v9520_v57  ;;  %613 = vmatprep.mubr.bf16.mxu0 %v11990_v6 }
  0x42   :  { %676 = vmatprep.mubr.bf16.mxu1 %v11990_v6  ;;  %761 = vmatpush1.bf16.msra.mxu1 %v9523_v58 }
  0x43   :  { %823 = vmatprep.subr.bf16.mxu0 %v9526_v59  ;;  %886 = vmatprep.subr.bf16.mxu1 %v9529_v60 }
  0x48   :  { %8326 = vmatmul.mubr.msk.bf16.gmra.mrb[28].mxu0 %vm218_vm2, %v9456_v39  ;;  %8329 = vmatmul.mubr.msk.bf16.gmra.mrb[28].mxu1 %vm218_vm2, %v9456_v39 }
  0x49   :  { %623 = vmatprep.mubr.bf16.mxu0 %v11990_v6  ;;  %686 = vmatprep.mubr.bf16.mxu1 %v11990_v6 }
  0x50   :  { %8327 = vmatmul.mubr.msk.bf16.gmra.mrb[32].mxu0 %vm218_vm2, %v9467_v40  ;;  %8330 = vmatmul.mubr.msk.bf16.gmra.mrb[32].mxu1 %vm218_vm2, %v9467_v40 }
  0x51   :  { %729 = vmatprep.mubr.bf16.mxu0 %v11990_v6  ;;  %792 = vmatprep.mubr.bf16.mxu1 %v11990_v6 }
  0x58   :  { %8331 = vmatmul.mubr.msk.bf16.vlgmr.msra.gmra.mrb[36].mxu0 %vm218_vm2, %v9425_v34  ;;  %8334 = vmatmul.mubr.msk.bf16.vlgmr.msra.gmra.mrb[36].mxu1 %vm218_vm2, %v9425_v34 }
  0x59   :  { %824 = vmatpush1.bf16.msra.mxu0 %v9559_v3  ;;  %739 = vmatprep.mubr.bf16.mxu0 %v11990_v6 }
  0x5a   :  { %802 = vmatprep.mubr.bf16.mxu1 %v11990_v6  ;;  %887 = vmatpush1.bf16.msra.mxu1 %v9562_v5 }
  0x5b   :  { %949 = vmatprep.subr.bf16.mxu0 %v9565_v7  ;;  %1012 = vmatprep.subr.bf16.mxu1 %v9568_v8 }
  0x60   :  { %8332 = vmatmul.mubr.msk.bf16.gmra.mrb[40].mxu0 %vm218_vm2, %v9456_v39  ;;  %8335 = vmatmul.mubr.msk.bf16.gmra.mrb[40].mxu1 %vm218_vm2, %v9456_v39 }
  0x61   :  { %749 = vmatprep.mubr.bf16.mxu0 %v11990_v6  ;;  %812 = vmatprep.mubr.bf16.mxu1 %v11990_v6 }
  0x68   :  { %8333 = vmatmul.mubr.msk.bf16.gmra.mrb[44].mxu0 %vm218_vm2, %v9467_v40  ;;  %8336 = vmatmul.mubr.msk.bf16.gmra.mrb[44].mxu1 %vm218_vm2, %v9467_v40 }
  0x69   :  { %855 = vmatprep.mubr.bf16.mxu0 %v11990_v6  ;;  %918 = vmatprep.mubr.bf16.mxu1 %v11990_v6 }
  0x70   :  { %8337 = vmatmul.mubr.msk.bf16.vlgmr.msra.gmra.mrb[48].mxu0 %vm218_vm2, %v9425_v34  ;;  %8340 = vmatmul.mubr.msk.bf16.vlgmr.msra.gmra.mrb[48].mxu1 %vm218_vm2, %v9425_v34 }
  0x71   :  { %950 = vmatpush1.bf16.msra.mxu0 %v9601_v17  ;;  %865 = vmatprep.mubr.bf16.mxu0 %v11990_v6 }
  0x72   :  { %928 = vmatprep.mubr.bf16.mxu1 %v11990_v6  ;;  %1013 = vmatpush1.bf16.msra.mxu1 %v9604_v18 }
  0x73   :  { %1075 = vmatprep.subr.bf16.mxu0 %v9607_v20  ;;  %1138 = vmatprep.subr.bf16.mxu1 %v9610_v21 }
  0x78   :  { %8338 = vmatmul.mubr.msk.bf16.gmra.mrb[52].mxu0 %vm218_vm2, %v9456_v39  ;;  %8341 = vmatmul.mubr.msk.bf16.gmra.mrb[52].mxu1 %vm218_vm2, %v9456_v39 }
  0x79   :  { %875 = vmatprep.mubr.bf16.mxu0 %v11990_v6  ;;  %938 = vmatprep.mubr.bf16.mxu1 %v11990_v6 }
  0x80   :  { %8339 = vmatmul.mubr.msk.bf16.gmra.mrb[56].mxu0 %vm218_vm2, %v9467_v40  ;;  %8342 = vmatmul.mubr.msk.bf16.gmra.mrb[56].mxu1 %vm218_vm2, %v9467_v40 }
  0x81   :  { %981 = vmatprep.mubr.bf16.mxu0 %v11990_v6  ;;  %1044 = vmatprep.mubr.bf16.mxu1 %v11990_v6 }
  0x88   :  { %8343 = vmatmul.mubr.msk.bf16.vlgmr.msra.gmra.mrb[60].mxu0 %vm218_vm2, %v9425_v34  ;;  %8346 = vmatmul.mubr.msk.bf16.vlgmr.msra.gmra.mrb[60].mxu1 %vm218_vm2, %v9425_v34 }
  0x89   :  { %1076 = vmatpush1.bf16.msra.mxu0 %v9635_v26  ;;  %991 = vmatprep.mubr.bf16.mxu0 %v11990_v6 }
  0x8a   :  { %1054 = vmatprep.mubr.bf16.mxu1 %v11990_v6  ;;  %1139 = vmatpush1.bf16.msra.mxu1 %v9638_v28 }
  0x8b   :  { %8642 = vmatprep.subr.bf16.mxu0 %v11988_v30  ;;  %1348 = vmatprep.subr.bf16.mxu1 %v9419_v32 }
  0x90   :  { %8344 = vmatmul.mubr.msk.bf16.gmra.mrb[64].mxu0 %vm218_vm2, %v9456_v39  ;;  %8347 = vmatmul.mubr.msk.bf16.gmra.mrb[64].mxu1 %vm218_vm2, %v9456_v39 }
  0x91   :  { %1001 = vmatprep.mubr.bf16.mxu0 %v11990_v6  ;;  %1064 = vmatprep.mubr.bf16.mxu1 %v11990_v6 }
  0x98   :  { %8345 = vmatmul.mubr.msk.bf16.gmra.mrb[68].mxu0 %vm218_vm2, %v9467_v40  ;;  %8348 = vmatmul.mubr.msk.bf16.gmra.mrb[68].mxu1 %vm218_vm2, %v9467_v40 }
  0x99   :  { %1107 = vmatprep.mubr.bf16.mxu0 %v11990_v6  ;;  %1170 = vmatprep.mubr.bf16.mxu1 %v11990_v6 }
  0xa0   :  { %8349 = vmatmul.mubr.msk.bf16.vlgmr.msra.gmra.mrb[72].mxu0 %vm218_vm2, %v9425_v34  ;;  %8352 = vmatmul.mubr.msk.bf16.vlgmr.msra.gmra.mrb[72].mxu1 %vm218_vm2, %v9425_v34 }
  0xa1   :  { %8643 = vmatpush3.bf16.msra.mxu0 %v9663_v41  ;;  %1117 = vmatprep.mubr.bf16.mxu0 %v11990_v6 }
  0xa2   :  { %1180 = vmatprep.mubr.bf16.mxu1 %v11990_v6  ;;  %1349 = vmatpush1.bf16.msra.mxu1 %v9400_v24 }
  0xa3   :  { %1285 = vmatprep.subr.bf16.mxu0 %v9416_v31  ;;  %1474 = vmatprep.subr.bf16.mxu1 %v9435_v36  ;;  %v9691_v31 = vld [vmem:[%s11975_s1] sm:$0xff]  }
  0xa8   :  { %8350 = vmatmul.mubr.msk.bf16.gmra.mrb[76].mxu0 %vm218_vm2, %v9456_v39  ;;  %8353 = vmatmul.mubr.msk.bf16.gmra.mrb[76].mxu1 %vm218_vm2, %v9456_v39 }
  0xa9   :  { %1127 = vmatprep.mubr.bf16.mxu0 %v11990_v6  ;;  %1190 = vmatprep.mubr.bf16.mxu1 %v11990_v6 }
  0xb0   :  { %8351 = vmatmul.mubr.msk.bf16.gmra.mrb[80].mxu0 %vm218_vm2, %v9467_v40  ;;  %8354 = vmatmul.mubr.msk.bf16.gmra.mrb[80].mxu1 %vm218_vm2, %v9467_v40 }
  0xb1   :  { %8644 = vmatprep.mubr.msk.bf16.mxu0 %vm9297_vm3, %v11988_v30  ;;  %1380 = vmatprep.mubr.bf16.mxu1 %v11990_v6 }
  0xb8   :  { %8645 = vmatmul.mubr.msk.bf16.vlgmr.msra.gmra.mrb[84].mxu0 %vm218_vm2, %v9425_v34  ;;  %8364 = vmatmul.mubr.msk.bf16.vlgmr.msra.gmra.mrb[0].mxu1 %vm218_vm2, %v9691_v31  ;;  %v9720_v34 = vld [vmem:[%s11975_s1 + $0x10] sm:$0xff]  }
  0xb9   :  { %1286 = vmatpush1.bf16.msra.mxu0 %v1283_v42  ;;  %8648 = vmatprep.mubr.msk.bf16.mxu0 %vm9297_vm3, %v11988_v30  ;;  %v18_v42 = vstv %s11980_s12 }
  0xba   :  { %1390 = vmatprep.mubr.bf16.mxu1 %v11990_v6  ;;  %1475 = vmatpush1.bf16.msra.mxu1 %v9408_v27  ;;  %19 = vst [vmem:[#allocation5] sm:$0x1] %v18_v42 }
  0xbb   :  { %1411 = vmatprep.subr.bf16.mxu0 %v9430_v35  ;;  %1600 = vmatprep.subr.bf16.mxu1 %v9484_v48 }
  0xc0   :  { %8649 = vmatmul.mubr.msk.bf16.gmra.mrb[88].mxu0 %vm218_vm2, %v9456_v39  ;;  %8365 = vmatmul.mubr.msk.bf16.gmra.mrb[4].mxu1 %vm218_vm2, %v9708_v19  ;;  %v9903_v39 = vld [vmem:[%s11975_s1 + $0x38] sm:$0xff]  }
  0xc1   :  { %8652 = vmatprep.mubr.msk.bf16.mxu0 %vm9297_vm3, %v11988_v30  ;;  %1400 = vmatprep.mubr.bf16.mxu1 %v11990_v6 }
  0xc8   :  { %8653 = vmatmul.mubr.msk.bf16.gmra.mrb[92].mxu0 %vm218_vm2, %v9467_v40  ;;  %8366 = vmatmul.mubr.msk.bf16.gmra.mrb[8].mxu1 %vm218_vm2, %v9720_v34  ;;  %v9914_v40 = vld [vmem:[%s11975_s1 + $0x40] sm:$0xff]  }
  0xc9   :  { %1317 = vmatprep.mubr.bf16.mxu0 %v11990_v6  ;;  %1506 = vmatprep.mubr.bf16.mxu1 %v11990_v6 }
  0xd0   :  { %8361 = vmatmul.mubr.msk.bf16.vlgmr.msra.gmra.mrb[0].mxu0 %vm218_vm2, %v9691_v31  ;;  %8370 = vmatmul.mubr.msk.bf16.vlgmr.msra.gmra.mrb[12].mxu1 %vm218_vm2, %v9691_v31 }
  0xd1   :  { %1412 = vmatpush1.bf16.msra.mxu0 %v9403_v25  ;;  %1327 = vmatprep.mubr.bf16.mxu0 %v11990_v6 }
  0xd2   :  { %1516 = vmatprep.mubr.bf16.mxu1 %v11990_v6  ;;  %1601 = vmatpush1.bf16.msra.mxu1 %v9438_v37 }
  0xd3   :  { %1537 = vmatprep.subr.bf16.mxu0 %v9481_v47  ;;  %1726 = vmatprep.subr.bf16.mxu1 %v9523_v58 }
  0xd8   :  { %8362 = vmatmul.mubr.msk.bf16.gmra.mrb[4].mxu0 %vm218_vm2, %v9708_v19  ;;  %8371 = vmatmul.mubr.msk.bf16.gmra.mrb[16].mxu1 %vm218_vm2, %v9708_v19 }
  0xd9   :  { %1337 = vmatprep.mubr.bf16.mxu0 %v11990_v6  ;;  %1526 = vmatprep.mubr.bf16.mxu1 %v11990_v6 }
  0xe0   :  { %8363 = vmatmul.mubr.msk.bf16.gmra.mrb[8].mxu0 %vm218_vm2, %v9720_v34  ;;  %8372 = vmatmul.mubr.msk.bf16.gmra.mrb[20].mxu1 %vm218_vm2, %v9720_v34 }
  0xe1   :  { %1443 = vmatprep.mubr.bf16.mxu0 %v11990_v6  ;;  %1632 = vmatprep.mubr.bf16.mxu1 %v11990_v6 }
  0xe8   :  { %8367 = vmatmul.mubr.msk.bf16.vlgmr.msra.gmra.mrb[12].mxu0 %vm218_vm2, %v9691_v31  ;;  %8376 = vmatmul.mubr.msk.bf16.vlgmr.msra.gmra.mrb[24].mxu1 %vm218_vm2, %v9691_v31 }
  0xe9   :  { %1538 = vmatpush1.bf16.msra.mxu0 %v9411_v29  ;;  %1453 = vmatprep.mubr.bf16.mxu0 %v11990_v6 }
  0xea   :  { %1642 = vmatprep.mubr.bf16.mxu1 %v11990_v6  ;;  %1727 = vmatpush1.bf16.msra.mxu1 %v9487_v49 }
  0xeb   :  { %1663 = vmatprep.subr.bf16.mxu0 %v9520_v57  ;;  %1852 = vmatprep.subr.bf16.mxu1 %v9562_v5 }
  0xf0   :  { %8368 = vmatmul.mubr.msk.bf16.gmra.mrb[16].mxu0 %vm218_vm2, %v9708_v19  ;;  %8377 = vmatmul.mubr.msk.bf16.gmra.mrb[28].mxu1 %vm218_vm2, %v9708_v19 }
  0xf1   :  { %1463 = vmatprep.mubr.bf16.mxu0 %v11990_v6  ;;  %1652 = vmatprep.mubr.bf16.mxu1 %v11990_v6 }
  0xf8   :  { %8369 = vmatmul.mubr.msk.bf16.gmra.mrb[20].mxu0 %vm218_vm2, %v9720_v34  ;;  %8378 = vmatmul.mubr.msk.bf16.gmra.mrb[32].mxu1 %vm218_vm2, %v9720_v34 }
  0xf9   :  { %1569 = vmatprep.mubr.bf16.mxu0 %v11990_v6  ;;  %1758 = vmatprep.mubr.bf16.mxu1 %v11990_v6 }
 0x100   :  { %8373 = vmatmul.mubr.msk.bf16.vlgmr.msra.gmra.mrb[24].mxu0 %vm218_vm2, %v9691_v31  ;;  %8382 = vmatmul.mubr.msk.bf16.vlgmr.msra.gmra.mrb[36].mxu1 %vm218_vm2, %v9691_v31 }
 0x101   :  { %1664 = vmatpush1.bf16.msra.mxu0 %v9441_v38  ;;  %1579 = vmatprep.mubr.bf16.mxu0 %v11990_v6 }
 0x102   :  { %1768 = vmatprep.mubr.bf16.mxu1 %v11990_v6  ;;  %1853 = vmatpush1.bf16.msra.mxu1 %v9526_v59 }
 0x103   :  { %1789 = vmatprep.subr.bf16.mxu0 %v9559_v3  ;;  %1978 = vmatprep.subr.bf16.mxu1 %v9604_v18 }
 0x108   :  { %8374 = vmatmul.mubr.msk.bf16.gmra.mrb[28].mxu0 %vm218_vm2, %v9708_v19  ;;  %8383 = vmatmul.mubr.msk.bf16.gmra.mrb[40].mxu1 %vm218_vm2, %v9708_v19 }
 0x109   :  { %1589 = vmatprep.mubr.bf16.mxu0 %v11990_v6  ;;  %1778 = vmatprep.mubr.bf16.mxu1 %v11990_v6 }
 0x110   :  { %8375 = vmatmul.mubr.msk.bf16.gmra.mrb[32].mxu0 %vm218_vm2, %v9720_v34  ;;  %8384 = vmatmul.mubr.msk.bf16.gmra.mrb[44].mxu1 %vm218_vm2, %v9720_v34 }
 0x111   :  { %1695 = vmatprep.mubr.bf16.mxu0 %v11990_v6  ;;  %1884 = vmatprep.mubr.bf16.mxu1 %v11990_v6 }
 0x118   :  { %8379 = vmatmul.mubr.msk.bf16.vlgmr.msra.gmra.mrb[36].mxu0 %vm218_vm2, %v9691_v31  ;;  %8388 = vmatmul.mubr.msk.bf16.vlgmr.msra.gmra.mrb[48].mxu1 %vm218_vm2, %v9691_v31 }
 0x119   :  { %1790 = vmatpush1.bf16.msra.mxu0 %v9490_v50  ;;  %1705 = vmatprep.mubr.bf16.mxu0 %v11990_v6 }
 0x11a   :  { %1894 = vmatprep.mubr.bf16.mxu1 %v11990_v6  ;;  %1979 = vmatpush1.bf16.msra.mxu1 %v9565_v7 }
 0x11b   :  { %1915 = vmatprep.subr.bf16.mxu0 %v9601_v17  ;;  %2104 = vmatprep.subr.bf16.mxu1 %v9638_v28 }
 0x120   :  { %8380 = vmatmul.mubr.msk.bf16.gmra.mrb[40].mxu0 %vm218_vm2, %v9708_v19  ;;  %8389 = vmatmul.mubr.msk.bf16.gmra.mrb[52].mxu1 %vm218_vm2, %v9708_v19 }
 0x121   :  { %1715 = vmatprep.mubr.bf16.mxu0 %v11990_v6  ;;  %1904 = vmatprep.mubr.bf16.mxu1 %v11990_v6 }
 0x128   :  { %8381 = vmatmul.mubr.msk.bf16.gmra.mrb[44].mxu0 %vm218_vm2, %v9720_v34  ;;  %8390 = vmatmul.mubr.msk.bf16.gmra.mrb[56].mxu1 %vm218_vm2, %v9720_v34 }
 0x129   :  { %1821 = vmatprep.mubr.bf16.mxu0 %v11990_v6  ;;  %2010 = vmatprep.mubr.bf16.mxu1 %v11990_v6 }
 0x130   :  { %8385 = vmatmul.mubr.msk.bf16.vlgmr.msra.gmra.mrb[48].mxu0 %vm218_vm2, %v9691_v31  ;;  %8394 = vmatmul.mubr.msk.bf16.vlgmr.msra.gmra.mrb[60].mxu1 %vm218_vm2, %v9691_v31 }
 0x131   :  { %1916 = vmatpush1.bf16.msra.mxu0 %v9529_v60  ;;  %1831 = vmatprep.mubr.bf16.mxu0 %v11990_v6 }
 0x132   :  { %2020 = vmatprep.mubr.bf16.mxu1 %v11990_v6  ;;  %2105 = vmatpush1.bf16.msra.mxu1 %v9607_v20 }
 0x133   :  { %2041 = vmatprep.subr.bf16.mxu0 %v9635_v26  ;;  %8656 = vmatprep.subr.bf16.mxu1 %v11988_v30 }
 0x138   :  { %8386 = vmatmul.mubr.msk.bf16.gmra.mrb[52].mxu0 %vm218_vm2, %v9708_v19  ;;  %8395 = vmatmul.mubr.msk.bf16.gmra.mrb[64].mxu1 %vm218_vm2, %v9708_v19 }
 0x139   :  { %1841 = vmatprep.mubr.bf16.mxu0 %v11990_v6  ;;  %2030 = vmatprep.mubr.bf16.mxu1 %v11990_v6 }
 0x140   :  { %8387 = vmatmul.mubr.msk.bf16.gmra.mrb[56].mxu0 %vm218_vm2, %v9720_v34  ;;  %8396 = vmatmul.mubr.msk.bf16.gmra.mrb[68].mxu1 %vm218_vm2, %v9720_v34 }
 0x141   :  { %1947 = vmatprep.mubr.bf16.mxu0 %v11990_v6  ;;  %2136 = vmatprep.mubr.bf16.mxu1 %v11990_v6 }
 0x148   :  { %8391 = vmatmul.mubr.msk.bf16.vlgmr.msra.gmra.mrb[60].mxu0 %vm218_vm2, %v9691_v31  ;;  %8400 = vmatmul.mubr.msk.bf16.vlgmr.msra.gmra.mrb[72].mxu1 %vm218_vm2, %v9691_v31 }
 0x149   :  { %2042 = vmatpush1.bf16.msra.mxu0 %v9568_v8  ;;  %1957 = vmatprep.mubr.bf16.mxu0 %v11990_v6 }
 0x14a   :  { %2146 = vmatprep.mubr.bf16.mxu1 %v11990_v6  ;;  %8657 = vmatpush3.bf16.msra.mxu1 %v9610_v21 }
 0x14b   :  { %2266 = vmatprep.subr.bf16.mxu0 %v9419_v32  ;;  %2329 = vmatprep.subr.bf16.mxu1 %v9430_v35 }
 0x150   :  { %8392 = vmatmul.mubr.msk.bf16.gmra.mrb[64].mxu0 %vm218_vm2, %v9708_v19  ;;  %8401 = vmatmul.mubr.msk.bf16.gmra.mrb[76].mxu1 %vm218_vm2, %v9708_v19 }
 0x151   :  { %1967 = vmatprep.mubr.bf16.mxu0 %v11990_v6  ;;  %2156 = vmatprep.mubr.bf16.mxu1 %v11990_v6 }
 0x158   :  { %8393 = vmatmul.mubr.msk.bf16.gmra.mrb[68].mxu0 %vm218_vm2, %v9720_v34  ;;  %8402 = vmatmul.mubr.msk.bf16.gmra.mrb[80].mxu1 %vm218_vm2, %v9720_v34 }
 0x159   :  { %2073 = vmatprep.mubr.bf16.mxu0 %v11990_v6  ;;  %8658 = vmatprep.mubr.msk.bf16.mxu1 %vm9297_vm3, %v11988_v30 }
 0x160   :  { %8397 = vmatmul.mubr.msk.bf16.vlgmr.msra.gmra.mrb[72].mxu0 %vm218_vm2, %v9691_v31  ;;  %8659 = vmatmul.mubr.msk.bf16.vlgmr.msra.gmra.mrb[84].mxu1 %vm218_vm2, %v9691_v31  ;;  %v7834_v31 = vld [vmem:[%s11978_s6] sm:$0xff] }
 0x161   :  { %2267 = vmatpush1.bf16.msra.mxu0 %v9400_v24  ;;  %2083 = vmatprep.mubr.bf16.mxu0 %v11990_v6  ;;  %v9888_v24 = vld [vmem:[%s11975_s1 + $0x30] sm:$0xff]  }
 0x162   :  { %8662 = vmatprep.mubr.msk.bf16.mxu1 %vm9297_vm3, %v11988_v30  ;;  %2330 = vmatpush1.bf16.msra.mxu1 %v9403_v25 }
 0x163   :  { %2392 = vmatprep.subr.bf16.mxu0 %v9435_v36  ;;  %2455 = vmatprep.subr.bf16.mxu1 %v9481_v47 }
 0x164   :  { %7838 = vperm.xlu0 %9239, %v7834_v31  }
 0x168   :  { %8398 = vmatmul.mubr.msk.bf16.gmra.mrb[76].mxu0 %vm218_vm2, %v9708_v19  ;;  %8663 = vmatmul.mubr.msk.bf16.gmra.mrb[88].mxu1 %vm218_vm2, %v9708_v19  ;;  %v7835_v19 = vld [vmem:[%s11978_s6 + $0x8] sm:$0xff] }
 0x169   :  { %2093 = vmatprep.mubr.bf16.mxu0 %v11990_v6  ;;  %8666 = vmatprep.mubr.msk.bf16.mxu1 %vm9297_vm3, %v11988_v30 }
 0x170   :  { %8399 = vmatmul.mubr.msk.bf16.gmra.mrb[80].mxu0 %vm218_vm2, %v9720_v34  ;;  %8667 = vmatmul.mubr.msk.bf16.gmra.mrb[92].mxu1 %vm218_vm2, %v9720_v34  ;;  %v8013_v34 = vld [vmem:[%s11979_s8] sm:$0xff] }
 0x171   :  { %2298 = vmatprep.mubr.bf16.mxu0 %v11990_v6  ;;  %2361 = vmatprep.mubr.bf16.mxu1 %v11990_v6 }
 0x172   :  { %8018 = vperm.xlu0 %9239, %v8013_v34  }
 0x178   :  { %8415 = vmatmul.mubr.msk.bf16.vlgmr.msra.gmra.mrb[0].mxu0 %vm218_vm2, %v9888_v24  ;;  %8418 = vmatmul.mubr.msk.bf16.vlgmr.msra.gmra.mrb[0].mxu1 %vm218_vm2, %v9888_v24 }
 0x179   :  { %2393 = vmatpush1.bf16.msra.mxu0 %v9408_v27  ;;  %2308 = vmatprep.mubr.bf16.mxu0 %v11990_v6 }
 0x17a   :  { %2371 = vmatprep.mubr.bf16.mxu1 %v11990_v6  ;;  %2456 = vmatpush1.bf16.msra.mxu1 %v9411_v29 }
 0x17b   :  { %2518 = vmatprep.subr.bf16.mxu0 %v9484_v48  ;;  %2581 = vmatprep.subr.bf16.mxu1 %v9520_v57 }
 0x180   :  { %8416 = vmatmul.mubr.msk.bf16.gmra.mrb[4].mxu0 %vm218_vm2, %v9903_v39  ;;  %8419 = vmatmul.mubr.msk.bf16.gmra.mrb[4].mxu1 %vm218_vm2, %v9903_v39 }
 0x181   :  { %2318 = vmatprep.mubr.bf16.mxu0 %v11990_v6  ;;  %2381 = vmatprep.mubr.bf16.mxu1 %v11990_v6 }
 0x188   :  { %8417 = vmatmul.mubr.msk.bf16.gmra.mrb[8].mxu0 %vm218_vm2, %v9914_v40  ;;  %8420 = vmatmul.mubr.msk.bf16.gmra.mrb[8].mxu1 %vm218_vm2, %v9914_v40 }
 0x189   :  { %2424 = vmatprep.mubr.bf16.mxu0 %v11990_v6  ;;  %2487 = vmatprep.mubr.bf16.mxu1 %v11990_v6 }
 0x18b   :  { %v9922_v43 = vpop.f32.mrb[84].mxu0 }
 0x18c   :  { %v8646_v44 = vpop.f32.mrb[85].mxu0 }
 0x18d   :  { %v9924_v45 = vpop.f32.mrb[86].mxu0  ;;  %v8167_v44 = vld [vmem:[%s11981_s10 + $0x8] sm:$0xf] }
 0x18e   :  { %v8647_v46 = vpop.f32.mrb[87].mxu0 }
 0x18f   :  { %v8236_v46 = vld [vmem:[#allocation5] sm:$0x1] }
 0x190   :  { %8421 = vmatmul.mubr.msk.bf16.vlgmr.msra.gmra.mrb[12].mxu0 %vm218_vm2, %v9888_v24  ;;  %8424 = vmatmul.mubr.msk.bf16.vlgmr.msra.gmra.mrb[12].mxu1 %vm218_vm2, %v9888_v24 }
 0x191   :  { %2519 = vmatpush1.bf16.msra.mxu0 %v9438_v37  ;;  %2434 = vmatprep.mubr.bf16.mxu0 %v11990_v6 }
 0x192   :  { %2497 = vmatprep.mubr.bf16.mxu1 %v11990_v6  ;;  %2582 = vmatpush1.bf16.msra.mxu1 %v9441_v38 }
 0x193   :  { %v9934_v51 = vpop.f32.mrb[88].mxu0  ;;  %2644 = vmatprep.subr.bf16.mxu0 %v9523_v58  ;;  %2707 = vmatprep.subr.bf16.mxu1 %v9559_v3 }
 0x194   :  { %v8650_v52 = vpop.f32.mrb[89].mxu0 }
 0x195   :  { %v9938_v53 = vpop.f32.mrb[90].mxu0  ;;  %v10139_v52 = vld [vmem:[%s11975_s1 + $0x48] sm:$0xff]  }
 0x196   :  { %v8651_v54 = vpop.f32.mrb[91].mxu0 }
 0x198   :  { %8422 = vmatmul.mubr.msk.bf16.gmra.mrb[16].mxu0 %vm218_vm2, %v9903_v39  ;;  %8425 = vmatmul.mubr.msk.bf16.gmra.mrb[16].mxu1 %vm218_vm2, %v9903_v39 }
 0x199   :  { %2444 = vmatprep.mubr.bf16.mxu0 %v11990_v6  ;;  %2507 = vmatprep.mubr.bf16.mxu1 %v11990_v6 }
 0x19b   :  { %v9946_v55 = vpop.f32.mrb[92].mxu0 }
 0x19c   :  { %v8654_v56 = vpop.f32.mrb[93].mxu0 }
 0x19d   :  { %v9948_v61 = vpop.f32.mrb[94].mxu0 }
 0x19e   :  { %v8655_v62 = vpop.f32.mrb[95].mxu0 }
 0x1a0   :  { %8423 = vmatmul.mubr.msk.bf16.gmra.mrb[20].mxu0 %vm218_vm2, %v9914_v40  ;;  %8426 = vmatmul.mubr.msk.bf16.gmra.mrb[20].mxu1 %vm218_vm2, %v9914_v40 }
 0x1a1   :  { %2550 = vmatprep.mubr.bf16.mxu0 %v11990_v6  ;;  %2613 = vmatprep.mubr.bf16.mxu1 %v11990_v6 }
 0x1a8   :  { %8427 = vmatmul.mubr.msk.bf16.vlgmr.msra.gmra.mrb[24].mxu0 %vm218_vm2, %v9888_v24  ;;  %8430 = vmatmul.mubr.msk.bf16.vlgmr.msra.gmra.mrb[24].mxu1 %vm218_vm2, %v9888_v24 }
 0x1a9   :  { %2645 = vmatpush1.bf16.msra.mxu0 %v9487_v49  ;;  %2560 = vmatprep.mubr.bf16.mxu0 %v11990_v6 }
 0x1aa   :  { %2623 = vmatprep.mubr.bf16.mxu1 %v11990_v6  ;;  %2708 = vmatpush1.bf16.msra.mxu1 %v9490_v50 }
 0x1ab   :  { %2770 = vmatprep.subr.bf16.mxu0 %v9562_v5  ;;  %2833 = vmatprep.subr.bf16.mxu1 %v9601_v17 }
 0x1b0   :  { %8428 = vmatmul.mubr.msk.bf16.gmra.mrb[28].mxu0 %vm218_vm2, %v9903_v39  ;;  %8431 = vmatmul.mubr.msk.bf16.gmra.mrb[28].mxu1 %vm218_vm2, %v9903_v39 }
 0x1b1   :  { %2570 = vmatprep.mubr.bf16.mxu0 %v11990_v6  ;;  %2633 = vmatprep.mubr.bf16.mxu1 %v11990_v6 }
 0x1b8   :  { %8429 = vmatmul.mubr.msk.bf16.gmra.mrb[32].mxu0 %vm218_vm2, %v9914_v40  ;;  %8432 = vmatmul.mubr.msk.bf16.gmra.mrb[32].mxu1 %vm218_vm2, %v9914_v40 }
 0x1b9   :  { %2676 = vmatprep.mubr.bf16.mxu0 %v11990_v6  ;;  %2739 = vmatprep.mubr.bf16.mxu1 %v11990_v6 }
 0x1c0   :  { %8433 = vmatmul.mubr.msk.bf16.vlgmr.msra.gmra.mrb[36].mxu0 %vm218_vm2, %v9888_v24  ;;  %8436 = vmatmul.mubr.msk.bf16.vlgmr.msra.gmra.mrb[36].mxu1 %vm218_vm2, %v9888_v24 }
 0x1c1   :  { %2771 = vmatpush1.bf16.msra.mxu0 %v9526_v59  ;;  %2686 = vmatprep.mubr.bf16.mxu0 %v11990_v6 }
 0x1c2   :  { %2749 = vmatprep.mubr.bf16.mxu1 %v11990_v6  ;;  %2834 = vmatpush1.bf16.msra.mxu1 %v9529_v60 }
 0x1c3   :  { %2896 = vmatprep.subr.bf16.mxu0 %v9604_v18  ;;  %2959 = vmatprep.subr.bf16.mxu1 %v9635_v26 }
 0x1c8   :  { %8434 = vmatmul.mubr.msk.bf16.gmra.mrb[40].mxu0 %vm218_vm2, %v9903_v39  ;;  %8437 = vmatmul.mubr.msk.bf16.gmra.mrb[40].mxu1 %vm218_vm2, %v9903_v39 }
 0x1c9   :  { %2696 = vmatprep.mubr.bf16.mxu0 %v11990_v6  ;;  %2759 = vmatprep.mubr.bf16.mxu1 %v11990_v6 }
 0x1d0   :  { %8435 = vmatmul.mubr.msk.bf16.gmra.mrb[44].mxu0 %vm218_vm2, %v9914_v40  ;;  %8438 = vmatmul.mubr.msk.bf16.gmra.mrb[44].mxu1 %vm218_vm2, %v9914_v40 }
 0x1d1   :  { %2802 = vmatprep.mubr.bf16.mxu0 %v11990_v6  ;;  %2865 = vmatprep.mubr.bf16.mxu1 %v11990_v6 }
 0x1d8   :  { %8439 = vmatmul.mubr.msk.bf16.vlgmr.msra.gmra.mrb[48].mxu0 %vm218_vm2, %v9888_v24  ;;  %8442 = vmatmul.mubr.msk.bf16.vlgmr.msra.gmra.mrb[48].mxu1 %vm218_vm2, %v9888_v24 }
 0x1d9   :  { %2897 = vmatpush1.bf16.msra.mxu0 %v9565_v7  ;;  %2812 = vmatprep.mubr.bf16.mxu0 %v11990_v6 }
 0x1da   :  { %2875 = vmatprep.mubr.bf16.mxu1 %v11990_v6  ;;  %2960 = vmatpush1.bf16.msra.mxu1 %v9568_v8 }
 0x1db   :  { %3022 = vmatprep.subr.bf16.mxu0 %v9638_v28  ;;  %3085 = vmatprep.subr.bf16.mxu1 %v9663_v41 }
 0x1e0   :  { %8440 = vmatmul.mubr.msk.bf16.gmra.mrb[52].mxu0 %vm218_vm2, %v9903_v39  ;;  %8443 = vmatmul.mubr.msk.bf16.gmra.mrb[52].mxu1 %vm218_vm2, %v9903_v39 }
 0x1e1   :  { %2822 = vmatprep.mubr.bf16.mxu0 %v11990_v6  ;;  %2885 = vmatprep.mubr.bf16.mxu1 %v11990_v6 }
 0x1e8   :  { %8441 = vmatmul.mubr.msk.bf16.gmra.mrb[56].mxu0 %vm218_vm2, %v9914_v40  ;;  %8444 = vmatmul.mubr.msk.bf16.gmra.mrb[56].mxu1 %vm218_vm2, %v9914_v40 }
 0x1e9   :  { %2928 = vmatprep.mubr.bf16.mxu0 %v11990_v6  ;;  %2991 = vmatprep.mubr.bf16.mxu1 %v11990_v6 }
 0x1f0   :  { %8445 = vmatmul.mubr.msk.bf16.vlgmr.msra.gmra.mrb[60].mxu0 %vm218_vm2, %v9888_v24  ;;  %8448 = vmatmul.mubr.msk.bf16.vlgmr.msra.gmra.mrb[60].mxu1 %vm218_vm2, %v9888_v24 }
 0x1f1   :  { %3023 = vmatpush1.bf16.msra.mxu0 %v9607_v20  ;;  %2938 = vmatprep.mubr.bf16.mxu0 %v11990_v6 }
 0x1f2   :  { %3001 = vmatprep.mubr.bf16.mxu1 %v11990_v6  ;;  %3086 = vmatpush1.bf16.msra.mxu1 %v9610_v21 }
 0x1f3   :  { %8670 = vmatprep.subr.bf16.mxu0 %v11988_v30  ;;  %3477 = vmatprep.subr.bf16.mxu1 %v9408_v27  ;;  %v4532_v27 = vld [vmem:[%s11976_s2 + $0x28] sm:$0xff] }
 0x1f4   :  { %4560 = vperm.xlu1 %9240, %v4532_v27  }
 0x1f8   :  { %8446 = vmatmul.mubr.msk.bf16.gmra.mrb[64].mxu0 %vm218_vm2, %v9903_v39  ;;  %8449 = vmatmul.mubr.msk.bf16.gmra.mrb[64].mxu1 %vm218_vm2, %v9903_v39 }
 0x1f9   :  { %2948 = vmatprep.mubr.bf16.mxu0 %v11990_v6  ;;  %3011 = vmatprep.mubr.bf16.mxu1 %v11990_v6 }
 0x1fa   :  { %5641 = vperm.xlu1 %9240, %v5629_v15  }
 0x1fe   :  { %5651 = vperm.xlu1 %9240, %v5631_v22  }
 0x200   :  { %8447 = vmatmul.mubr.msk.bf16.gmra.mrb[68].mxu0 %vm218_vm2, %v9914_v40  ;;  %8450 = vmatmul.mubr.msk.bf16.gmra.mrb[68].mxu1 %vm218_vm2, %v9914_v40 }
 0x201   :  { %3054 = vmatprep.mubr.bf16.mxu0 %v11990_v6  ;;  %3117 = vmatprep.mubr.bf16.mxu1 %v11990_v6 }
 0x202   :  { %5661 = vperm.xlu1 %9240, %v5633_v12  }
 0x206   :  { %7843 = vperm.xlu1 %9240, %v7835_v19  }
 0x208   :  { %8451 = vmatmul.mubr.msk.bf16.vlgmr.msra.gmra.mrb[72].mxu0 %vm218_vm2, %v9888_v24  ;;  %8454 = vmatmul.mubr.msk.bf16.vlgmr.msra.gmra.mrb[72].mxu1 %vm218_vm2, %v9888_v24 }
 0x209   :  { %8671 = vmatpush3.bf16.msra.mxu0 %v10084_v33  ;;  %3064 = vmatprep.mubr.bf16.mxu0 %v11990_v6 }
 0x20a   :  { %3127 = vmatprep.mubr.bf16.mxu1 %v11990_v6  ;;  %3478 = vmatpush1.bf16.msra.mxu1 %v9430_v35  ;;  %v8015_v35 = vld [vmem:[%s11979_s8 + $0x10] sm:$0xff] }
 0x20b   :  { %3414 = vmatprep.subr.bf16.mxu0 %v9403_v25  ;;  %3603 = vmatprep.subr.bf16.mxu1 %v9438_v37  ;;  %v8014_v25 = vld [vmem:[%s11979_s8 + $0x8] sm:$0xff]  ;;  %v8166_v37 = vld [vmem:[%s11981_s10] sm:$0xff] }
 0x20c   :  { %8023 = vperm.xlu1 %9240, %v8014_v25   ;;  %8028 = vperm.xlu0 %9239, %v8015_v35  }
 0x210   :  { %8452 = vmatmul.mubr.msk.bf16.gmra.mrb[76].mxu0 %vm218_vm2, %v9903_v39  ;;  %8455 = vmatmul.mubr.msk.bf16.gmra.mrb[76].mxu1 %vm218_vm2, %v9903_v39 }
 0x211   :  { %3074 = vmatprep.mubr.bf16.mxu0 %v11990_v6  ;;  %3137 = vmatprep.mubr.bf16.mxu1 %v11990_v6 }
 0x212   :  { %8170 = vperm.xlu1 %9240, %v8166_v37   ;;  %8175 = vperm.xlu0 %9239, %v8167_v44  }
 0x216   :  { %8239 = vperm.xlu1 %9240, %v8236_v46  }
 0x218   :  { %8453 = vmatmul.mubr.msk.bf16.gmra.mrb[80].mxu0 %vm218_vm2, %v9914_v40  ;;  %8456 = vmatmul.mubr.msk.bf16.gmra.mrb[80].mxu1 %vm218_vm2, %v9914_v40 }
 0x219   :  { %8672 = vmatprep.mubr.msk.bf16.mxu0 %vm9297_vm3, %v11988_v30  ;;  %3509 = vmatprep.mubr.bf16.mxu1 %v11990_v6 }
 0x220   :  { %8673 = vmatmul.mubr.msk.bf16.vlgmr.msra.gmra.mrb[96].mxu0 %vm218_vm2, %v9888_v24  ;;  %8472 = vmatmul.mubr.msk.bf16.vlgmr.msra.gmra.mrb[0].mxu1 %vm218_vm2, %v10139_v52  ;;  %v10155_v24 = vld [vmem:[%s11975_s1 + $0x50] sm:$0xff]  }
 0x221   :  { %3415 = vmatpush1.bf16.msra.mxu0 %v9419_v32  ;;  %8676 = vmatprep.mubr.msk.bf16.mxu0 %vm9297_vm3, %v11988_v30 }
 0x222   :  { %3519 = vmatprep.mubr.bf16.mxu1 %v11990_v6  ;;  %3604 = vmatpush1.bf16.msra.mxu1 %v9481_v47 }
 0x223   :  { %3540 = vmatprep.subr.bf16.mxu0 %v9411_v29  ;;  %3729 = vmatprep.subr.bf16.mxu1 %v9487_v49  ;;  %v10167_v29 = vld [vmem:[%s11975_s1 + $0x58] sm:$0xff]  }
 0x228   :  { %8677 = vmatmul.mubr.msk.bf16.gmra.mrb[100].mxu0 %vm218_vm2, %v9903_v39  ;;  %8473 = vmatmul.mubr.msk.bf16.gmra.mrb[4].mxu1 %vm218_vm2, %v10155_v24 }
 0x229   :  { %8680 = vmatprep.mubr.msk.bf16.mxu0 %vm9297_vm3, %v11988_v30  ;;  %3529 = vmatprep.mubr.bf16.mxu1 %v11990_v6 }
 0x230   :  { %8681 = vmatmul.mubr.msk.bf16.gmra.mrb[104].mxu0 %vm218_vm2, %v9914_v40  ;;  %8474 = vmatmul.mubr.msk.bf16.gmra.mrb[8].mxu1 %vm218_vm2, %v10167_v29 }
 0x231   :  { %3446 = vmatprep.mubr.bf16.mxu0 %v11990_v6  ;;  %3635 = vmatprep.mubr.bf16.mxu1 %v11990_v6 }
 0x233   :  { %v2201_v32 = vpop.f32.mrb[84].mxu1 }
 0x234   :  { %v10176_v47 = vadd.f32 %v2201_v32, %v9922_v43  ;;  %v8660_v49 = vpop.f32.mrb[85].mxu1 }
 0x235   :  { %v2204_v39 = vpop.f32.mrb[86].mxu1 }
 0x236   :  { %v10179_v54 = vadd.f32 %v2204_v39, %v9924_v45  ;;  %v8661_v56 = vpop.f32.mrb[87].mxu1 }
 0x238   :  { %8469 = vmatmul.mubr.msk.bf16.vlgmr.msra.gmra.mrb[0].mxu0 %vm218_vm2, %v10139_v52  ;;  %8478 = vmatmul.mubr.msk.bf16.vlgmr.msra.gmra.mrb[12].mxu1 %vm218_vm2, %v10139_v52 }
 0x239   :  { %3456 = vmatprep.mubr.bf16.mxu0 %v11990_v6  ;;  %3645 = vmatprep.mubr.bf16.mxu1 %v11990_v6 }
 0x23a   :  { %3541 = vmatpush1.bf16.msra.mxu0 %v9435_v36  ;;  %3730 = vmatpush1.bf16.msra.mxu1 %v9520_v57 }
 0x23b   :  { %v2209_v40 = vpop.f32.mrb[88].mxu1  ;;  %3666 = vmatprep.subr.bf16.mxu0 %v9441_v38  ;;  %3855 = vmatprep.subr.bf16.mxu1 %v9526_v59 }
 0x23c   :  { %v10192_v43 = vadd.f32 %v2209_v40, %v9934_v51  ;;  %v8664_v45 = vpop.f32.mrb[89].mxu1 }
 0x23d   :  { %v2212_v62 = vpop.f32.mrb[90].mxu1 }
 0x23e   :  { %v10195_v63 = vadd.f32 %v2212_v62, %v9938_v53  ;;  %v8665_v0 = vpop.f32.mrb[91].mxu1 }
 0x240   :  { %8470 = vmatmul.mubr.msk.bf16.gmra.mrb[4].mxu0 %vm218_vm2, %v10155_v24  ;;  %8479 = vmatmul.mubr.msk.bf16.gmra.mrb[16].mxu1 %vm218_vm2, %v10155_v24 }
 0x241   :  { %3466 = vmatprep.mubr.bf16.mxu0 %v11990_v6  ;;  %3655 = vmatprep.mubr.bf16.mxu1 %v11990_v6 }
 0x243   :  { %v2217_v36 = vpop.f32.mrb[92].mxu1 }
 0x244   :  { %v10204_v38 = vadd.f32 %v2217_v36, %v9946_v55  ;;  %v8668_v57 = vpop.f32.mrb[93].mxu1 }
 0x245   :  { %v2220_v59 = vpop.f32.mrb[94].mxu1 }
 0x246   :  { %v10207_v51 = vadd.f32 %v2220_v59, %v9948_v61  ;;  %v8669_v53 = vpop.f32.mrb[95].mxu1 }
 0x248   :  { %8471 = vmatmul.mubr.msk.bf16.gmra.mrb[8].mxu0 %vm218_vm2, %v10167_v29  ;;  %8480 = vmatmul.mubr.msk.bf16.gmra.mrb[20].mxu1 %vm218_vm2, %v10167_v29 }
 0x249   :  { %3572 = vmatprep.mubr.bf16.mxu0 %v11990_v6  ;;  %3761 = vmatprep.mubr.bf16.mxu1 %v11990_v6 }
 0x250   :  { %8475 = vmatmul.mubr.msk.bf16.vlgmr.msra.gmra.mrb[12].mxu0 %vm218_vm2, %v10139_v52  ;;  %8484 = vmatmul.mubr.msk.bf16.vlgmr.msra.gmra.mrb[24].mxu1 %vm218_vm2, %v10139_v52 }
 0x251   :  { %3582 = vmatprep.mubr.bf16.mxu0 %v11990_v6  ;;  %3771 = vmatprep.mubr.bf16.mxu1 %v11990_v6 }
 0x252   :  { %3667 = vmatpush1.bf16.msra.mxu0 %v9484_v48  ;;  %3856 = vmatpush1.bf16.msra.mxu1 %v9559_v3  ;;  %v3401_v48 = vcombine.high %v10074_v10, %v10074_v10 }
 0x253   :  { %3792 = vmatprep.subr.bf16.mxu0 %v9490_v50  ;;  %3981 = vmatprep.subr.bf16.mxu1 %v9565_v7 }
 0x254   :  { %v3412_v50 = vand.u32 %v3401_v48, %v9386_v14  ;;  %v10343_v14 = vld [vmem:[%s11982_s3 + $0x4] ss:$8 sps:$4 sm:$0xff]  }
 0x258   :  { %8476 = vmatmul.mubr.msk.bf16.gmra.mrb[16].mxu0 %vm218_vm2, %v10155_v24  ;;  %8485 = vmatmul.mubr.msk.bf16.gmra.mrb[28].mxu1 %vm218_vm2, %v10155_v24 }
 0x259   :  { %3592 = vmatprep.mubr.bf16.mxu0 %v11990_v6  ;;  %3781 = vmatprep.mubr.bf16.mxu1 %v11990_v6 }
 0x260   :  { %8477 = vmatmul.mubr.msk.bf16.gmra.mrb[20].mxu0 %vm218_vm2, %v10167_v29  ;;  %8486 = vmatmul.mubr.msk.bf16.gmra.mrb[32].mxu1 %vm218_vm2, %v10167_v29 }
 0x261   :  { %3698 = vmatprep.mubr.bf16.mxu0 %v11990_v6  ;;  %3887 = vmatprep.mubr.bf16.mxu1 %v11990_v6 }
 0x268   :  { %8481 = vmatmul.mubr.msk.bf16.vlgmr.msra.gmra.mrb[24].mxu0 %vm218_vm2, %v10139_v52  ;;  %8490 = vmatmul.mubr.msk.bf16.vlgmr.msra.gmra.mrb[36].mxu1 %vm218_vm2, %v10139_v52 }
 0x269   :  { %3708 = vmatprep.mubr.bf16.mxu0 %v11990_v6  ;;  %3897 = vmatprep.mubr.bf16.mxu1 %v11990_v6 }
 0x26a   :  { %3793 = vmatpush1.bf16.msra.mxu0 %v9523_v58  ;;  %3982 = vmatpush1.bf16.msra.mxu1 %v9601_v17  ;;  %v10353_v58 = vpop.permute.xlu0 %4535 }
 0x26b   :  { %3918 = vmatprep.subr.bf16.mxu0 %v9529_v60  ;;  %4107 = vmatprep.subr.bf16.mxu1 %v9607_v20  ;;  %v10355_v60 = vpop.permute.xlu1 %4545 }
 0x26e   :  { %v10357_v3 = vpop.permute.xlu0 %4540 }
 0x26f   :  { %v10371_v16 = vpop.permute.xlu1 %4550 }
 0x270   :  { %8482 = vmatmul.mubr.msk.bf16.gmra.mrb[28].mxu0 %vm218_vm2, %v10155_v24  ;;  %8491 = vmatmul.mubr.msk.bf16.gmra.mrb[40].mxu1 %vm218_vm2, %v10155_v24 }
 0x271   :  { %3718 = vmatprep.mubr.bf16.mxu0 %v11990_v6  ;;  %3907 = vmatprep.mubr.bf16.mxu1 %v11990_v6 }
 0x272   :  { %v10387_v49 = vpop.permute.xlu0 %4555 }
 0x273   :  { %v10389_v39 = vpop.permute.xlu1 %4560 }
 0x278   :  { %8483 = vmatmul.mubr.msk.bf16.gmra.mrb[32].mxu0 %vm218_vm2, %v10167_v29  ;;  %8492 = vmatmul.mubr.msk.bf16.gmra.mrb[44].mxu1 %vm218_vm2, %v10167_v29 }
 0x279   :  { %3824 = vmatprep.mubr.bf16.mxu0 %v11990_v6  ;;  %4013 = vmatprep.mubr.bf16.mxu1 %v11990_v6 }
 0x280   :  { %8487 = vmatmul.mubr.msk.bf16.vlgmr.msra.gmra.mrb[36].mxu0 %vm218_vm2, %v10139_v52  ;;  %8496 = vmatmul.mubr.msk.bf16.vlgmr.msra.gmra.mrb[48].mxu1 %vm218_vm2, %v10139_v52 }
 0x281   :  { %3834 = vmatprep.mubr.bf16.mxu0 %v11990_v6  ;;  %4023 = vmatprep.mubr.bf16.mxu1 %v11990_v6 }
 0x282   :  { %3919 = vmatpush1.bf16.msra.mxu0 %v9562_v5  ;;  %4108 = vmatpush1.bf16.msra.mxu1 %v9635_v26 }
 0x283   :  { %4044 = vmatprep.subr.bf16.mxu0 %v9568_v8  ;;  %4233 = vmatprep.subr.bf16.mxu1 %v10084_v33 }
 0x288   :  { %8488 = vmatmul.mubr.msk.bf16.gmra.mrb[40].mxu0 %vm218_vm2, %v10155_v24  ;;  %8497 = vmatmul.mubr.msk.bf16.gmra.mrb[52].mxu1 %vm218_vm2, %v10155_v24 }
 0x289   :  { %3844 = vmatprep.mubr.bf16.mxu0 %v11990_v6  ;;  %4033 = vmatprep.mubr.bf16.mxu1 %v11990_v6 }
 0x290   :  { %8489 = vmatmul.mubr.msk.bf16.gmra.mrb[44].mxu0 %vm218_vm2, %v10167_v29  ;;  %8498 = vmatmul.mubr.msk.bf16.gmra.mrb[56].mxu1 %vm218_vm2, %v10167_v29 }
 0x291   :  { %3950 = vmatprep.mubr.bf16.mxu0 %v11990_v6  ;;  %4139 = vmatprep.mubr.bf16.mxu1 %v11990_v6 }
 0x298   :  { %8493 = vmatmul.mubr.msk.bf16.vlgmr.msra.gmra.mrb[48].mxu0 %vm218_vm2, %v10139_v52  ;;  %8502 = vmatmul.mubr.msk.bf16.vlgmr.msra.gmra.mrb[60].mxu1 %vm218_vm2, %v10139_v52 }
 0x299   :  { %3960 = vmatprep.mubr.bf16.mxu0 %v11990_v6  ;;  %4149 = vmatprep.mubr.bf16.mxu1 %v11990_v6 }
 0x29a   :  { %4045 = vmatpush1.bf16.msra.mxu0 %v9604_v18  ;;  %4234 = vmatpush1.bf16.msra.mxu1 %v9663_v41 }
 0x29b   :  { %4170 = vmatprep.subr.bf16.mxu0 %v9610_v21  ;;  %8684 = vmatprep.subr.bf16.mxu1 %v11988_v30 }
 0x2a0   :  { %8494 = vmatmul.mubr.msk.bf16.gmra.mrb[52].mxu0 %vm218_vm2, %v10155_v24  ;;  %8503 = vmatmul.mubr.msk.bf16.gmra.mrb[64].mxu1 %vm218_vm2, %v10155_v24 }
 0x2a1   :  { %3970 = vmatprep.mubr.bf16.mxu0 %v11990_v6  ;;  %4159 = vmatprep.mubr.bf16.mxu1 %v11990_v6 }
 0x2a8   :  { %8495 = vmatmul.mubr.msk.bf16.gmra.mrb[56].mxu0 %vm218_vm2, %v10167_v29  ;;  %8504 = vmatmul.mubr.msk.bf16.gmra.mrb[68].mxu1 %vm218_vm2, %v10167_v29 }
 0x2a9   :  { %4076 = vmatprep.mubr.bf16.mxu0 %v11990_v6  ;;  %4265 = vmatprep.mubr.bf16.mxu1 %v11990_v6 }
 0x2b0   :  { %8499 = vmatmul.mubr.msk.bf16.vlgmr.msra.gmra.mrb[60].mxu0 %vm218_vm2, %v10139_v52  ;;  %8508 = vmatmul.mubr.msk.bf16.vlgmr.msra.gmra.mrb[72].mxu1 %vm218_vm2, %v10139_v52 }
 0x2b1   :  { %4086 = vmatprep.mubr.bf16.mxu0 %v11990_v6  ;;  %4275 = vmatprep.mubr.bf16.mxu1 %v11990_v6 }
 0x2b2   :  { %4171 = vmatpush1.bf16.msra.mxu0 %v9638_v28  ;;  %8685 = vmatpush3.bf16.msra.mxu1 %v3412_v50 }
 0x2b8   :  { %8500 = vmatmul.mubr.msk.bf16.gmra.mrb[64].mxu0 %vm218_vm2, %v10155_v24  ;;  %8509 = vmatmul.mubr.msk.bf16.gmra.mrb[76].mxu1 %vm218_vm2, %v10155_v24 }
 0x2b9   :  { %4096 = vmatprep.mubr.bf16.mxu0 %v11990_v6  ;;  %4285 = vmatprep.mubr.bf16.mxu1 %v11990_v6 }
 0x2c0   :  { %8501 = vmatmul.mubr.msk.bf16.gmra.mrb[68].mxu0 %vm218_vm2, %v10167_v29  ;;  %8510 = vmatmul.mubr.msk.bf16.gmra.mrb[80].mxu1 %vm218_vm2, %v10167_v29 }
 0x2c1   :  { %4202 = vmatprep.mubr.bf16.mxu0 %v11990_v6  ;;  %8686 = vmatprep.mubr.msk.bf16.mxu1 %vm9297_vm3, %v11988_v30 }
 0x2c8   :  { %8505 = vmatmul.mubr.msk.bf16.vlgmr.msra.gmra.mrb[72].mxu0 %vm218_vm2, %v10139_v52  ;;  %8687 = vmatmul.mubr.msk.bf16.vlgmr.msra.gmra.mrb[96].mxu1 %vm218_vm2, %v10139_v52 }
 0x2c9   :  { %4212 = vmatprep.mubr.bf16.mxu0 %v11990_v6  ;;  %8690 = vmatprep.mubr.msk.bf16.mxu1 %vm9297_vm3, %v11988_v30 }
 0x2d0   :  { %8506 = vmatmul.mubr.msk.bf16.gmra.mrb[76].mxu0 %vm218_vm2, %v10155_v24  ;;  %8691 = vmatmul.mubr.msk.bf16.gmra.mrb[100].mxu1 %vm218_vm2, %v10155_v24 }
 0x2d1   :  { %4222 = vmatprep.mubr.bf16.mxu0 %v11990_v6  ;;  %8694 = vmatprep.mubr.msk.bf16.mxu1 %vm9297_vm3, %v11988_v30 }
 0x2d8   :  { %8507 = vmatmul.mubr.msk.bf16.gmra.mrb[80].mxu0 %vm218_vm2, %v10167_v29  ;;  %8695 = vmatmul.mubr.msk.bf16.gmra.mrb[104].mxu1 %vm218_vm2, %v10167_v29 }
 0x2d9   :  { %8520 = vmatprep.mubr.msk.bf16.mxu0 %vm5691_vm4, %v10343_v14  ;;  %8523 = vmatprep.mubr.msk.bf16.mxu1 %vm5691_vm4, %v10343_v14 }
 0x2f3   :  { %v3182_v5 = vpop.f32.mrb[96].mxu0  ;;  %v3511_v7 = vpop.f32.mrb[0].mxu1 }
 0x2f4   :  { %v10360_v8 = vadd.f32 %v3182_v5, %v10176_v47  ;;  %v4565_v17 = vadd.f32 %v10353_v58, %v3511_v7  ;;  %v8674_v18 = vpop.f32.mrb[97].mxu0  ;;  %v3513_v20 = vpop.f32.mrb[1].mxu1 }
 0x2f5   :  { %v4566_v21 = vadd.f32 %v10353_v58, %v3513_v20  ;;  %v3185_v26 = vpop.f32.mrb[98].mxu0  ;;  %v3515_v28 = vpop.f32.mrb[2].mxu1 }
 0x2f6   :  { %v10365_v41 = vadd.f32 %v3185_v26, %v10179_v54  ;;  %v4594_v55 = vadd.f32 %v10357_v3, %v3515_v28  ;;  %v8675_v61 = vpop.f32.mrb[99].mxu0  ;;  %v3517_v1 = vpop.f32.mrb[3].mxu1  ;;  %v4739_v9 = vmax.f32 %v4565_v17, 0.0 }
 0x2f7   :  { %v4595_v2 = vadd.f32 %v10357_v3, %v3517_v1  ;;  %v4740_v11 = vmax.f32 %v4566_v21, 0.0 }
 0x2f8   :  { %v4768_v27 = vmax.f32 %v4594_v55, 0.0 }
 0x2f9   :  { %v4769_v13 = vmax.f32 %v4595_v2, 0.0 }
 0x2fa   :  { %v10369_v15 = vpack.c.bf16 %v4768_v27, %v4739_v9 }
 0x2fb   :  { %v10373_v10 = vpack.c.bf16 %v4769_v13, %v4740_v11  ;;  %v3190_v22 = vpop.f32.mrb[100].mxu0  ;;  %v3521_v23 = vpop.f32.mrb[4].mxu1 }
 0x2fc   :  { %v10376_v33 = vadd.f32 %v3190_v22, %v10192_v43  ;;  %v4623_v12 = vadd.f32 %v10355_v60, %v3521_v23  ;;  %v8678_v31 = vpop.f32.mrb[101].mxu0  ;;  %v3523_v42 = vpop.f32.mrb[5].mxu1 }
 0x2fd   :  { %v4624_v19 = vadd.f32 %v10355_v60, %v3523_v42  ;;  %v3193_v34 = vpop.f32.mrb[102].mxu0  ;;  %v3525_v25 = vpop.f32.mrb[6].mxu1  ;;  %5764 = vmatprep.subr.bf16.mxu1 %v10373_v10 }
 0x2fe   :  { %v10382_v35 = vadd.f32 %v3193_v34, %v10195_v63  ;;  %v4652_v37 = vadd.f32 %v10371_v16, %v3525_v25  ;;  %v8679_v44 = vpop.f32.mrb[103].mxu0  ;;  %v3527_v46 = vpop.f32.mrb[7].mxu1  ;;  %5765 = vmatpush1.bf16.msra.mxu1 %v10369_v15  ;;  %v4797_v24 = vmax.f32 %v4623_v12, 0.0 }
 0x2ff   :  { %v4653_v52 = vadd.f32 %v10371_v16, %v3527_v46  ;;  %v4798_v32 = vmax.f32 %v4624_v19, 0.0 }
 0x300   :  { %v4826_v29 = vmax.f32 %v4652_v37, 0.0 }
 0x301   :  { %v4827_v47 = vmax.f32 %v4653_v52, 0.0 }
 0x302   :  { %v10391_v54 = vpack.c.bf16 %v4826_v29, %v4797_v24 }
 0x303   :  { %v10393_v56 = vpack.c.bf16 %v4827_v47, %v4798_v32  ;;  %v3198_v40 = vpop.f32.mrb[104].mxu0  ;;  %v3531_v43 = vpop.f32.mrb[8].mxu1 }
 0x304   :  { %v10396_v45 = vadd.f32 %v3198_v40, %v10204_v38  ;;  %v4681_v62 = vadd.f32 %v10387_v49, %v3531_v43  ;;  %v8682_v63 = vpop.f32.mrb[105].mxu0  ;;  %v3533_v0 = vpop.f32.mrb[9].mxu1 }
 0x305   :  { %v4682_v36 = vadd.f32 %v10387_v49, %v3533_v0  ;;  %v3201_v57 = vpop.f32.mrb[106].mxu0  ;;  %v3535_v59 = vpop.f32.mrb[10].mxu1  ;;  %5766 = vmatprep.subr.bf16.mxu1 %v10393_v56 }
 0x306   :  { %v10402_v53 = vadd.f32 %v3201_v57, %v10207_v51  ;;  %v4710_v48 = vadd.f32 %v10389_v39, %v3535_v59  ;;  %v8683_v50 = vpop.f32.mrb[107].mxu0  ;;  %v3537_v5 = vpop.f32.mrb[11].mxu1  ;;  %5767 = vmatpush1.bf16.msra.mxu1 %v10391_v54  ;;  %v4855_v7 = vmax.f32 %v4681_v62, 0.0 }
 0x307   :  { %v4711_v38 = vadd.f32 %v10389_v39, %v3537_v5  ;;  %v4856_v18 = vmax.f32 %v4682_v36, 0.0 }
 0x308   :  { %v4884_v17 = vmax.f32 %v4710_v48, 0.0 }
 0x309   :  { %v4885_v20 = vmax.f32 %v4711_v38, 0.0 }
 0x30a   :  { %v10407_v21 = vpack.c.bf16 %v4884_v17, %v4855_v7 }
 0x30b   :  { %v10409_v26 = vpack.c.bf16 %v4885_v20, %v4856_v18  ;;  %v3448_v28 = vpop.f32.mrb[0].mxu0  ;;  %v3637_v55 = vpop.f32.mrb[12].mxu1 }
 0x30c   :  { %v4563_v51 = vadd.f32 %v10353_v58, %v3448_v28  ;;  %v4569_v61 = vadd.f32 %v10353_v58, %v3637_v55  ;;  %v3450_v1 = vpop.f32.mrb[1].mxu0  ;;  %v3639_v2 = vpop.f32.mrb[13].mxu1 }
 0x30d   :  { %v4564_v9 = vadd.f32 %v10353_v58, %v3450_v1  ;;  %v4570_v27 = vadd.f32 %v10353_v58, %v3639_v2  ;;  %v3452_v11 = vpop.f32.mrb[2].mxu0  ;;  %v3641_v13 = vpop.f32.mrb[14].mxu1  ;;  %5768 = vmatprep.subr.bf16.mxu1 %v10409_v26 }
 0x30e   :  { %v4592_v22 = vadd.f32 %v10357_v3, %v3452_v11  ;;  %v4598_v23 = vadd.f32 %v10357_v3, %v3641_v13  ;;  %v3454_v12 = vpop.f32.mrb[3].mxu0  ;;  %v3643_v31 = vpop.f32.mrb[15].mxu1  ;;  %5769 = vmatpush1.bf16.msra.mxu1 %v10407_v21  ;;  %v4737_v34 = vmax.f32 %v4563_v51, 0.0  ;;  %v4743_v25 = vmax.f32 %v4569_v61, 0.0 }
 0x30f   :  { %v4593_v42 = vadd.f32 %v10357_v3, %v3454_v12  ;;  %v4599_v19 = vadd.f32 %v10357_v3, %v3643_v31  ;;  %v4738_v46 = vmax.f32 %v4564_v9, 0.0  ;;  %v4744_v52 = vmax.f32 %v4570_v27, 0.0 }
 0x310   :  { %v4766_v37 = vmax.f32 %v4592_v22, 0.0  ;;  %v4772_v44 = vmax.f32 %v4598_v23, 0.0 }
 0x311   :  { %v4767_v24 = vmax.f32 %v4593_v42, 0.0  ;;  %v4773_v29 = vmax.f32 %v4599_v19, 0.0 }
 0x312   :  { %v4911_v32 = vpack.c.bf16 %v4766_v37, %v4737_v34  ;;  %v10421_v47 = vpack.c.bf16 %v4772_v44, %v4743_v25 }
 0x313   :  { %v10423_v40 = vpack.c.bf16 %v4767_v24, %v4738_v46  ;;  %v10425_v43 = vpack.c.bf16 %v4773_v29, %v4744_v52  ;;  %v3458_v62 = vpop.f32.mrb[4].mxu0  ;;  %v3647_v63 = vpop.f32.mrb[16].mxu1 }
 0x314   :  { %v4621_v0 = vadd.f32 %v10355_v60, %v3458_v62  ;;  %v4627_v36 = vadd.f32 %v10355_v60, %v3647_v63  ;;  %v3460_v57 = vpop.f32.mrb[5].mxu0  ;;  %v3649_v59 = vpop.f32.mrb[17].mxu1 }
 0x315   :  { %v4622_v48 = vadd.f32 %v10355_v60, %v3460_v57  ;;  %v4628_v50 = vadd.f32 %v10355_v60, %v3649_v59  ;;  %v3462_v5 = vpop.f32.mrb[6].mxu0  ;;  %v3651_v38 = vpop.f32.mrb[18].mxu1  ;;  %5701 = vmatprep.subr.bf16.mxu0 %v10423_v40 }
 0x316   :  { %v4650_v7 = vadd.f32 %v10371_v16, %v3462_v5  ;;  %v4656_v17 = vadd.f32 %v10371_v16, %v3651_v38  ;;  %v3464_v18 = vpop.f32.mrb[7].mxu0  ;;  %v3653_v20 = vpop.f32.mrb[19].mxu1  ;;  %5702 = vmatpush1.bf16.msra.mxu0 %v4911_v32  ;;  %v4795_v51 = vmax.f32 %v4621_v0, 0.0  ;;  %v4801_v61 = vmax.f32 %v4627_v36, 0.0 }
 0x317   :  { %v4651_v28 = vadd.f32 %v10371_v16, %v3464_v18  ;;  %v4657_v55 = vadd.f32 %v10371_v16, %v3653_v20  ;;  %v4796_v9 = vmax.f32 %v4622_v48, 0.0  ;;  %v4802_v27 = vmax.f32 %v4628_v50, 0.0 }
 0x318   :  { %v4824_v1 = vmax.f32 %v4650_v7, 0.0  ;;  %v4830_v2 = vmax.f32 %v4656_v17, 0.0 }
 0x319   :  { %v4825_v11 = vmax.f32 %v4651_v28, 0.0  ;;  %v4831_v13 = vmax.f32 %v4657_v55, 0.0 }
 0x31a   :  { %v4940_v22 = vpack.c.bf16 %v4824_v1, %v4795_v51  ;;  %v10436_v23 = vpack.c.bf16 %v4830_v2, %v4801_v61 }
 0x31b   :  { %v10438_v12 = vpack.c.bf16 %v4825_v11, %v4796_v9  ;;  %v10440_v31 = vpack.c.bf16 %v4831_v13, %v4802_v27  ;;  %v3468_v42 = vpop.f32.mrb[8].mxu0  ;;  %v3657_v19 = vpop.f32.mrb[20].mxu1 }
 0x31c   :  { %v4679_v34 = vadd.f32 %v10387_v49, %v3468_v42  ;;  %v4685_v25 = vadd.f32 %v10387_v49, %v3657_v19  ;;  %v3470_v37 = vpop.f32.mrb[9].mxu0  ;;  %v3659_v44 = vpop.f32.mrb[21].mxu1 }
 0x31d   :  { %v4680_v46 = vadd.f32 %v10387_v49, %v3470_v37  ;;  %v4686_v52 = vadd.f32 %v10387_v49, %v3659_v44  ;;  %v3472_v24 = vpop.f32.mrb[10].mxu0  ;;  %v3661_v29 = vpop.f32.mrb[22].mxu1  ;;  %5703 = vmatprep.subr.bf16.mxu0 %v10438_v12 }
 0x31e   :  { %v4708_v32 = vadd.f32 %v10389_v39, %v3472_v24  ;;  %v4714_v62 = vadd.f32 %v10389_v39, %v3661_v29  ;;  %v3474_v63 = vpop.f32.mrb[11].mxu0  ;;  %v3663_v0 = vpop.f32.mrb[23].mxu1  ;;  %5704 = vmatpush1.bf16.msra.mxu0 %v4940_v22  ;;  %v4853_v59 = vmax.f32 %v4679_v34, 0.0  ;;  %v4859_v48 = vmax.f32 %v4685_v25, 0.0 }
 0x31f   :  { %v4709_v36 = vadd.f32 %v10389_v39, %v3474_v63  ;;  %v4715_v57 = vadd.f32 %v10389_v39, %v3663_v0  ;;  %v4854_v38 = vmax.f32 %v4680_v46, 0.0  ;;  %v4860_v7 = vmax.f32 %v4686_v52, 0.0 }
 0x320   :  { %v4882_v50 = vmax.f32 %v4708_v32, 0.0  ;;  %v4888_v5 = vmax.f32 %v4714_v62, 0.0 }
 0x321   :  { %v4883_v17 = vmax.f32 %v4709_v36, 0.0  ;;  %v4889_v18 = vmax.f32 %v4715_v57, 0.0 }
 0x322   :  { %v4969_v20 = vpack.c.bf16 %v4882_v50, %v4853_v59  ;;  %v10451_v28 = vpack.c.bf16 %v4888_v5, %v4859_v48 }
 0x323   :  { %v10453_v55 = vpack.c.bf16 %v4883_v17, %v4854_v38  ;;  %v10455_v51 = vpack.c.bf16 %v4889_v18, %v4860_v7  ;;  %v3574_v61 = vpop.f32.mrb[12].mxu0  ;;  %v3763_v1 = vpop.f32.mrb[24].mxu1 }
 0x324   :  { %v4567_v2 = vadd.f32 %v10353_v58, %v3574_v61  ;;  %v4573_v9 = vadd.f32 %v10353_v58, %v3763_v1  ;;  %v3576_v27 = vpop.f32.mrb[13].mxu0  ;;  %v3765_v11 = vpop.f32.mrb[25].mxu1 }
 0x325   :  { %v4568_v13 = vadd.f32 %v10353_v58, %v3576_v27  ;;  %v4574_v22 = vadd.f32 %v10353_v58, %v3765_v11  ;;  %v3578_v42 = vpop.f32.mrb[14].mxu0  ;;  %v3767_v19 = vpop.f32.mrb[26].mxu1  ;;  %5705 = vmatprep.subr.bf16.mxu0 %v10453_v55 }
 0x326   :  { %v4596_v34 = vadd.f32 %v10357_v3, %v3578_v42  ;;  %v4602_v25 = vadd.f32 %v10357_v3, %v3767_v19  ;;  %v3580_v37 = vpop.f32.mrb[15].mxu0  ;;  %v3769_v44 = vpop.f32.mrb[27].mxu1  ;;  %5706 = vmatpush1.bf16.msra.mxu0 %v4969_v20  ;;  %v4741_v24 = vmax.f32 %v4567_v2, 0.0  ;;  %v4747_v29 = vmax.f32 %v4573_v9, 0.0 }
 0x327   :  { %v4597_v46 = vadd.f32 %v10357_v3, %v3580_v37  ;;  %v4603_v52 = vadd.f32 %v10357_v3, %v3769_v44  ;;  %5707 = vmatprep.subr.bf16.mxu0 %v10369_v15  ;;  %v4742_v63 = vmax.f32 %v4568_v13, 0.0  ;;  %v4748_v0 = vmax.f32 %v4574_v22, 0.0 }
 0x328   :  { %v4770_v32 = vmax.f32 %v4596_v34, 0.0  ;;  %v4776_v62 = vmax.f32 %v4602_v25, 0.0 }
 0x329   :  { %v4771_v36 = vmax.f32 %v4597_v46, 0.0  ;;  %v4777_v57 = vmax.f32 %v4603_v52, 0.0 }
 0x32a   :  { %v10467_v59 = vpack.c.bf16 %v4770_v32, %v4741_v24  ;;  %v10469_v48 = vpack.c.bf16 %v4776_v62, %v4747_v29  ;;  %5708 = vmatpush1.bf16.msra.mxu0 %v10423_v40 }
 0x32b   :  { %v10472_v50 = vpack.c.bf16 %v4771_v36, %v4742_v63  ;;  %v10474_v5 = vpack.c.bf16 %v4777_v57, %v4748_v0  ;;  %v3584_v38 = vpop.f32.mrb[16].mxu0  ;;  %v3773_v7 = vpop.f32.mrb[28].mxu1  ;;  %5709 = vmatprep.subr.bf16.mxu0 %v10391_v54 }
 0x32c   :  { %v4625_v17 = vadd.f32 %v10355_v60, %v3584_v38  ;;  %v4631_v18 = vadd.f32 %v10355_v60, %v3773_v7  ;;  %v3586_v20 = vpop.f32.mrb[17].mxu0  ;;  %v3775_v61 = vpop.f32.mrb[29].mxu1  ;;  %5770 = vmatprep.subr.bf16.mxu1 %v10467_v59 }
 0x32d   :  { %v4626_v1 = vadd.f32 %v10355_v60, %v3586_v20  ;;  %v4632_v40 = vadd.f32 %v10355_v60, %v3775_v61  ;;  %v3588_v2 = vpop.f32.mrb[18].mxu0  ;;  %v3777_v9 = vpop.f32.mrb[30].mxu1  ;;  %5771 = vmatpush1.bf16.msra.mxu1 %v10373_v10 }
 0x32e   :  { %v4654_v27 = vadd.f32 %v10371_v16, %v3588_v2  ;;  %v4660_v11 = vadd.f32 %v10371_v16, %v3777_v9  ;;  %v3590_v13 = vpop.f32.mrb[19].mxu0  ;;  %v3779_v22 = vpop.f32.mrb[31].mxu1  ;;  %5710 = vmatpush1.bf16.msra.mxu0 %v10438_v12  ;;  %v4799_v34 = vmax.f32 %v4625_v17, 0.0  ;;  %v4805_v25 = vmax.f32 %v4631_v18, 0.0 }
 0x32f   :  { %v4655_v42 = vadd.f32 %v10371_v16, %v3590_v13  ;;  %v4661_v19 = vadd.f32 %v10371_v16, %v3779_v22  ;;  %5711 = vmatprep.subr.bf16.mxu0 %v10407_v21  ;;  %v4800_v46 = vmax.f32 %v4626_v1, 0.0  ;;  %v4806_v52 = vmax.f32 %v4632_v40, 0.0 }
 0x330   :  { %v4828_v37 = vmax.f32 %v4654_v27, 0.0  ;;  %v4834_v44 = vmax.f32 %v4660_v11, 0.0 }
 0x331   :  { %v4829_v24 = vmax.f32 %v4655_v42, 0.0  ;;  %v4835_v29 = vmax.f32 %v4661_v19, 0.0 }
 0x332   :  { %v10489_v32 = vpack.c.bf16 %v4828_v37, %v4799_v34  ;;  %v10491_v62 = vpack.c.bf16 %v4834_v44, %v4805_v25  ;;  %5712 = vmatpush1.bf16.msra.mxu0 %v10453_v55 }
 0x333   :  { %v10494_v12 = vpack.c.bf16 %v4829_v24, %v4800_v46  ;;  %v10496_v63 = vpack.c.bf16 %v4835_v29, %v4806_v52  ;;  %v3594_v0 = vpop.f32.mrb[20].mxu0  ;;  %v3783_v36 = vpop.f32.mrb[32].mxu1  ;;  %5713 = vmatprep.subr.bf16.mxu0 %v10373_v10 }
 0x334   :  { %v4683_v57 = vadd.f32 %v10387_v49, %v3594_v0  ;;  %v4689_v38 = vadd.f32 %v10387_v49, %v3783_v36  ;;  %v3596_v7 = vpop.f32.mrb[21].mxu0  ;;  %v3785_v17 = vpop.f32.mrb[33].mxu1  ;;  %5772 = vmatprep.subr.bf16.mxu1 %v10489_v32 }
 0x335   :  { %v4684_v18 = vadd.f32 %v10387_v49, %v3596_v7  ;;  %v4690_v55 = vadd.f32 %v10387_v49, %v3785_v17  ;;  %v3598_v20 = vpop.f32.mrb[22].mxu0  ;;  %v3787_v61 = vpop.f32.mrb[34].mxu1  ;;  %5773 = vmatpush1.bf16.msra.mxu1 %v10393_v56 }
 0x336   :  { %v4712_v1 = vadd.f32 %v10389_v39, %v3598_v20  ;;  %v4718_v40 = vadd.f32 %v10389_v39, %v3787_v61  ;;  %v3600_v2 = vpop.f32.mrb[23].mxu0  ;;  %v3789_v9 = vpop.f32.mrb[35].mxu1  ;;  %5714 = vmatpush1.bf16.msra.mxu0 %v10369_v15  ;;  %v4857_v13 = vmax.f32 %v4683_v57, 0.0  ;;  %v4863_v22 = vmax.f32 %v4689_v38, 0.0 }
 0x337   :  { %v4713_v27 = vadd.f32 %v10389_v39, %v3600_v2  ;;  %v4719_v11 = vadd.f32 %v10389_v39, %v3789_v9  ;;  %5715 = vmatprep.subr.bf16.mxu0 %v10393_v56  ;;  %v4858_v34 = vmax.f32 %v4684_v18, 0.0  ;;  %v4864_v25 = vmax.f32 %v4690_v55, 0.0 }
 0x338   :  { %v4886_v42 = vmax.f32 %v4712_v1, 0.0  ;;  %v4892_v19 = vmax.f32 %v4718_v40, 0.0 }
 0x339   :  { %v4887_v37 = vmax.f32 %v4713_v27, 0.0  ;;  %v4893_v44 = vmax.f32 %v4719_v11, 0.0 }
 0x33a   :  { %v10511_v46 = vpack.c.bf16 %v4886_v42, %v4857_v13  ;;  %v10513_v52 = vpack.c.bf16 %v4892_v19, %v4863_v22  ;;  %5716 = vmatpush1.bf16.msra.mxu0 %v10391_v54 }
 0x33b   :  { %v10516_v15 = vpack.c.bf16 %v4887_v37, %v4858_v34  ;;  %v10518_v24 = vpack.c.bf16 %v4893_v44, %v4864_v25  ;;  %v3700_v29 = vpop.f32.mrb[24].mxu0  ;;  %v3889_v0 = vpop.f32.mrb[36].mxu1  ;;  %5717 = vmatprep.subr.bf16.mxu0 %v10409_v26 }
 0x33c   :  { %v4571_v36 = vadd.f32 %v10353_v58, %v3700_v29  ;;  %v4577_v57 = vadd.f32 %v10353_v58, %v3889_v0  ;;  %v3702_v38 = vpop.f32.mrb[25].mxu0  ;;  %v3891_v7 = vpop.f32.mrb[37].mxu1  ;;  %5774 = vmatprep.subr.bf16.mxu1 %v10511_v46 }
 0x33d   :  { %v4572_v17 = vadd.f32 %v10353_v58, %v3702_v38  ;;  %v4578_v54 = vadd.f32 %v10353_v58, %v3891_v7  ;;  %v3704_v18 = vpop.f32.mrb[26].mxu0  ;;  %v3893_v55 = vpop.f32.mrb[38].mxu1  ;;  %5775 = vmatpush1.bf16.msra.mxu1 %v10409_v26 }
 0x33e   :  { %v4600_v20 = vadd.f32 %v10357_v3, %v3704_v18  ;;  %v4606_v61 = vadd.f32 %v10357_v3, %v3893_v55  ;;  %v3706_v1 = vpop.f32.mrb[27].mxu0  ;;  %v3895_v40 = vpop.f32.mrb[39].mxu1  ;;  %5718 = vmatpush1.bf16.msra.mxu0 %v10407_v21  ;;  %5776 = vmatprep.subr.bf16.mxu1 %v10472_v50  ;;  %v4745_v27 = vmax.f32 %v4571_v36, 0.0  ;;  %v4751_v11 = vmax.f32 %v4577_v57, 0.0 }
 0x33f   :  { %v4601_v2 = vadd.f32 %v10357_v3, %v3706_v1  ;;  %v4607_v9 = vadd.f32 %v10357_v3, %v3895_v40  ;;  %5719 = vmatprep.subr.bf16.mxu0 %v10467_v59  ;;  %v4746_v42 = vmax.f32 %v4572_v17, 0.0  ;;  %v4752_v19 = vmax.f32 %v4578_v54, 0.0 }
 0x340   :  { %v4774_v13 = vmax.f32 %v4600_v20, 0.0  ;;  %v4780_v22 = vmax.f32 %v4606_v61, 0.0 }
 0x341   :  { %v4775_v34 = vmax.f32 %v4601_v2, 0.0  ;;  %v4781_v25 = vmax.f32 %v4607_v9, 0.0  ;;  %5777 = vmatpush1.bf16.msra.mxu1 %v10467_v59 }
 0x342   :  { %v10535_v37 = vpack.c.bf16 %v4774_v13, %v4745_v27  ;;  %v10537_v21 = vpack.c.bf16 %v4780_v22, %v4751_v11  ;;  %5720 = vmatpush1.bf16.msra.mxu0 %v10373_v10  ;;  %5778 = vmatprep.subr.bf16.mxu1 %v10494_v12 }
 0x343   :  { %v10541_v44 = vpack.c.bf16 %v4775_v34, %v4746_v42  ;;  %v10543_v29 = vpack.c.bf16 %v4781_v25, %v4752_v19  ;;  %v3710_v0 = vpop.f32.mrb[28].mxu0  ;;  %v3899_v36 = vpop.f32.mrb[40].mxu1  ;;  %5721 = vmatprep.subr.bf16.mxu0 %v10489_v32 }
 0x344   :  { %v4629_v57 = vadd.f32 %v10355_v60, %v3710_v0  ;;  %v4635_v38 = vadd.f32 %v10355_v60, %v3899_v36  ;;  %v3712_v7 = vpop.f32.mrb[29].mxu0  ;;  %v3901_v17 = vpop.f32.mrb[41].mxu1 }
 0x345   :  { %v4630_v54 = vadd.f32 %v10355_v60, %v3712_v7  ;;  %v4636_v10 = vadd.f32 %v10355_v60, %v3901_v17  ;;  %v3714_v18 = vpop.f32.mrb[30].mxu0  ;;  %v3903_v55 = vpop.f32.mrb[42].mxu1  ;;  %5779 = vmatpush1.bf16.msra.mxu1 %v10489_v32 }
 0x346   :  { %v4658_v20 = vadd.f32 %v10371_v16, %v3714_v18  ;;  %v4664_v61 = vadd.f32 %v10371_v16, %v3903_v55  ;;  %v3716_v1 = vpop.f32.mrb[31].mxu0  ;;  %v3905_v40 = vpop.f32.mrb[43].mxu1  ;;  %5722 = vmatpush1.bf16.msra.mxu0 %v10393_v56  ;;  %5780 = vmatprep.subr.bf16.mxu1 %v10516_v15  ;;  %v4803_v27 = vmax.f32 %v4629_v57, 0.0  ;;  %v4809_v11 = vmax.f32 %v4635_v38, 0.0  ;;  %v10562_v56 = vld [vmem:[%s11982_s3] ss:$8 sps:$4 sm:$0xff]  }
 0x347   :  { %v4659_v2 = vadd.f32 %v10371_v16, %v3716_v1  ;;  %v4665_v9 = vadd.f32 %v10371_v16, %v3905_v40  ;;  %5723 = vmatprep.subr.bf16.mxu0 %v10511_v46  ;;  %v4804_v42 = vmax.f32 %v4630_v54, 0.0  ;;  %v4810_v19 = vmax.f32 %v4636_v10, 0.0  ;;  %v10578_v54 = vld [vmem:[%s11982_s3 + $0x14] ss:$8 sps:$4 sm:$0xff]  }
 0x348   :  { %v4832_v13 = vmax.f32 %v4658_v20, 0.0  ;;  %v4838_v22 = vmax.f32 %v4664_v61, 0.0 }
 0x349   :  { %v4833_v34 = vmax.f32 %v4659_v2, 0.0  ;;  %v4839_v25 = vmax.f32 %v4665_v9, 0.0  ;;  %5781 = vmatpush1.bf16.msra.mxu1 %v10511_v46 }
 0x34a   :  { %v10564_v0 = vpack.c.bf16 %v4832_v13, %v4803_v27  ;;  %v10566_v36 = vpack.c.bf16 %v4838_v22, %v4809_v11  ;;  %5724 = vmatpush1.bf16.msra.mxu0 %v10409_v26  ;;  %5782 = vmatprep.subr.bf16.mxu1 %v10421_v47 }
 0x34b   :  { %v10570_v57 = vpack.c.bf16 %v4833_v34, %v4804_v42  ;;  %v10572_v38 = vpack.c.bf16 %v4839_v25, %v4810_v19  ;;  %v3720_v7 = vpop.f32.mrb[32].mxu0  ;;  %v3909_v17 = vpop.f32.mrb[44].mxu1  ;;  %5827 = vmatprep.subr.bf16.mxu0 %v10472_v50 }
 0x34c   :  { %v4687_v10 = vadd.f32 %v10387_v49, %v3720_v7  ;;  %v4693_v18 = vadd.f32 %v10387_v49, %v3909_v17  ;;  %v3722_v26 = vpop.f32.mrb[33].mxu0  ;;  %v3911_v55 = vpop.f32.mrb[45].mxu1 }
 0x34d   :  { %v4688_v20 = vadd.f32 %v10387_v49, %v3722_v26  ;;  %v4694_v61 = vadd.f32 %v10387_v49, %v3911_v55  ;;  %v3724_v1 = vpop.f32.mrb[34].mxu0  ;;  %v3913_v40 = vpop.f32.mrb[46].mxu1  ;;  %5734 = vmatmul.mubr.bf16.vlgmr.msra.gmra.mrb[108].mxu0 %v10562_v56  ;;  %5783 = vmatpush1.bf16.msra.mxu1 %v10472_v50 }
 0x34e   :  { %v4716_v2 = vadd.f32 %v10389_v39, %v3724_v1  ;;  %v4722_v9 = vadd.f32 %v10389_v39, %v3913_v40  ;;  %v3726_v27 = vpop.f32.mrb[35].mxu0  ;;  %v3915_v11 = vpop.f32.mrb[47].mxu1  ;;  %5784 = vmatprep.subr.bf16.mxu1 %v10436_v23  ;;  %5828 = vmatpush1.bf16.msra.mxu0 %v10467_v59  ;;  %v4861_v42 = vmax.f32 %v4687_v10, 0.0  ;;  %v4867_v19 = vmax.f32 %v4693_v18, 0.0  ;;  %v10599_v59 = vld [vmem:[%s11982_s3 + $0x10] ss:$8 sps:$4 sm:$0xff]  }
 0x34f   :  { %v4717_v13 = vadd.f32 %v10389_v39, %v3726_v27  ;;  %v4723_v22 = vadd.f32 %v10389_v39, %v3915_v11  ;;  %5829 = vmatprep.subr.bf16.mxu0 %v10494_v12  ;;  %8521 = vmatprep.mubr.msk.bf16.mxu0 %vm5691_vm4, %v10578_v54  ;;  %v4862_v7 = vmax.f32 %v4688_v20, 0.0  ;;  %v4868_v17 = vmax.f32 %v4694_v61, 0.0 }
 0x350   :  { %v4890_v34 = vmax.f32 %v4716_v2, 0.0  ;;  %v4896_v25 = vmax.f32 %v4722_v9, 0.0  ;;  %v10615_v2 = vld [vmem:[%s11982_s3 + $0x24] ss:$8 sps:$4 sm:$0xff]  }
 0x351   :  { %v4891_v26 = vmax.f32 %v4717_v13, 0.0  ;;  %v4897_v55 = vmax.f32 %v4723_v22, 0.0  ;;  %5785 = vmatpush1.bf16.msra.mxu1 %v10494_v12 }
 0x352   :  { %v10601_v1 = vpack.c.bf16 %v4890_v34, %v4861_v42  ;;  %v10603_v40 = vpack.c.bf16 %v4896_v25, %v4867_v19  ;;  %5786 = vmatprep.subr.bf16.mxu1 %v10451_v28  ;;  %5830 = vmatpush1.bf16.msra.mxu0 %v10489_v32 }
 0x353   :  { %v10607_v10 = vpack.c.bf16 %v4891_v26, %v4862_v7  ;;  %v10609_v18 = vpack.c.bf16 %v4897_v55, %v4868_v17  ;;  %v3826_v20 = vpop.f32.mrb[36].mxu0  ;;  %v4015_v61 = vpop.f32.mrb[48].mxu1  ;;  %5831 = vmatprep.subr.bf16.mxu0 %v10516_v15 }
 0x354   :  { %v4575_v9 = vadd.f32 %v10353_v58, %v3826_v20  ;;  %v4581_v27 = vadd.f32 %v10353_v58, %v4015_v61  ;;  %v3828_v11 = vpop.f32.mrb[37].mxu0  ;;  %v4017_v13 = vpop.f32.mrb[49].mxu1 }
 0x355   :  { %v4576_v32 = vadd.f32 %v10353_v58, %v3828_v11  ;;  %v4582_v22 = vadd.f32 %v10353_v58, %v4017_v13  ;;  %v3830_v42 = vpop.f32.mrb[38].mxu0  ;;  %v4019_v19 = vpop.f32.mrb[50].mxu1  ;;  %5744 = vmatmul.mubr.bf16.gmra.mrb[112].mxu0 %v10599_v59  ;;  %5787 = vmatpush1.bf16.msra.mxu1 %v10516_v15 }
 0x356   :  { %v4604_v34 = vadd.f32 %v10357_v3, %v3830_v42  ;;  %v4610_v25 = vadd.f32 %v10357_v3, %v4019_v19  ;;  %v3832_v7 = vpop.f32.mrb[39].mxu0  ;;  %v4021_v17 = vpop.f32.mrb[51].mxu1  ;;  %5832 = vmatpush1.bf16.msra.mxu0 %v10511_v46  ;;  %5890 = vmatprep.subr.bf16.mxu1 %v10425_v43  ;;  %v4749_v20 = vmax.f32 %v4575_v9, 0.0  ;;  %v4755_v61 = vmax.f32 %v4581_v27, 0.0 }
 0x357   :  { %v4605_v26 = vadd.f32 %v10357_v3, %v3832_v7  ;;  %v4611_v55 = vadd.f32 %v10357_v3, %v4021_v17  ;;  %5833 = vmatprep.subr.bf16.mxu0 %v10421_v47  ;;  %8522 = vmatprep.mubr.msk.bf16.mxu0 %vm5691_vm4, %v10615_v2  ;;  %v4750_v42 = vmax.f32 %v4576_v32, 0.0  ;;  %v4756_v19 = vmax.f32 %v4582_v22, 0.0  ;;  %v10637_v7 = vld [vmem:[%s11982_s3 + $0x20] ss:$8 sps:$4 sm:$0xff]  }
 0x358   :  { %v4778_v11 = vmax.f32 %v4604_v34, 0.0  ;;  %v4784_v13 = vmax.f32 %v4610_v25, 0.0  ;;  %5797 = vmatmul.mubr.bf16.vlgmr.msra.gmra.mrb[108].mxu1 %v10562_v56 }
 0x359   :  { %v4779_v46 = vmax.f32 %v4605_v26, 0.0  ;;  %v4785_v30 = vmax.f32 %v4611_v55, 0.0  ;;  %5891 = vmatpush1.bf16.msra.mxu1 %v10421_v47  ;;  %8524 = vmatprep.mubr.msk.bf16.mxu1 %vm5691_vm4, %v10578_v54 }
 0x35a   :  { %v10641_v9 = vpack.c.bf16 %v4778_v11, %v4749_v20  ;;  %v10643_v27 = vpack.c.bf16 %v4784_v13, %v4755_v61  ;;  %5834 = vmatpush1.bf16.msra.mxu0 %v10472_v50  ;;  %5892 = vmatprep.subr.bf16.mxu1 %v10440_v31 }
 0x35b   :  { %v10647_v32 = vpack.c.bf16 %v4779_v46, %v4750_v42  ;;  %v10649_v22 = vpack.c.bf16 %v4785_v30, %v4756_v19  ;;  %v3836_v34 = vpop.f32.mrb[40].mxu0  ;;  %v4025_v25 = vpop.f32.mrb[52].mxu1  ;;  %5835 = vmatprep.subr.bf16.mxu0 %v10436_v23 }
 0x35c   :  { %12010 = vst [vmem:[#allocation7_spill] sm:$0xff] %v10643_v27  ;;  %v4633_v17 = vadd.f32 %v10355_v60, %v3836_v34  ;;  %v4639_v26 = vadd.f32 %v10355_v60, %v4025_v25  ;;  %v3838_v55 = vpop.f32.mrb[41].mxu0  ;;  %v4027_v20 = vpop.f32.mrb[53].mxu1 }
 0x35d   :  { %12011 = vst [vmem:[#allocation8_spill] sm:$0xff] %v10649_v22  ;;  %v4634_v61 = vadd.f32 %v10355_v60, %v3838_v55  ;;  %v4640_v50 = vadd.f32 %v10355_v60, %v4027_v20  ;;  %v3840_v11 = vpop.f32.mrb[42].mxu0  ;;  %v4029_v13 = vpop.f32.mrb[54].mxu1  ;;  %5754 = vmatmul.mubr.bf16.gmra.mrb[116].mxu0 %v10637_v7  ;;  %5893 = vmatpush1.bf16.msra.mxu1 %v10436_v23 }
 0x35e   :  { %v4662_v30 = vadd.f32 %v10371_v16, %v3840_v11  ;;  %v4668_v42 = vadd.f32 %v10371_v16, %v4029_v13  ;;  %v3842_v19 = vpop.f32.mrb[43].mxu0  ;;  %v4031_v46 = vpop.f32.mrb[55].mxu1  ;;  %5836 = vmatpush1.bf16.msra.mxu0 %v10494_v12  ;;  %5894 = vmatprep.subr.bf16.mxu1 %v10455_v51  ;;  %v4807_v55 = vmax.f32 %v4633_v17, 0.0  ;;  %v4813_v20 = vmax.f32 %v4639_v26, 0.0 }
 0x35f   :  { %v4663_v34 = vadd.f32 %v10371_v16, %v3842_v19  ;;  %v4669_v25 = vadd.f32 %v10371_v16, %v4031_v46  ;;  %5837 = vmatprep.subr.bf16.mxu0 %v10451_v28  ;;  %8526 = vmatprep.mubr.msk.bf16.mxu0 %vm5691_vm4, %v10343_v14  ;;  %v4808_v13 = vmax.f32 %v4634_v61, 0.0  ;;  %v4814_v4 = vmax.f32 %v4640_v50, 0.0 }
 0x360   :  { %v4836_v11 = vmax.f32 %v4662_v30, 0.0  ;;  %v4842_v6 = vmax.f32 %v4668_v42, 0.0  ;;  %5807 = vmatmul.mubr.bf16.gmra.mrb[112].mxu1 %v10599_v59 }
 0x361   :  { %v4837_v12 = vmax.f32 %v4663_v34, 0.0  ;;  %v4843_v22 = vmax.f32 %v4669_v25, 0.0  ;;  %5895 = vmatpush1.bf16.msra.mxu1 %v10451_v28  ;;  %8525 = vmatprep.mubr.msk.bf16.mxu1 %vm5691_vm4, %v10615_v2 }
 0x362   :  { %v10671_v19 = vpack.c.bf16 %v4836_v11, %v4807_v55  ;;  %v10673_v46 = vpack.c.bf16 %v4842_v6, %v4813_v20  ;;  %5838 = vmatpush1.bf16.msra.mxu0 %v10516_v15  ;;  %5896 = vmatprep.subr.bf16.mxu1 %v10535_v37 }
 0x363   :  { %v10677_v17 = vpack.c.bf16 %v4837_v12, %v4808_v13  ;;  %v10679_v26 = vpack.c.bf16 %v4843_v22, %v4814_v4  ;;  %v3846_v61 = vpop.f32.mrb[44].mxu0  ;;  %v4035_v50 = vpop.f32.mrb[56].mxu1  ;;  %5839 = vmatprep.subr.bf16.mxu0 %v10425_v43 }
 0x364   :  { %12012 = vst [vmem:[#allocation9_spill] sm:$0xff] %v10673_v46  ;;  %v4691_v30 = vadd.f32 %v10387_v49, %v3846_v61  ;;  %v4697_v42 = vadd.f32 %v10387_v49, %v4035_v50  ;;  %v3848_v34 = vpop.f32.mrb[45].mxu0  ;;  %v4037_v25 = vpop.f32.mrb[57].mxu1 }
 0x365   :  { %12013 = vst [vmem:[#allocation10_spill] sm:$0xff] %v10679_v26  ;;  %v4692_v6 = vadd.f32 %v10387_v49, %v3848_v34  ;;  %v4698_v15 = vadd.f32 %v10387_v49, %v4037_v25  ;;  %v3850_v55 = vpop.f32.mrb[46].mxu0  ;;  %v4039_v20 = vpop.f32.mrb[58].mxu1  ;;  %5897 = vmatpush1.bf16.msra.mxu1 %v10425_v43 }
 0x366   :  { %v4720_v4 = vadd.f32 %v10389_v39, %v3850_v55  ;;  %v4726_v22 = vadd.f32 %v10389_v39, %v4039_v20  ;;  %v3852_v11 = vpop.f32.mrb[47].mxu0  ;;  %v4041_v13 = vpop.f32.mrb[59].mxu1  ;;  %5840 = vmatpush1.bf16.msra.mxu0 %v10421_v47  ;;  %5898 = vmatprep.subr.bf16.mxu1 %v10564_v0  ;;  %v4865_v50 = vmax.f32 %v4691_v30, 0.0  ;;  %v4871_v34 = vmax.f32 %v4697_v42, 0.0 }
 0x367   :  { %v4721_v12 = vadd.f32 %v10389_v39, %v3852_v11  ;;  %v4727_v61 = vadd.f32 %v10389_v39, %v4041_v13  ;;  %5841 = vmatprep.subr.bf16.mxu0 %v10440_v31  ;;  %v4866_v55 = vmax.f32 %v4692_v6, 0.0  ;;  %v4872_v20 = vmax.f32 %v4698_v15, 0.0 }
 0x368   :  { %v4894_v25 = vmax.f32 %v4720_v4, 0.0  ;;  %v4900_v26 = vmax.f32 %v4726_v22, 0.0  ;;  %5817 = vmatmul.mubr.bf16.gmra.mrb[116].mxu1 %v10637_v7 }
 0x369   :  { %v4895_v46 = vmax.f32 %v4721_v12, 0.0  ;;  %v4901_v27 = vmax.f32 %v4727_v61, 0.0  ;;  %5899 = vmatpush1.bf16.msra.mxu1 %v10440_v31  ;;  %8529 = vmatprep.mubr.msk.bf16.mxu1 %vm5691_vm4, %v10343_v14 }
 0x36a   :  { %v10698_v47 = vpack.c.bf16 %v4894_v25, %v4865_v50  ;;  %v10700_v11 = vpack.c.bf16 %v4900_v26, %v4871_v34  ;;  %5842 = vmatpush1.bf16.msra.mxu0 %v10436_v23  ;;  %5900 = vmatprep.subr.bf16.mxu1 %v10601_v1 }
 0x36b   :  { %v10704_v30 = vpack.c.bf16 %v4895_v46, %v4866_v55  ;;  %v10706_v42 = vpack.c.bf16 %v4901_v27, %v4872_v20  ;;  %v3952_v6 = vpop.f32.mrb[48].mxu0  ;;  %v4141_v15 = vpop.f32.mrb[60].mxu1  ;;  %5843 = vmatprep.subr.bf16.mxu0 %v10455_v51 }
 0x36c   :  { %12014 = vst [vmem:[#allocation11_spill] sm:$0xff] %v10700_v11  ;;  %v4579_v4 = vadd.f32 %v10353_v58, %v3952_v6  ;;  %v4585_v14 = vadd.f32 %v10353_v58, %v4141_v15  ;;  %v3954_v22 = vpop.f32.mrb[49].mxu0  ;;  %v4143_v13 = vpop.f32.mrb[61].mxu1 }
 0x36d   :  { %12015 = vst [vmem:[#allocation12_spill] sm:$0xff] %v10706_v42  ;;  %v4580_v26 = vadd.f32 %v10353_v58, %v3954_v22  ;;  %v4586_v23 = vadd.f32 %v10353_v58, %v4143_v13  ;;  %v3956_v12 = vpop.f32.mrb[50].mxu0  ;;  %v4145_v61 = vpop.f32.mrb[62].mxu1  ;;  %5901 = vmatpush1.bf16.msra.mxu1 %v10455_v51 }
 0x36e   :  { %v4608_v27 = vadd.f32 %v10357_v3, %v3956_v12  ;;  %v4614_v46 = vadd.f32 %v10357_v3, %v4145_v61  ;;  %v3958_v50 = vpop.f32.mrb[51].mxu0  ;;  %v4147_v34 = vpop.f32.mrb[63].mxu1  ;;  %5844 = vmatpush1.bf16.msra.mxu0 %v10451_v28  ;;  %5902 = vmatprep.subr.bf16.mxu1 %v10541_v44  ;;  %v4753_v20 = vmax.f32 %v4579_v4, 0.0  ;;  %v4759_v6 = vmax.f32 %v4585_v14, 0.0 }
 0x36f   :  { %v4609_v25 = vadd.f32 %v10357_v3, %v3958_v50  ;;  %v4615_v55 = vadd.f32 %v10357_v3, %v4147_v34  ;;  %5845 = vmatprep.subr.bf16.mxu0 %v10535_v37  ;;  %v4754_v13 = vmax.f32 %v4580_v26, 0.0  ;;  %v4760_v12 = vmax.f32 %v4586_v23, 0.0 }
 0x370   :  { %v4782_v15 = vmax.f32 %v4608_v27, 0.0  ;;  %v4788_v22 = vmax.f32 %v4614_v46, 0.0 }
 0x371   :  { %v4783_v42 = vmax.f32 %v4609_v25, 0.0  ;;  %v4789_v61 = vmax.f32 %v4615_v55, 0.0  ;;  %5903 = vmatpush1.bf16.msra.mxu1 %v10535_v37 }
 0x372   :  { %v10722_v11 = vpack.c.bf16 %v4782_v15, %v4753_v20  ;;  %v10724_v28 = vpack.c.bf16 %v4788_v22, %v4759_v6  ;;  %5846 = vmatpush1.bf16.msra.mxu0 %v10425_v43  ;;  %5904 = vmatprep.subr.bf16.mxu1 %v10570_v57 }
 0x373   :  { %v10728_v50 = vpack.c.bf16 %v4783_v42, %v4754_v13  ;;  %v10730_v4 = vpack.c.bf16 %v4789_v61, %v4760_v12  ;;  %v3962_v14 = vpop.f32.mrb[52].mxu0  ;;  %v4151_v27 = vpop.f32.mrb[64].mxu1  ;;  %5847 = vmatprep.subr.bf16.mxu0 %v10564_v0 }
 0x374   :  { %12016 = vst [vmem:[#allocation13_spill] sm:$0xff] %v10724_v28  ;;  %v4637_v26 = vadd.f32 %v10355_v60, %v3962_v14  ;;  %v4643_v23 = vadd.f32 %v10355_v60, %v4151_v27  ;;  %v3964_v46 = vpop.f32.mrb[53].mxu0  ;;  %v4153_v34 = vpop.f32.mrb[65].mxu1 }
 0x375   :  { %12017 = vst [vmem:[#allocation14_spill] sm:$0xff] %v10730_v4  ;;  %v4638_v25 = vadd.f32 %v10355_v60, %v3964_v46  ;;  %v4644_v43 = vadd.f32 %v10355_v60, %v4153_v34  ;;  %v3966_v55 = vpop.f32.mrb[54].mxu0  ;;  %v4155_v20 = vpop.f32.mrb[66].mxu1  ;;  %5905 = vmatpush1.bf16.msra.mxu1 %v10564_v0 }
 0x376   :  { %v4666_v42 = vadd.f32 %v10371_v16, %v3966_v55  ;;  %v4672_v6 = vadd.f32 %v10371_v16, %v4155_v20  ;;  %v3968_v15 = vpop.f32.mrb[55].mxu0  ;;  %v4157_v22 = vpop.f32.mrb[67].mxu1  ;;  %5848 = vmatpush1.bf16.msra.mxu0 %v10440_v31  ;;  %5906 = vmatprep.subr.bf16.mxu1 %v10607_v10  ;;  %v4811_v61 = vmax.f32 %v4637_v26, 0.0  ;;  %v4817_v14 = vmax.f32 %v4643_v23, 0.0 }
 0x377   :  { %v4667_v13 = vadd.f32 %v10371_v16, %v3968_v15  ;;  %v4673_v12 = vadd.f32 %v10371_v16, %v4157_v22  ;;  %5849 = vmatprep.subr.bf16.mxu0 %v10601_v1  ;;  %v4812_v34 = vmax.f32 %v4638_v25, 0.0  ;;  %v4818_v55 = vmax.f32 %v4644_v43, 0.0 }
 0x378   :  { %v4840_v27 = vmax.f32 %v4666_v42, 0.0  ;;  %v4846_v46 = vmax.f32 %v4672_v6, 0.0 }
 0x379   :  { %v4841_v4 = vmax.f32 %v4667_v13, 0.0  ;;  %v4847_v20 = vmax.f32 %v4673_v12, 0.0  ;;  %5907 = vmatpush1.bf16.msra.mxu1 %v10601_v1 }
 0x37a   :  { %v10746_v28 = vpack.c.bf16 %v4840_v27, %v4811_v61  ;;  %v10748_v31 = vpack.c.bf16 %v4846_v46, %v4817_v14  ;;  %5850 = vmatpush1.bf16.msra.mxu0 %v10455_v51  ;;  %5908 = vmatprep.subr.bf16.mxu1 %v10469_v48 }
 0x37b   :  { %v10752_v15 = vpack.c.bf16 %v4841_v4, %v4812_v34  ;;  %v10754_v26 = vpack.c.bf16 %v4847_v20, %v4818_v55  ;;  %v3972_v23 = vpop.f32.mrb[56].mxu0  ;;  %v4161_v42 = vpop.f32.mrb[68].mxu1  ;;  %5953 = vmatprep.subr.bf16.mxu0 %v10541_v44 }
 0x37c   :  { %12018 = vst [vmem:[#allocation15_spill] sm:$0xff] %v10748_v31  ;;  %v4695_v25 = vadd.f32 %v10387_v49, %v3972_v23  ;;  %v4701_v43 = vadd.f32 %v10387_v49, %v4161_v42  ;;  %v3974_v6 = vpop.f32.mrb[57].mxu0  ;;  %v4163_v22 = vpop.f32.mrb[69].mxu1 }
 0x37d   :  { %12019 = vst [vmem:[#allocation16_spill] sm:$0xff] %v10754_v26  ;;  %v4696_v13 = vadd.f32 %v10387_v49, %v3974_v6  ;;  %v4702_v51 = vadd.f32 %v10387_v49, %v4163_v22  ;;  %v3976_v12 = vpop.f32.mrb[58].mxu0  ;;  %v4165_v61 = vpop.f32.mrb[70].mxu1  ;;  %5860 = vmatmul.mubr.bf16.vlgmr.msra.gmra.mrb[120].mxu0 %v10562_v56  ;;  %5909 = vmatpush1.bf16.msra.mxu1 %v10541_v44 }
 0x37e   :  { %v4724_v4 = vadd.f32 %v10389_v39, %v3976_v12  ;;  %v4730_v14 = vadd.f32 %v10389_v39, %v4165_v61  ;;  %v3978_v27 = vpop.f32.mrb[59].mxu0  ;;  %v4167_v46 = vpop.f32.mrb[71].mxu1  ;;  %5910 = vmatprep.subr.bf16.mxu1 %v10491_v62  ;;  %5954 = vmatpush1.bf16.msra.mxu0 %v10535_v37  ;;  %v4869_v20 = vmax.f32 %v4695_v25, 0.0  ;;  %v4875_v23 = vmax.f32 %v4701_v43, 0.0 }
 0x37f   :  { %v4725_v34 = vadd.f32 %v10389_v39, %v3978_v27  ;;  %v4731_v55 = vadd.f32 %v10389_v39, %v4167_v46  ;;  %5955 = vmatprep.subr.bf16.mxu0 %v10570_v57  ;;  %8527 = vmatprep.mubr.msk.bf16.mxu0 %vm5691_vm4, %v10578_v54  ;;  %v4870_v22 = vmax.f32 %v4696_v13, 0.0  ;;  %v4876_v12 = vmax.f32 %v4702_v51, 0.0 }
 0x380   :  { %v4898_v42 = vmax.f32 %v4724_v4, 0.0  ;;  %v4904_v6 = vmax.f32 %v4730_v14, 0.0 }
 0x381   :  { %v4899_v61 = vmax.f32 %v4725_v34, 0.0  ;;  %v4905_v26 = vmax.f32 %v4731_v55, 0.0  ;;  %5911 = vmatpush1.bf16.msra.mxu1 %v10570_v57 }
 0x382   :  { %v10773_v37 = vpack.c.bf16 %v4898_v42, %v4869_v20  ;;  %v10775_v27 = vpack.c.bf16 %v4904_v6, %v4875_v23  ;;  %5912 = vmatprep.subr.bf16.mxu1 %v10513_v52  ;;  %5956 = vmatpush1.bf16.msra.mxu0 %v10564_v0 }
 0x383   :  { %v10779_v46 = vpack.c.bf16 %v4899_v61, %v4870_v22  ;;  %v10781_v25 = vpack.c.bf16 %v4905_v26, %v4876_v12  ;;  %v4078_v43 = vpop.f32.mrb[60].mxu0  ;;  %v4267_v4 = vpop.f32.mrb[72].mxu1  ;;  %5957 = vmatprep.subr.bf16.mxu0 %v10607_v10 }
 0x384   :  { %12020 = vst [vmem:[#allocation17_spill] sm:$0xff] %v10775_v27  ;;  %v4583_v13 = vadd.f32 %v10353_v58, %v4078_v43  ;;  %v4589_v51 = vadd.f32 %v10353_v58, %v4267_v4  ;;  %v4080_v14 = vpop.f32.mrb[61].mxu0  ;;  %v4269_v34 = vpop.f32.mrb[73].mxu1 }
 0x385   :  { %12021 = vst [vmem:[#allocation18_spill] sm:$0xff] %v10781_v25  ;;  %v4584_v55 = vadd.f32 %v10353_v58, %v4080_v14  ;;  %v4590_v20 = vadd.f32 %v10353_v58, %v4269_v34  ;;  %v4082_v23 = vpop.f32.mrb[62].mxu0  ;;  %v4271_v0 = vpop.f32.mrb[74].mxu1  ;;  %5870 = vmatmul.mubr.bf16.gmra.mrb[124].mxu0 %v10599_v59  ;;  %5913 = vmatpush1.bf16.msra.mxu1 %v10607_v10 }
 0x386   :  { %v4612_v26 = vadd.f32 %v10357_v3, %v4082_v23  ;;  %v4618_v42 = vadd.f32 %v10357_v3, %v4271_v0  ;;  %v4084_v6 = vpop.f32.mrb[63].mxu0  ;;  %v4273_v22 = vpop.f32.mrb[75].mxu1  ;;  %5958 = vmatpush1.bf16.msra.mxu0 %v10601_v1  ;;  %6016 = vmatprep.subr.bf16.mxu1 %v10474_v5  ;;  %v4757_v43 = vmax.f32 %v4583_v13, 0.0  ;;  %v4763_v4 = vmax.f32 %v4589_v51, 0.0 }
 0x387   :  { %v4613_v12 = vadd.f32 %v10357_v3, %v4084_v6  ;;  %v4619_v61 = vadd.f32 %v10357_v3, %v4273_v22  ;;  %5959 = vmatprep.subr.bf16.mxu0 %v10469_v48  ;;  %8528 = vmatprep.mubr.msk.bf16.mxu0 %vm5691_vm4, %v10615_v2  ;;  %v4758_v23 = vmax.f32 %v4584_v55, 0.0  ;;  %v4764_v0 = vmax.f32 %v4590_v20, 0.0 }
 0x388   :  { %v4786_v14 = vmax.f32 %v4612_v26, 0.0  ;;  %v4792_v34 = vmax.f32 %v4618_v42, 0.0  ;;  %5923 = vmatmul.mubr.bf16.vlgmr.msra.gmra.mrb[120].mxu1 %v10562_v56 }
 0x389   :  { %v4787_v1 = vmax.f32 %v4613_v12, 0.0  ;;  %v4793_v25 = vmax.f32 %v4619_v61, 0.0  ;;  %6017 = vmatpush1.bf16.msra.mxu1 %v10469_v48  ;;  %8530 = vmatprep.mubr.msk.bf16.mxu1 %vm5691_vm4, %v10578_v54 }
 0x38a   :  { %v10803_v6 = vpack.c.bf16 %v4786_v14, %v4757_v43  ;;  %v10805_v22 = vpack.c.bf16 %v4792_v34, %v4763_v4  ;;  %5960 = vmatpush1.bf16.msra.mxu0 %v10541_v44  ;;  %6018 = vmatprep.subr.bf16.mxu1 %v10496_v63 }
 0x38b   :  { %v10809_v13 = vpack.c.bf16 %v4787_v1, %v4758_v23  ;;  %v10811_v51 = vpack.c.bf16 %v4793_v25, %v4764_v0  ;;  %v4088_v55 = vpop.f32.mrb[64].mxu0  ;;  %v4277_v20 = vpop.f32.mrb[76].mxu1  ;;  %5961 = vmatprep.subr.bf16.mxu0 %v10491_v62 }
 0x38c   :  { %12022 = vst [vmem:[#allocation19_spill] sm:$0xff] %v10805_v22  ;;  %v4641_v26 = vadd.f32 %v10355_v60, %v4088_v55  ;;  %v4647_v42 = vadd.f32 %v10355_v60, %v4277_v20  ;;  %v4090_v12 = vpop.f32.mrb[65].mxu0  ;;  %v4279_v61 = vpop.f32.mrb[77].mxu1  ;;  %v10830_v20 = vld [vmem:[%s11982_s3 + $0x4] ss:$8 sps:$4 sm:$0xff]  }
 0x38d   :  { %12023 = vst [vmem:[#allocation20_spill] sm:$0xff] %v10811_v51  ;;  %v4642_v43 = vadd.f32 %v10355_v60, %v4090_v12  ;;  %v4648_v44 = vadd.f32 %v10355_v60, %v4279_v61  ;;  %v4092_v4 = vpop.f32.mrb[66].mxu0  ;;  %v4281_v14 = vpop.f32.mrb[78].mxu1  ;;  %5880 = vmatmul.mubr.bf16.gmra.mrb[128].mxu0 %v10637_v7  ;;  %6019 = vmatpush1.bf16.msra.mxu1 %v10491_v62 }
 0x38e   :  { %v4670_v25 = vadd.f32 %v10371_v16, %v4092_v4  ;;  %v4676_v34 = vadd.f32 %v10371_v16, %v4281_v14  ;;  %v4094_v23 = vpop.f32.mrb[67].mxu0  ;;  %v4283_v0 = vpop.f32.mrb[79].mxu1  ;;  %5962 = vmatpush1.bf16.msra.mxu0 %v10570_v57  ;;  %6020 = vmatprep.subr.bf16.mxu1 %v10518_v24  ;;  %v4815_v12 = vmax.f32 %v4641_v26, 0.0  ;;  %v4821_v61 = vmax.f32 %v4647_v42, 0.0 }
 0x38f   :  { %v4671_v1 = vadd.f32 %v10371_v16, %v4094_v23  ;;  %v4677_v55 = vadd.f32 %v10371_v16, %v4283_v0  ;;  %5963 = vmatprep.subr.bf16.mxu0 %v10513_v52  ;;  %8532 = vmatprep.mubr.msk.bf16.mxu0 %vm5691_vm4, %v10830_v20  ;;  %v4816_v14 = vmax.f32 %v4642_v43, 0.0  ;;  %v4822_v23 = vmax.f32 %v4648_v44, 0.0 }
 0x390   :  { %v4844_v4 = vmax.f32 %v4670_v25, 0.0  ;;  %v4850_v57 = vmax.f32 %v4676_v34, 0.0  ;;  %5933 = vmatmul.mubr.bf16.gmra.mrb[124].mxu1 %v10599_v59 }
 0x391   :  { %v4845_v51 = vmax.f32 %v4671_v1, 0.0  ;;  %v4851_v0 = vmax.f32 %v4677_v55, 0.0  ;;  %6021 = vmatpush1.bf16.msra.mxu1 %v10513_v52  ;;  %8531 = vmatprep.mubr.msk.bf16.mxu1 %vm5691_vm4, %v10615_v2 }
 0x392   :  { %v10838_v22 = vpack.c.bf16 %v4844_v4, %v4815_v12  ;;  %v10840_v27 = vpack.c.bf16 %v4850_v57, %v4821_v61  ;;  %5964 = vmatpush1.bf16.msra.mxu0 %v10607_v10  ;;  %6022 = vmatprep.subr.bf16.mxu1 %v10641_v9 }
 0x393   :  { %v10844_v26 = vpack.c.bf16 %v4845_v51, %v4816_v14  ;;  %v10846_v42 = vpack.c.bf16 %v4851_v0, %v4822_v23  ;;  %v4098_v43 = vpop.f32.mrb[68].mxu0  ;;  %v4287_v44 = vpop.f32.mrb[80].mxu1  ;;  %5965 = vmatprep.subr.bf16.mxu0 %v10474_v5 }
 0x394   :  { %12024 = vst [vmem:[#allocation21_spill] sm:$0xff] %v10840_v27  ;;  %v4699_v25 = vadd.f32 %v10387_v49, %v4098_v43  ;;  %v4705_v34 = vadd.f32 %v10387_v49, %v4287_v44  ;;  %v4100_v1 = vpop.f32.mrb[69].mxu0  ;;  %v4289_v55 = vpop.f32.mrb[81].mxu1 }
 0x395   :  { %12025 = vst [vmem:[#allocation22_spill] sm:$0xff] %v10846_v42  ;;  %v4700_v12 = vadd.f32 %v10387_v49, %v4100_v1  ;;  %v4706_v10 = vadd.f32 %v10387_v49, %v4289_v55  ;;  %v4102_v61 = vpop.f32.mrb[70].mxu0  ;;  %v4291_v4 = vpop.f32.mrb[82].mxu1  ;;  %6023 = vmatpush1.bf16.msra.mxu1 %v10474_v5 }
 0x396   :  { %v4728_v51 = vadd.f32 %v10389_v39, %v4102_v61  ;;  %v4734_v57 = vadd.f32 %v10389_v39, %v4291_v4  ;;  %v4104_v14 = vpop.f32.mrb[71].mxu0  ;;  %v4293_v23 = vpop.f32.mrb[83].mxu1  ;;  %5966 = vmatpush1.bf16.msra.mxu0 %v10469_v48  ;;  %6024 = vmatprep.subr.bf16.mxu1 %v10671_v19  ;;  %v4873_v44 = vmax.f32 %v4699_v25, 0.0  ;;  %v4879_v1 = vmax.f32 %v4705_v34, 0.0 }
 0x397   :  { %v4729_v0 = vadd.f32 %v10389_v39, %v4104_v14  ;;  %v4735_v43 = vadd.f32 %v10389_v39, %v4293_v23  ;;  %5967 = vmatprep.subr.bf16.mxu0 %v10496_v63  ;;  %v4874_v61 = vmax.f32 %v4700_v12, 0.0  ;;  %v4880_v4 = vmax.f32 %v4706_v10, 0.0 }
 0x398   :  { %v4902_v55 = vmax.f32 %v4728_v51, 0.0  ;;  %v4908_v42 = vmax.f32 %v4734_v57, 0.0  ;;  %5943 = vmatmul.mubr.bf16.gmra.mrb[128].mxu1 %v10637_v7 }
 0x399   :  { %v4903_v27 = vmax.f32 %v4729_v0, 0.0  ;;  %v4909_v31 = vmax.f32 %v4735_v43, 0.0  ;;  %6025 = vmatpush1.bf16.msra.mxu1 %v10496_v63  ;;  %8535 = vmatprep.mubr.msk.bf16.mxu1 %vm5691_vm4, %v10830_v20 }
 0x39a   :  { %v10865_v48 = vpack.c.bf16 %v4902_v55, %v4873_v44  ;;  %v10867_v14 = vpack.c.bf16 %v4908_v42, %v4879_v1  ;;  %5968 = vmatpush1.bf16.msra.mxu0 %v10491_v62  ;;  %6026 = vmatprep.subr.bf16.mxu1 %v10698_v47 }
 0x39b   :  { %v10871_v25 = vpack.c.bf16 %v4903_v27, %v4874_v61  ;;  %v10873_v34 = vpack.c.bf16 %v4909_v31, %v4880_v4  ;;  %v4204_v12 = vpop.f32.mrb[72].mxu0  ;;  %v4330_v10 = vpop.f32.mrb[96].mxu1  ;;  %5969 = vmatprep.subr.bf16.mxu0 %v10518_v24 }
 0x39c   :  { %v4587_v51 = vadd.f32 %v10353_v58, %v4204_v12  ;;  %v4381_v57 = vadd.f32 %v4330_v10, %v10360_v8  ;;  %v4206_v23 = vpop.f32.mrb[73].mxu0  ;;  %v8688_v0 = vpop.f32.mrb[97].mxu1 }
 0x39d   :  { %v4588_v42 = vadd.f32 %v10353_v58, %v4206_v23  ;;  %v4208_v43 = vpop.f32.mrb[74].mxu0  ;;  %v4333_v62 = vpop.f32.mrb[98].mxu1  ;;  %6027 = vmatpush1.bf16.msra.mxu1 %v10518_v24 }
 0x39e   :  { %v4591_v27 = vadd.f32 %v10353_v58, %v4381_v57  ;;  %v4616_v31 = vadd.f32 %v10357_v3, %v4208_v43  ;;  %v4410_v44 = vadd.f32 %v4333_v62, %v10365_v41  ;;  %v4210_v1 = vpop.f32.mrb[75].mxu0  ;;  %5970 = vmatpush1.bf16.msra.mxu0 %v10513_v52  ;;  %6028 = vmatprep.subr.bf16.mxu1 %v10647_v32  ;;  %v8689_v8 = vpop.f32.mrb[99].mxu1  ;;  %v4761_v61 = vmax.f32 %v4587_v51, 0.0 }
 0x39f   :  { %v4617_v55 = vadd.f32 %v10357_v3, %v4210_v1  ;;  %5971 = vmatprep.subr.bf16.mxu0 %v10641_v9  ;;  %v4762_v10 = vmax.f32 %v4588_v42, 0.0 }
 0x3a0   :  { %v4790_v4 = vmax.f32 %v4616_v31, 0.0  ;;  %v4620_v12 = vadd.f32 %v10357_v3, %v4410_v44  ;;  %v4765_v57 = vmax.f32 %v4591_v27, 0.0 }
 0x3a1   :  { %v4791_v58 = vmax.f32 %v4617_v55, 0.0  ;;  %6029 = vmatpush1.bf16.msra.mxu1 %v10641_v9 }
 0x3a2   :  { %v10889_v41 = vpack.c.bf16 %v4790_v4, %v4761_v61  ;;  %v4794_v23 = vmax.f32 %v4620_v12, 0.0  ;;  %5972 = vmatpush1.bf16.msra.mxu0 %v10474_v5  ;;  %6030 = vmatprep.subr.bf16.mxu1 %v10677_v17 }
 0x3a3   :  { %v10893_v52 = vpack.c.bf16 %v4791_v58, %v4762_v10  ;;  %v4214_v0 = vpop.f32.mrb[76].mxu0  ;;  %v4338_v43 = vpop.f32.mrb[100].mxu1  ;;  %5973 = vmatprep.subr.bf16.mxu0 %v10671_v19 }
 0x3a4   :  { %v4645_v3 = vadd.f32 %v10355_v60, %v4214_v0  ;;  %v4439_v51 = vadd.f32 %v4338_v43, %v10376_v33  ;;  %v4216_v42 = vpop.f32.mrb[77].mxu0  ;;  %v8692_v62 = vpop.f32.mrb[101].mxu1  ;;  %v10898_v27 = vpack.c.bf16 %v4794_v23, %v4765_v57 }
 0x3a5   :  { %v4646_v31 = vadd.f32 %v10355_v60, %v4216_v42  ;;  %v4218_v44 = vpop.f32.mrb[78].mxu0  ;;  %v4341_v5 = vpop.f32.mrb[102].mxu1  ;;  %6031 = vmatpush1.bf16.msra.mxu1 %v10671_v19 }
 0x3a6   :  { %v4649_v1 = vadd.f32 %v10355_v60, %v4439_v51  ;;  %v4674_v8 = vadd.f32 %v10371_v16, %v4218_v44  ;;  %v4468_v55 = vadd.f32 %v4341_v5, %v10382_v35  ;;  %v4220_v61 = vpop.f32.mrb[79].mxu0  ;;  %5974 = vmatpush1.bf16.msra.mxu0 %v10496_v63  ;;  %6032 = vmatprep.subr.bf16.mxu1 %v10704_v30  ;;  %v8693_v33 = vpop.f32.mrb[103].mxu1  ;;  %v4819_v12 = vmax.f32 %v4645_v3, 0.0 }
 0x3a7   :  { %v4675_v4 = vadd.f32 %v10371_v16, %v4220_v61  ;;  %5975 = vmatprep.subr.bf16.mxu0 %v10698_v47  ;;  %v4820_v57 = vmax.f32 %v4646_v31, 0.0 }
 0x3a8   :  { %v4848_v10 = vmax.f32 %v4674_v8, 0.0  ;;  %v4678_v58 = vadd.f32 %v10371_v16, %v4468_v55  ;;  %v4823_v23 = vmax.f32 %v4649_v1, 0.0 }
 0x3a9   :  { %v4849_v60 = vmax.f32 %v4675_v4, 0.0  ;;  %6033 = vmatpush1.bf16.msra.mxu1 %v10698_v47 }
 0x3aa   :  { %v10911_v35 = vpack.c.bf16 %v4848_v10, %v4819_v12  ;;  %v4852_v0 = vmax.f32 %v4678_v58, 0.0  ;;  %5976 = vmatpush1.bf16.msra.mxu0 %v10518_v24  ;;  %6034 = vmatprep.subr.bf16.mxu1 %v10537_v21 }
 0x3ab   :  { %v10915_v63 = vpack.c.bf16 %v4849_v60, %v4820_v57  ;;  %v4224_v43 = vpop.f32.mrb[80].mxu0  ;;  %v4346_v51 = vpop.f32.mrb[104].mxu1  ;;  %6079 = vmatprep.subr.bf16.mxu0 %v10647_v32 }
 0x3ac   :  { %v4703_v16 = vadd.f32 %v10387_v49, %v4224_v43  ;;  %v4497_v3 = vadd.f32 %v4346_v51, %v10396_v45  ;;  %v4226_v42 = vpop.f32.mrb[81].mxu0  ;;  %v8696_v62 = vpop.f32.mrb[105].mxu1  ;;  %v10920_v31 = vpack.c.bf16 %v4852_v0, %v4823_v23 }
 0x3ad   :  { %v4704_v44 = vadd.f32 %v10387_v49, %v4226_v42  ;;  %v4228_v5 = vpop.f32.mrb[82].mxu0  ;;  %v4349_v24 = vpop.f32.mrb[106].mxu1  ;;  %5986 = vmatmul.mubr.bf16.vlgmr.msra.gmra.mrb[132].mxu0 %v10562_v56  ;;  %6035 = vmatpush1.bf16.msra.mxu1 %v10647_v32 }
 0x3ae   :  { %v4707_v1 = vadd.f32 %v10387_v49, %v4497_v3  ;;  %v4732_v8 = vadd.f32 %v10389_v39, %v4228_v5  ;;  %v4526_v55 = vadd.f32 %v4349_v24, %v10402_v53  ;;  %v4230_v61 = vpop.f32.mrb[83].mxu0  ;;  %6036 = vmatprep.subr.bf16.mxu1 %v10566_v36  ;;  %6080 = vmatpush1.bf16.msra.mxu0 %v10641_v9  ;;  %v8697_v45 = vpop.f32.mrb[107].mxu1  ;;  %v4877_v4 = vmax.f32 %v4703_v16, 0.0 }
 0x3af   :  { %v4733_v33 = vadd.f32 %v10389_v39, %v4230_v61  ;;  %6081 = vmatprep.subr.bf16.mxu0 %v10677_v17  ;;  %8533 = vmatprep.mubr.msk.bf16.mxu0 %vm5691_vm4, %v10578_v54  ;;  %v4878_v10 = vmax.f32 %v4704_v44, 0.0 }
 0x3b0   :  { %v4906_v12 = vmax.f32 %v4732_v8, 0.0  ;;  %v4736_v49 = vadd.f32 %v10389_v39, %v4526_v55  ;;  %v4881_v53 = vmax.f32 %v4707_v1, 0.0  ;;  %v12026_v39 = vld [vmem:[#allocation7_spill] sm:$0xff] }
 0x3b1   :  { %v4907_v58 = vmax.f32 %v4733_v33, 0.0  ;;  %6037 = vmatpush1.bf16.msra.mxu1 %v10677_v17 }
 0x3b2   :  { %v10936_v57 = vpack.c.bf16 %v4906_v12, %v4877_v4  ;;  %v4910_v9 = vmax.f32 %v4736_v49, 0.0  ;;  %6038 = vmatprep.subr.bf16.mxu1 %v10603_v40  ;;  %6082 = vmatpush1.bf16.msra.mxu0 %v10671_v19  ;;  %v12035_v19 = vld [vmem:[#allocation14_spill] sm:$0xff] }
 0x3b3   :  { %v10940_v60 = vpack.c.bf16 %v4907_v58, %v4878_v10  ;;  %6083 = vmatprep.subr.bf16.mxu0 %v10704_v30 }
 0x3b4   :  { %v10943_v23 = vpack.c.bf16 %v4910_v9, %v4881_v53 }
 0x3b5   :  { %5996 = vmatmul.mubr.bf16.gmra.mrb[136].mxu0 %v10599_v59  ;;  %6039 = vmatpush1.bf16.msra.mxu1 %v10704_v30 }
 0x3b6   :  { %6084 = vmatpush1.bf16.msra.mxu0 %v10698_v47  ;;  %6142 = vmatprep.subr.bf16.mxu1 %v10543_v29  ;;  %v11114_v47 = vld [vmem:[%s11982_s3 + $0x20] ss:$8 sps:$4 sm:$0xff]  }
 0x3b7   :  { %6085 = vmatprep.subr.bf16.mxu0 %v10537_v21  ;;  %8534 = vmatprep.mubr.msk.bf16.mxu0 %vm5691_vm4, %v10615_v2 }
 0x3b8   :  { %6049 = vmatmul.mubr.bf16.vlgmr.msra.gmra.mrb[132].mxu1 %v10562_v56  ;;  %v11013_v56 = vld [vmem:[%s11982_s3 + $0x14] ss:$8 sps:$4 sm:$0xff]  }
 0x3b9   :  { %6143 = vmatpush1.bf16.msra.mxu1 %v10537_v21  ;;  %8536 = vmatprep.mubr.msk.bf16.mxu1 %vm5691_vm4, %v10578_v54  ;;  %v12029_v54 = vld [vmem:[#allocation8_spill] sm:$0xff] }
 0x3ba   :  { %6086 = vmatpush1.bf16.msra.mxu0 %v10647_v32  ;;  %6144 = vmatprep.subr.bf16.mxu1 %v10572_v38  ;;  %v12034_v32 = vld [vmem:[#allocation17_spill] sm:$0xff] }
 0x3bb   :  { %6087 = vmatprep.subr.bf16.mxu0 %v10566_v36 }
 0x3bd   :  { %6006 = vmatmul.mubr.bf16.gmra.mrb[140].mxu0 %v10637_v7  ;;  %6145 = vmatpush1.bf16.msra.mxu1 %v10566_v36 }
 0x3be   :  { %6088 = vmatpush1.bf16.msra.mxu0 %v10677_v17  ;;  %6146 = vmatprep.subr.bf16.mxu1 %v10609_v18  ;;  %v12036_v17 = vld [vmem:[#allocation16_spill] sm:$0xff] }
 0x3bf   :  { %6089 = vmatprep.subr.bf16.mxu0 %v10603_v40  ;;  %8538 = vmatprep.mubr.msk.bf16.mxu0 %vm5691_vm4, %v10830_v20 }
 0x3c0   :  { %6059 = vmatmul.mubr.bf16.gmra.mrb[136].mxu1 %v10599_v59  ;;  %v11034_v59 = vld [vmem:[%s11982_s3 + $0x24] ss:$8 sps:$4 sm:$0xff]  }
 0x3c1   :  { %6147 = vmatpush1.bf16.msra.mxu1 %v10603_v40  ;;  %8537 = vmatprep.mubr.msk.bf16.mxu1 %vm5691_vm4, %v10615_v2  ;;  %v12032_v2 = vld [vmem:[#allocation13_spill] sm:$0xff] }
 0x3c2   :  { %6090 = vmatpush1.bf16.msra.mxu0 %v10704_v30  ;;  %6148 = vmatprep.subr.bf16.mxu1 %v10722_v11  ;;  %v11123_v30 = vpop.permute.xlu0 %5636 }
 0x3c3   :  { %6091 = vmatprep.subr.bf16.mxu0 %v10543_v29 }
 0x3c5   :  { %6149 = vmatpush1.bf16.msra.mxu1 %v10543_v29 }
 0x3c6   :  { %6092 = vmatpush1.bf16.msra.mxu0 %v10537_v21  ;;  %6150 = vmatprep.subr.bf16.mxu1 %v10746_v28  ;;  %v11003_v21 = vld [vmem:[%s11982_s3] ss:$8 sps:$4 sm:$0xff]   ;;  %v11144_v16 = vpop.permute.xlu0 %5646 }
 0x3c7   :  { %6093 = vmatprep.subr.bf16.mxu0 %v10572_v38 }
 0x3c8   :  { %6069 = vmatmul.mubr.bf16.gmra.mrb[140].mxu1 %v10637_v7 }
 0x3c9   :  { %6151 = vmatpush1.bf16.msra.mxu1 %v10572_v38  ;;  %8541 = vmatprep.mubr.msk.bf16.mxu1 %vm5691_vm4, %v10830_v20 }
 0x3ca   :  { %6094 = vmatpush1.bf16.msra.mxu0 %v10566_v36  ;;  %6152 = vmatprep.subr.bf16.mxu1 %v10773_v37  ;;  %v12028_v36 = vld [vmem:[#allocation11_spill] sm:$0xff] }
 0x3cb   :  { %6095 = vmatprep.subr.bf16.mxu0 %v10609_v18 }
 0x3cd   :  { %6153 = vmatpush1.bf16.msra.mxu1 %v10609_v18 }
 0x3ce   :  { %6096 = vmatpush1.bf16.msra.mxu0 %v10603_v40  ;;  %6154 = vmatprep.subr.bf16.mxu1 %v10728_v50  ;;  %v12030_v40 = vld [vmem:[#allocation10_spill] sm:$0xff] }
 0x3cf   :  { %6097 = vmatprep.subr.bf16.mxu0 %v10722_v11 }
 0x3d1   :  { %6155 = vmatpush1.bf16.msra.mxu1 %v10722_v11 }
 0x3d2   :  { %6098 = vmatpush1.bf16.msra.mxu0 %v10543_v29  ;;  %6156 = vmatprep.subr.bf16.mxu1 %v10752_v15  ;;  %v12027_v29 = vld [vmem:[#allocation9_spill] sm:$0xff] }
 0x3d3   :  { %6099 = vmatprep.subr.bf16.mxu0 %v10746_v28 }
 0x3d5   :  { %6157 = vmatpush1.bf16.msra.mxu1 %v10746_v28 }
 0x3d6   :  { %6100 = vmatpush1.bf16.msra.mxu0 %v10572_v38  ;;  %6158 = vmatprep.subr.bf16.mxu1 %v10779_v46  ;;  %v11024_v38 = vld [vmem:[%s11982_s3 + $0x10] ss:$8 sps:$4 sm:$0xff]  }
 0x3d7   :  { %6101 = vmatprep.subr.bf16.mxu0 %v10773_v37 }
 0x3d9   :  { %6159 = vmatpush1.bf16.msra.mxu1 %v10773_v37 }
 0x3da   :  { %6102 = vmatpush1.bf16.msra.mxu0 %v10609_v18  ;;  %6160 = vmatprep.subr.bf16.mxu1 %v12026_v39  ;;  %v12031_v18 = vld [vmem:[#allocation12_spill] sm:$0xff] }
 0x3db   :  { %6205 = vmatprep.subr.bf16.mxu0 %v10728_v50 }
 0x3dd   :  { %6112 = vmatmul.mubr.bf16.vlgmr.msra.gmra.mrb[144].mxu0 %v11003_v21  ;;  %6161 = vmatpush1.bf16.msra.mxu1 %v10728_v50 }
 0x3de   :  { %6162 = vmatprep.subr.bf16.mxu1 %v12027_v29  ;;  %6206 = vmatpush1.bf16.msra.mxu0 %v10722_v11  ;;  %v12037_v11 = vld [vmem:[#allocation18_spill] sm:$0xff] }
 0x3df   :  { %6207 = vmatprep.subr.bf16.mxu0 %v10752_v15  ;;  %8539 = vmatprep.mubr.msk.bf16.mxu0 %vm5691_vm4, %v11013_v56 }
 0x3e1   :  { %6163 = vmatpush1.bf16.msra.mxu1 %v10752_v15 }
 0x3e2   :  { %6164 = vmatprep.subr.bf16.mxu1 %v12028_v36  ;;  %6208 = vmatpush1.bf16.msra.mxu0 %v10746_v28 }
 0x3e3   :  { %6209 = vmatprep.subr.bf16.mxu0 %v10779_v46 }
 0x3e5   :  { %6122 = vmatmul.mubr.bf16.gmra.mrb[148].mxu0 %v11024_v38  ;;  %6165 = vmatpush1.bf16.msra.mxu1 %v10779_v46 }
 0x3e6   :  { %6210 = vmatpush1.bf16.msra.mxu0 %v10773_v37  ;;  %6268 = vmatprep.subr.bf16.mxu1 %v12029_v54  ;;  %v11130_v37 = vpop.permute.xlu1 %5641 }
 0x3e7   :  { %6211 = vmatprep.subr.bf16.mxu0 %v12026_v39  ;;  %8540 = vmatprep.mubr.msk.bf16.mxu0 %vm5691_vm4, %v11034_v59 }
 0x3e8   :  { %6175 = vmatmul.mubr.bf16.vlgmr.msra.gmra.mrb[144].mxu1 %v11003_v21 }
 0x3e9   :  { %6269 = vmatpush1.bf16.msra.mxu1 %v12026_v39  ;;  %8542 = vmatprep.mubr.msk.bf16.mxu1 %vm5691_vm4, %v11013_v56 }
 0x3ea   :  { %6212 = vmatpush1.bf16.msra.mxu0 %v10728_v50  ;;  %6270 = vmatprep.subr.bf16.mxu1 %v12030_v40  ;;  %v11153_v5 = vpop.permute.xlu1 %5651 }
 0x3eb   :  { %6213 = vmatprep.subr.bf16.mxu0 %v12027_v29 }
 0x3ed   :  { %6132 = vmatmul.mubr.bf16.gmra.mrb[152].mxu0 %v10637_v7  ;;  %6271 = vmatpush1.bf16.msra.mxu1 %v12027_v29 }
 0x3ee   :  { %6214 = vmatpush1.bf16.msra.mxu0 %v10752_v15  ;;  %6272 = vmatprep.subr.bf16.mxu1 %v12031_v18 }
 0x3ef   :  { %6215 = vmatprep.subr.bf16.mxu0 %v12028_v36  ;;  %8544 = vmatprep.mubr.msk.bf16.mxu0 %vm5691_vm4, %v10830_v20 }
 0x3f0   :  { %6185 = vmatmul.mubr.bf16.gmra.mrb[148].mxu1 %v11024_v38 }
 0x3f1   :  { %6273 = vmatpush1.bf16.msra.mxu1 %v12028_v36  ;;  %8543 = vmatprep.mubr.msk.bf16.mxu1 %vm5691_vm4, %v11034_v59 }
 0x3f2   :  { %6216 = vmatpush1.bf16.msra.mxu0 %v10779_v46  ;;  %6274 = vmatprep.subr.bf16.mxu1 %v10803_v6 }
 0x3f3   :  { %6217 = vmatprep.subr.bf16.mxu0 %v12029_v54 }
 0x3f5   :  { %6275 = vmatpush1.bf16.msra.mxu1 %v12029_v54 }
 0x3f6   :  { %6218 = vmatpush1.bf16.msra.mxu0 %v12026_v39  ;;  %6276 = vmatprep.subr.bf16.mxu1 %v10838_v22 }
 0x3f7   :  { %6219 = vmatprep.subr.bf16.mxu0 %v12030_v40 }
 0x3f8   :  { %6195 = vmatmul.mubr.bf16.gmra.mrb[152].mxu1 %v10637_v7  ;;  %v12033_v7 = vld [vmem:[#allocation15_spill] sm:$0xff] }
 0x3f9   :  { %6277 = vmatpush1.bf16.msra.mxu1 %v12030_v40  ;;  %8547 = vmatprep.mubr.msk.bf16.mxu1 %vm5691_vm4, %v10830_v20 }
 0x3fa   :  { %6220 = vmatpush1.bf16.msra.mxu0 %v12027_v29  ;;  %6278 = vmatprep.subr.bf16.mxu1 %v10865_v48 }
 0x3fb   :  { %6221 = vmatprep.subr.bf16.mxu0 %v12031_v18 }
 0x3fd   :  { %6279 = vmatpush1.bf16.msra.mxu1 %v12031_v18 }
 0x3fe   :  { %6222 = vmatpush1.bf16.msra.mxu0 %v12028_v36  ;;  %6280 = vmatprep.subr.bf16.mxu1 %v10809_v13 }
 0x3ff   :  { %6223 = vmatprep.subr.bf16.mxu0 %v10803_v6 }
 0x401   :  { %6281 = vmatpush1.bf16.msra.mxu1 %v10803_v6 }
 0x402   :  { %6224 = vmatpush1.bf16.msra.mxu0 %v12029_v54  ;;  %6282 = vmatprep.subr.bf16.mxu1 %v10844_v26 }
 0x403   :  { %6225 = vmatprep.subr.bf16.mxu0 %v10838_v22 }
 0x405   :  { %6283 = vmatpush1.bf16.msra.mxu1 %v10838_v22 }
 0x406   :  { %6226 = vmatpush1.bf16.msra.mxu0 %v12030_v40  ;;  %6284 = vmatprep.subr.bf16.mxu1 %v10871_v25  ;;  %v11171_v40 = vpop.permute.xlu0 %5656 }
 0x407   :  { %6227 = vmatprep.subr.bf16.mxu0 %v10865_v48 }
 0x409   :  { %6285 = vmatpush1.bf16.msra.mxu1 %v10865_v48 }
 0x40a   :  { %6228 = vmatpush1.bf16.msra.mxu0 %v12031_v18  ;;  %6286 = vmatprep.subr.bf16.mxu1 %v12032_v2 }
 0x40b   :  { %6331 = vmatprep.subr.bf16.mxu0 %v10809_v13 }
 0x40d   :  { %6238 = vmatmul.mubr.bf16.vlgmr.msra.gmra.mrb[156].mxu0 %v11003_v21  ;;  %6287 = vmatpush1.bf16.msra.mxu1 %v10809_v13 }
 0x40e   :  { %6288 = vmatprep.subr.bf16.mxu1 %v12033_v7  ;;  %6332 = vmatpush1.bf16.msra.mxu0 %v10803_v6 }
 0x40f   :  { %6333 = vmatprep.subr.bf16.mxu0 %v10844_v26  ;;  %8545 = vmatprep.mubr.msk.bf16.mxu0 %vm5691_vm4, %v11013_v56 }
 0x411   :  { %6289 = vmatpush1.bf16.msra.mxu1 %v10844_v26 }
 0x412   :  { %6290 = vmatprep.subr.bf16.mxu1 %v12034_v32  ;;  %6334 = vmatpush1.bf16.msra.mxu0 %v10838_v22 }
 0x413   :  { %6335 = vmatprep.subr.bf16.mxu0 %v10871_v25 }
 0x415   :  { %6248 = vmatmul.mubr.bf16.gmra.mrb[160].mxu0 %v11024_v38  ;;  %6291 = vmatpush1.bf16.msra.mxu1 %v10871_v25 }
 0x416   :  { %6336 = vmatpush1.bf16.msra.mxu0 %v10865_v48  ;;  %6394 = vmatprep.subr.bf16.mxu1 %v12035_v19 }
 0x417   :  { %6337 = vmatprep.subr.bf16.mxu0 %v12032_v2  ;;  %8546 = vmatprep.mubr.msk.bf16.mxu0 %vm5691_vm4, %v11034_v59 }
 0x418   :  { %6301 = vmatmul.mubr.bf16.vlgmr.msra.gmra.mrb[156].mxu1 %v11003_v21 }
 0x419   :  { %6395 = vmatpush1.bf16.msra.mxu1 %v12032_v2  ;;  %8548 = vmatprep.mubr.msk.bf16.mxu1 %vm5691_vm4, %v11013_v56 }
 0x41a   :  { %6338 = vmatpush1.bf16.msra.mxu0 %v10809_v13  ;;  %6396 = vmatprep.subr.bf16.mxu1 %v12036_v17 }
 0x41b   :  { %6339 = vmatprep.subr.bf16.mxu0 %v12033_v7 }
 0x41d   :  { %6258 = vmatmul.mubr.bf16.gmra.mrb[164].mxu0 %v11114_v47  ;;  %6397 = vmatpush1.bf16.msra.mxu1 %v12033_v7 }
 0x41e   :  { %6340 = vmatpush1.bf16.msra.mxu0 %v10844_v26  ;;  %6398 = vmatprep.subr.bf16.mxu1 %v12037_v11 }
 0x41f   :  { %6341 = vmatprep.subr.bf16.mxu0 %v12034_v32  ;;  %8550 = vmatprep.mubr.msk.bf16.mxu0 %vm5691_vm4, %v10830_v20 }
 0x420   :  { %v5735_v28 = vpop.f32.mrb[108].mxu0  ;;  %6311 = vmatmul.mubr.bf16.gmra.mrb[160].mxu1 %v11024_v38 }
 0x421   :  { %v5736_v50 = vadd.f32 %v5735_v28, %v11123_v30  ;;  %v5737_v15 = vpop.f32.mrb[109].mxu0  ;;  %6399 = vmatpush1.bf16.msra.mxu1 %v12034_v32  ;;  %8549 = vmatprep.mubr.msk.bf16.mxu1 %vm5691_vm4, %v11034_v59 }
 0x422   :  { %v5738_v46 = vadd.f32 %v5737_v15, %v11123_v30  ;;  %v5739_v6 = vpop.f32.mrb[110].mxu0  ;;  %6342 = vmatpush1.bf16.msra.mxu0 %v10871_v25  ;;  %6400 = vmatprep.subr.bf16.mxu1 %v10889_v41 }
 0x423   :  { %v5740_v22 = vadd.f32 %v5739_v6, %v11130_v37  ;;  %v5741_v13 = vpop.f32.mrb[111].mxu0  ;;  %6343 = vmatprep.subr.bf16.mxu0 %v12035_v19  ;;  %v6520_v48 = vmax.f32 %v5736_v50, 0.0  ;;  %v11177_v6 = vpop.permute.xlu1 %5661 }
 0x424   :  { %v5742_v26 = vadd.f32 %v5741_v13, %v11130_v37  ;;  %v6521_v43 = vmax.f32 %v5738_v46, 0.0 }
 0x425   :  { %v6546_v0 = vmax.f32 %v5740_v22, 0.0  ;;  %6401 = vmatpush1.bf16.msra.mxu1 %v12035_v19 }
 0x426   :  { %v6547_v51 = vmax.f32 %v5742_v26, 0.0  ;;  %6344 = vmatpush1.bf16.msra.mxu0 %v12032_v2  ;;  %6402 = vmatprep.subr.bf16.mxu1 %v10911_v35 }
 0x427   :  { %v11141_v25 = vpack.c.bf16 %v6546_v0, %v6520_v48  ;;  %6345 = vmatprep.subr.bf16.mxu0 %v12036_v17 }
 0x428   :  { %v11146_v3 = vpack.c.bf16 %v6547_v51, %v6521_v43  ;;  %v5745_v42 = vpop.f32.mrb[112].mxu0  ;;  %6321 = vmatmul.mubr.bf16.gmra.mrb[164].mxu1 %v11114_v47 }
 0x429   :  { %v5746_v62 = vadd.f32 %v5745_v42, %v11144_v16  ;;  %v5747_v44 = vpop.f32.mrb[113].mxu0  ;;  %6403 = vmatpush1.bf16.msra.mxu1 %v12036_v17  ;;  %8553 = vmatprep.mubr.msk.bf16.mxu1 %vm5691_vm4, %v10830_v20 }
 0x42a   :  { %v5748_v24 = vadd.f32 %v5747_v44, %v11144_v16  ;;  %v5749_v1 = vpop.f32.mrb[114].mxu0  ;;  %6346 = vmatpush1.bf16.msra.mxu0 %v12033_v7  ;;  %6404 = vmatprep.subr.bf16.mxu1 %v10936_v57 }
 0x42b   :  { %v5750_v8 = vadd.f32 %v5749_v1, %v11153_v5  ;;  %v5751_v55 = vpop.f32.mrb[115].mxu0  ;;  %v5798_v61 = vpop.f32.mrb[108].mxu1  ;;  %6347 = vmatprep.subr.bf16.mxu0 %v12037_v11  ;;  %v6572_v12 = vmax.f32 %v5746_v62, 0.0 }
 0x42c   :  { %v5752_v45 = vadd.f32 %v5751_v55, %v11153_v5  ;;  %v5799_v33 = vadd.f32 %v5798_v61, %v11123_v30  ;;  %v5800_v4 = vpop.f32.mrb[109].mxu1  ;;  %v6573_v53 = vmax.f32 %v5748_v24, 0.0 }
 0x42d   :  { %v6598_v49 = vmax.f32 %v5750_v8, 0.0  ;;  %v5801_v10 = vadd.f32 %v5800_v4, %v11123_v30  ;;  %v5802_v58 = vpop.f32.mrb[110].mxu1  ;;  %6405 = vmatpush1.bf16.msra.mxu1 %v12037_v11 }
 0x42e   :  { %v6599_v9 = vmax.f32 %v5752_v45, 0.0  ;;  %v5803_v39 = vadd.f32 %v5802_v58, %v11130_v37  ;;  %v5804_v29 = vpop.f32.mrb[111].mxu1  ;;  %6348 = vmatpush1.bf16.msra.mxu0 %v12034_v32  ;;  %6406 = vmatprep.subr.bf16.mxu1 %v10893_v52  ;;  %v6522_v2 = vmax.f32 %v5799_v33, 0.0 }
 0x42f   :  { %v11167_v36 = vpack.c.bf16 %v6598_v49, %v6572_v12  ;;  %v5805_v54 = vadd.f32 %v5804_v29, %v11130_v37  ;;  %6349 = vmatprep.subr.bf16.mxu0 %v10889_v41  ;;  %v6523_v50 = vmax.f32 %v5801_v10, 0.0 }
 0x430   :  { %v11173_v18 = vpack.c.bf16 %v6599_v9, %v6573_v53  ;;  %v6548_v7 = vmax.f32 %v5803_v39, 0.0  ;;  %v5755_v28 = vpop.f32.mrb[116].mxu0 }
 0x431   :  { %v6549_v15 = vmax.f32 %v5805_v54, 0.0  ;;  %v5756_v46 = vadd.f32 %v5755_v28, %v11171_v40  ;;  %v5757_v32 = vpop.f32.mrb[117].mxu0  ;;  %6407 = vmatpush1.bf16.msra.mxu1 %v10889_v41 }
 0x432   :  { %v11179_v22 = vpack.c.bf16 %v6548_v7, %v6522_v2  ;;  %v5758_v13 = vadd.f32 %v5757_v32, %v11171_v40  ;;  %v5759_v26 = vpop.f32.mrb[118].mxu0  ;;  %6350 = vmatpush1.bf16.msra.mxu0 %v12035_v19  ;;  %6408 = vmatprep.subr.bf16.mxu1 %v10915_v63 }
 0x433   :  { %v11184_v48 = vpack.c.bf16 %v6549_v15, %v6523_v50  ;;  %v5760_v0 = vadd.f32 %v5759_v26, %v11177_v6  ;;  %v5761_v43 = vpop.f32.mrb[119].mxu0  ;;  %v5808_v51 = vpop.f32.mrb[112].mxu1  ;;  %6351 = vmatprep.subr.bf16.mxu0 %v10911_v35  ;;  %v6624_v24 = vmax.f32 %v5756_v46, 0.0  ;;  %v12039_v46 = vld [vmem:[#allocation21_spill] sm:$0xff] }
 0x434   :  { %v5762_v42 = vadd.f32 %v5761_v43, %v11177_v6  ;;  %v5809_v62 = vadd.f32 %v5808_v51, %v11144_v16  ;;  %v5810_v44 = vpop.f32.mrb[113].mxu1  ;;  %v6625_v55 = vmax.f32 %v5758_v13, 0.0 }
 0x435   :  { %v6650_v1 = vmax.f32 %v5760_v0, 0.0  ;;  %v5811_v8 = vadd.f32 %v5810_v44, %v11144_v16  ;;  %v5812_v19 = vpop.f32.mrb[114].mxu1  ;;  %6409 = vmatpush1.bf16.msra.mxu1 %v10911_v35 }
 0x436   :  { %v6651_v61 = vmax.f32 %v5762_v42, 0.0  ;;  %v5813_v45 = vadd.f32 %v5812_v19, %v11153_v5  ;;  %v5814_v33 = vpop.f32.mrb[115].mxu1  ;;  %6352 = vmatpush1.bf16.msra.mxu0 %v12036_v17  ;;  %6410 = vmatprep.subr.bf16.mxu1 %v10940_v60  ;;  %v6574_v10 = vmax.f32 %v5809_v62, 0.0  ;;  %v12038_v17 = vld [vmem:[#allocation19_spill] sm:$0xff]  ;;  %v12040_v42 = vld [vmem:[#allocation20_spill] sm:$0xff] }
 0x437   :  { %v6728_v4 = vpack.c.bf16 %v6650_v1, %v6624_v24  ;;  %v5815_v12 = vadd.f32 %v5814_v33, %v11153_v5  ;;  %6353 = vmatprep.subr.bf16.mxu0 %v10936_v57  ;;  %v6575_v53 = vmax.f32 %v5811_v8, 0.0  ;;  %v11261_v1 = vld [vmem:[%s11983_s5 + $0x4] ss:$8 sps:$4 sm:$0xff]  }
 0x438   :  { %v11197_v49 = vpack.c.bf16 %v6651_v61, %v6625_v55  ;;  %v6600_v58 = vmax.f32 %v5813_v45, 0.0  ;;  %v12041_v55 = vld [vmem:[#allocation22_spill] sm:$0xff] }
 0x439   :  { %v6601_v9 = vmax.f32 %v5815_v12, 0.0  ;;  %6411 = vmatpush1.bf16.msra.mxu1 %v10936_v57 }
 0x43a   :  { %v11200_v39 = vpack.c.bf16 %v6600_v58, %v6574_v10  ;;  %6354 = vmatpush1.bf16.msra.mxu0 %v12037_v11  ;;  %6412 = vmatprep.subr.bf16.mxu1 %v12038_v17 }
 0x43b   :  { %v11204_v29 = vpack.c.bf16 %v6601_v9, %v6575_v53  ;;  %v5818_v54 = vpop.f32.mrb[116].mxu1  ;;  %6457 = vmatprep.subr.bf16.mxu0 %v10893_v52 }
 0x43c   :  { %v5819_v2 = vadd.f32 %v5818_v54, %v11171_v40  ;;  %v5820_v7 = vpop.f32.mrb[117].mxu1 }
 0x43d   :  { %v5821_v28 = vadd.f32 %v5820_v7, %v11171_v40  ;;  %v5822_v50 = vpop.f32.mrb[118].mxu1  ;;  %6364 = vmatmul.mubr.bf16.vlgmr.msra.gmra.mrb[168].mxu0 %v11003_v21  ;;  %6413 = vmatpush1.bf16.msra.mxu1 %v10893_v52 }
 0x43e   :  { %v5823_v15 = vadd.f32 %v5822_v50, %v11177_v6  ;;  %v5824_v11 = vpop.f32.mrb[119].mxu1  ;;  %6414 = vmatprep.subr.bf16.mxu1 %v12039_v46  ;;  %6458 = vmatpush1.bf16.msra.mxu0 %v10889_v41  ;;  %v6626_v13 = vmax.f32 %v5819_v2, 0.0 }
 0x43f   :  { %v5825_v32 = vadd.f32 %v5824_v11, %v11177_v6  ;;  %6459 = vmatprep.subr.bf16.mxu0 %v10915_v63  ;;  %8551 = vmatprep.mubr.msk.bf16.mxu0 %vm5691_vm4, %v11013_v56  ;;  %v6627_v0 = vmax.f32 %v5821_v28, 0.0 }
 0x440   :  { %v6652_v26 = vmax.f32 %v5823_v15, 0.0 }
 0x441   :  { %v6653_v43 = vmax.f32 %v5825_v32, 0.0  ;;  %6415 = vmatpush1.bf16.msra.mxu1 %v10915_v63 }
 0x442   :  { %v11219_v51 = vpack.c.bf16 %v6652_v26, %v6626_v13  ;;  %6416 = vmatprep.subr.bf16.mxu1 %v10867_v14  ;;  %6460 = vmatpush1.bf16.msra.mxu0 %v10911_v35 }
 0x443   :  { %v11223_v41 = vpack.c.bf16 %v6653_v43, %v6627_v0  ;;  %6461 = vmatprep.subr.bf16.mxu0 %v10940_v60 }
 0x445   :  { %6374 = vmatmul.mubr.bf16.gmra.mrb[172].mxu0 %v11024_v38  ;;  %6417 = vmatpush1.bf16.msra.mxu1 %v10940_v60 }
 0x446   :  { %6462 = vmatpush1.bf16.msra.mxu0 %v10936_v57  ;;  %7320 = vmatprep.subr.bf16.mxu1 %v11146_v3 }
 0x447   :  { %6463 = vmatprep.subr.bf16.mxu0 %v12038_v17  ;;  %8552 = vmatprep.mubr.msk.bf16.mxu0 %vm5691_vm4, %v11034_v59 }
 0x448   :  { %6427 = vmatmul.mubr.bf16.vlgmr.msra.gmra.mrb[168].mxu1 %v11003_v21 }
 0x449   :  { %7321 = vmatpush1.bf16.msra.mxu1 %v11141_v25  ;;  %8554 = vmatprep.mubr.msk.bf16.mxu1 %vm5691_vm4, %v11013_v56 }
 0x44a   :  { %6464 = vmatpush1.bf16.msra.mxu0 %v10893_v52  ;;  %7322 = vmatprep.subr.bf16.mxu1 %v11173_v18 }
 0x44b   :  { %6465 = vmatprep.subr.bf16.mxu0 %v12039_v46 }
 0x44d   :  { %6384 = vmatmul.mubr.bf16.gmra.mrb[176].mxu0 %v11114_v47  ;;  %7323 = vmatpush1.bf16.msra.mxu1 %v11167_v36 }
 0x44e   :  { %6466 = vmatpush1.bf16.msra.mxu0 %v10915_v63  ;;  %7324 = vmatprep.subr.bf16.mxu1 %v11197_v49 }
 0x44f   :  { %6467 = vmatprep.subr.bf16.mxu0 %v10867_v14  ;;  %8556 = vmatprep.mubr.msk.bf16.mxu0 %vm5691_vm4, %v10830_v20 }
 0x450   :  { %v5861_v35 = vpop.f32.mrb[120].mxu0  ;;  %6437 = vmatmul.mubr.bf16.gmra.mrb[172].mxu1 %v11024_v38 }
 0x451   :  { %v5862_v52 = vadd.f32 %v5861_v35, %v11123_v30  ;;  %v5863_v57 = vpop.f32.mrb[121].mxu0  ;;  %7325 = vmatpush1.bf16.msra.mxu1 %v6728_v4  ;;  %8555 = vmatprep.mubr.msk.bf16.mxu1 %vm5691_vm4, %v11034_v59 }
 0x452   :  { %v5864_v25 = vadd.f32 %v5863_v57, %v11123_v30  ;;  %v5865_v63 = vpop.f32.mrb[122].mxu0  ;;  %6468 = vmatpush1.bf16.msra.mxu0 %v10940_v60  ;;  %7326 = vmatprep.subr.bf16.mxu1 %v11179_v22 }
 0x453   :  { %v5866_v36 = vadd.f32 %v5865_v63, %v11130_v37  ;;  %v5867_v20 = vpop.f32.mrb[123].mxu0  ;;  %6469 = vmatprep.subr.bf16.mxu0 %v12040_v42  ;;  %v6524_v44 = vmax.f32 %v5862_v52, 0.0 }
 0x454   :  { %v5868_v62 = vadd.f32 %v5867_v20, %v11130_v37  ;;  %v6525_v8 = vmax.f32 %v5864_v25, 0.0 }
 0x455   :  { %v6550_v24 = vmax.f32 %v5866_v36, 0.0  ;;  %7327 = vmatpush1.bf16.msra.mxu1 %v11146_v3 }
 0x456   :  { %v6551_v60 = vmax.f32 %v5868_v62, 0.0  ;;  %6470 = vmatpush1.bf16.msra.mxu0 %v12038_v17  ;;  %7328 = vmatprep.subr.bf16.mxu1 %v11200_v39 }
 0x457   :  { %v11265_v19 = vpack.c.bf16 %v6550_v24, %v6524_v44  ;;  %6471 = vmatprep.subr.bf16.mxu0 %v12041_v55 }
 0x458   :  { %v11268_v61 = vpack.c.bf16 %v6551_v60, %v6525_v8  ;;  %v5871_v45 = vpop.f32.mrb[124].mxu0  ;;  %6447 = vmatmul.mubr.bf16.gmra.mrb[176].mxu1 %v11114_v47 }
 0x459   :  { %v5872_v3 = vadd.f32 %v5871_v45, %v11144_v16  ;;  %v5873_v33 = vpop.f32.mrb[125].mxu0  ;;  %7329 = vmatpush1.bf16.msra.mxu1 %v11173_v18  ;;  %8561 = vmatprep.mubr.msk.bf16.mxu1 %vm5691_vm4, %v11261_v1 }
 0x45a   :  { %v5874_v4 = vadd.f32 %v5873_v33, %v11144_v16  ;;  %v5875_v12 = vpop.f32.mrb[126].mxu0  ;;  %6472 = vmatpush1.bf16.msra.mxu0 %v12039_v46  ;;  %7330 = vmatprep.subr.bf16.mxu1 %v11219_v51 }
 0x45b   :  { %v5876_v10 = vadd.f32 %v5875_v12, %v11153_v5  ;;  %v5877_v58 = vpop.f32.mrb[127].mxu0  ;;  %v5924_v53 = vpop.f32.mrb[120].mxu1  ;;  %6473 = vmatprep.subr.bf16.mxu0 %v10873_v34  ;;  %v6576_v54 = vmax.f32 %v5872_v3, 0.0 }
 0x45c   :  { %v5878_v9 = vadd.f32 %v5877_v58, %v11153_v5  ;;  %v5925_v18 = vadd.f32 %v5924_v53, %v11123_v30  ;;  %v5926_v17 = vpop.f32.mrb[121].mxu1  ;;  %v6577_v50 = vmax.f32 %v5874_v4, 0.0 }
 0x45d   :  { %v6602_v2 = vmax.f32 %v5876_v10, 0.0  ;;  %v5927_v7 = vadd.f32 %v5926_v17, %v11123_v30  ;;  %v5928_v28 = vpop.f32.mrb[122].mxu1  ;;  %7331 = vmatpush1.bf16.msra.mxu1 %v11197_v49 }
 0x45e   :  { %v6603_v15 = vmax.f32 %v5878_v9, 0.0  ;;  %v5929_v11 = vadd.f32 %v5928_v28, %v11130_v37  ;;  %v5930_v46 = vpop.f32.mrb[123].mxu1  ;;  %6474 = vmatpush1.bf16.msra.mxu0 %v10867_v14  ;;  %7332 = vmatprep.subr.bf16.mxu1 %v11184_v48  ;;  %v6526_v0 = vmax.f32 %v5925_v18, 0.0 }
 0x45f   :  { %v11287_v32 = vpack.c.bf16 %v6602_v2, %v6576_v54  ;;  %v5931_v13 = vadd.f32 %v5930_v46, %v11130_v37  ;;  %6475 = vmatprep.subr.bf16.mxu0 %v10898_v27  ;;  %v6527_v35 = vmax.f32 %v5927_v7, 0.0 }
 0x460   :  { %v11291_v26 = vpack.c.bf16 %v6603_v15, %v6577_v50  ;;  %v6552_v43 = vmax.f32 %v5929_v11, 0.0  ;;  %v5881_v49 = vpop.f32.mrb[128].mxu0 }
 0x461   :  { %v6553_v52 = vmax.f32 %v5931_v13, 0.0  ;;  %v5882_v57 = vadd.f32 %v5881_v49, %v11171_v40  ;;  %v5883_v25 = vpop.f32.mrb[129].mxu0  ;;  %7333 = vmatpush1.bf16.msra.mxu1 %v11179_v22 }
 0x462   :  { %v11295_v14 = vpack.c.bf16 %v6552_v43, %v6526_v0  ;;  %v5884_v63 = vadd.f32 %v5883_v25, %v11171_v40  ;;  %v5885_v36 = vpop.f32.mrb[130].mxu0  ;;  %6476 = vmatpush1.bf16.msra.mxu0 %v12040_v42  ;;  %7334 = vmatprep.subr.bf16.mxu1 %v11204_v29 }
 0x463   :  { %v11300_v27 = vpack.c.bf16 %v6553_v52, %v6527_v35  ;;  %v5886_v20 = vadd.f32 %v5885_v36, %v11177_v6  ;;  %v5887_v62 = vpop.f32.mrb[131].mxu0  ;;  %v5934_v44 = vpop.f32.mrb[124].mxu1  ;;  %6477 = vmatprep.subr.bf16.mxu0 %v10920_v31  ;;  %v6628_v45 = vmax.f32 %v5882_v57, 0.0 }
 0x464   :  { %v5888_v24 = vadd.f32 %v5887_v62, %v11177_v6  ;;  %v5935_v8 = vadd.f32 %v5934_v44, %v11144_v16  ;;  %v5936_v60 = vpop.f32.mrb[125].mxu1  ;;  %v6629_v4 = vmax.f32 %v5884_v63, 0.0 }
 0x465   :  { %v6654_v3 = vmax.f32 %v5886_v20, 0.0  ;;  %v5937_v33 = vadd.f32 %v5936_v60, %v11144_v16  ;;  %v5938_v42 = vpop.f32.mrb[126].mxu1  ;;  %7335 = vmatpush1.bf16.msra.mxu1 %v11200_v39 }
 0x466   :  { %v6655_v12 = vmax.f32 %v5888_v24, 0.0  ;;  %v5939_v10 = vadd.f32 %v5938_v42, %v11153_v5  ;;  %v5940_v58 = vpop.f32.mrb[127].mxu1  ;;  %6478 = vmatpush1.bf16.msra.mxu0 %v12041_v55  ;;  %7336 = vmatprep.subr.bf16.mxu1 %v11223_v41  ;;  %v6578_v18 = vmax.f32 %v5935_v8, 0.0 }
 0x467   :  { %v11311_v31 = vpack.c.bf16 %v6654_v3, %v6628_v45  ;;  %v5941_v53 = vadd.f32 %v5940_v58, %v11153_v5  ;;  %6479 = vmatprep.subr.bf16.mxu0 %v10943_v23  ;;  %v6579_v54 = vmax.f32 %v5937_v33, 0.0 }
 0x468   :  { %v11315_v9 = vpack.c.bf16 %v6655_v12, %v6629_v4  ;;  %v6604_v17 = vmax.f32 %v5939_v10, 0.0 }
 0x469   :  { %v6605_v2 = vmax.f32 %v5941_v53, 0.0  ;;  %7337 = vmatpush1.bf16.msra.mxu1 %v11219_v51 }
 0x46a   :  { %v11318_v7 = vpack.c.bf16 %v6604_v17, %v6578_v18  ;;  %6480 = vmatpush1.bf16.msra.mxu0 %v10873_v34  ;;  %7338 = vmatprep.subr.bf16.mxu1 %v11265_v19 }
 0x46b   :  { %v11322_v55 = vpack.c.bf16 %v6605_v2, %v6579_v54  ;;  %v5944_v28 = vpop.f32.mrb[128].mxu1  ;;  %7363 = vmatprep.subr.bf16.mxu0 %v11184_v48 }
 0x46c   :  { %v5945_v23 = vadd.f32 %v5944_v28, %v11171_v40  ;;  %v5946_v50 = vpop.f32.mrb[129].mxu1 }
 0x46d   :  { %v5947_v15 = vadd.f32 %v5946_v50, %v11171_v40  ;;  %v5948_v11 = vpop.f32.mrb[130].mxu1  ;;  %6490 = vmatmul.mubr.bf16.vlgmr.msra.gmra.mrb[180].mxu0 %v11003_v21  ;;  %7339 = vmatpush1.bf16.msra.mxu1 %v11184_v48 }
 0x46e   :  { %v5949_v46 = vadd.f32 %v5948_v11, %v11177_v6  ;;  %v5950_v34 = vpop.f32.mrb[131].mxu1  ;;  %7340 = vmatprep.subr.bf16.mxu1 %v11287_v32  ;;  %7364 = vmatpush1.bf16.msra.mxu0 %v11179_v22  ;;  %v6630_v0 = vmax.f32 %v5945_v23, 0.0 }
 0x46f   :  { %v5951_v13 = vadd.f32 %v5950_v34, %v11177_v6  ;;  %7365 = vmatprep.subr.bf16.mxu0 %v11204_v29  ;;  %8557 = vmatprep.mubr.msk.bf16.mxu0 %vm5691_vm4, %v11013_v56  ;;  %v6631_v49 = vmax.f32 %v5947_v15, 0.0  ;;  %v11347_v56 = vld [vmem:[%s11983_s5] ss:$8 sps:$4 sm:$0xff]  }
 0x470   :  { %v6656_v43 = vmax.f32 %v5949_v46, 0.0 }
 0x471   :  { %v6657_v21 = vmax.f32 %v5951_v13, 0.0  ;;  %7341 = vmatpush1.bf16.msra.mxu1 %v11204_v29 }
 0x472   :  { %v11337_v35 = vpack.c.bf16 %v6656_v43, %v6630_v0  ;;  %7342 = vmatprep.subr.bf16.mxu1 %v11311_v31  ;;  %7366 = vmatpush1.bf16.msra.mxu0 %v11200_v39 }
 0x473   :  { %v11341_v22 = vpack.c.bf16 %v6657_v21, %v6631_v49  ;;  %7367 = vmatprep.subr.bf16.mxu0 %v11223_v41 }
 0x475   :  { %6500 = vmatmul.mubr.bf16.gmra.mrb[184].mxu0 %v11024_v38  ;;  %7343 = vmatpush1.bf16.msra.mxu1 %v11223_v41 }
 0x476   :  { %7368 = vmatpush1.bf16.msra.mxu0 %v11219_v51  ;;  %7406 = vmatprep.subr.bf16.mxu1 %v11268_v61 }
 0x477   :  { %7369 = vmatprep.subr.bf16.mxu0 %v11265_v19  ;;  %8558 = vmatprep.mubr.msk.bf16.mxu0 %vm5691_vm4, %v11034_v59 }
 0x478   :  { %7353 = vmatmul.mubr.bf16.vlgmr.msra.gmra.mrb[180].mxu1 %v11347_v56 }
 0x479   :  { %7407 = vmatpush1.bf16.msra.mxu1 %v11265_v19  ;;  %8563 = vmatprep.mubr.msk.bf16.mxu1 %vm5691_vm4, %v11261_v1 }
 0x47a   :  { %7370 = vmatpush1.bf16.msra.mxu0 %v11184_v48  ;;  %7408 = vmatprep.subr.bf16.mxu1 %v11291_v26 }
 0x47b   :  { %7371 = vmatprep.subr.bf16.mxu0 %v11287_v32 }
 0x47d   :  { %6510 = vmatmul.mubr.bf16.gmra.mrb[188].mxu0 %v11114_v47  ;;  %7409 = vmatpush1.bf16.msra.mxu1 %v11287_v32 }
 0x47e   :  { %7372 = vmatpush1.bf16.msra.mxu0 %v11204_v29  ;;  %7410 = vmatprep.subr.bf16.mxu1 %v11315_v9 }
 0x47f   :  { %7373 = vmatprep.subr.bf16.mxu0 %v11311_v31  ;;  %8562 = vmatprep.mubr.msk.bf16.mxu0 %vm5691_vm4, %v11261_v1 }
 0x480   :  { %v5987_v38 = vpop.f32.mrb[132].mxu0 }
 0x481   :  { %v5988_v59 = vadd.f32 %v5987_v38, %v11123_v30  ;;  %v5989_v48 = vpop.f32.mrb[133].mxu0  ;;  %7411 = vmatpush1.bf16.msra.mxu1 %v11311_v31 }
 0x482   :  { %v5990_v39 = vadd.f32 %v5989_v48, %v11123_v30  ;;  %v5991_v47 = vpop.f32.mrb[134].mxu0  ;;  %7374 = vmatpush1.bf16.msra.mxu0 %v11223_v41  ;;  %7412 = vmatprep.subr.bf16.mxu1 %v11295_v14 }
 0x483   :  { %v5992_v29 = vadd.f32 %v5991_v47, %v11130_v37  ;;  %v5993_v51 = vpop.f32.mrb[135].mxu0  ;;  %7375 = vmatprep.subr.bf16.mxu0 %v11268_v61  ;;  %v6528_v57 = vmax.f32 %v5988_v59, 0.0 }
 0x484   :  { %v5994_v52 = vadd.f32 %v5993_v51, %v11130_v37  ;;  %v6529_v63 = vmax.f32 %v5990_v39, 0.0 }
 0x485   :  { %v6554_v25 = vmax.f32 %v5992_v29, 0.0  ;;  %7413 = vmatpush1.bf16.msra.mxu1 %v11268_v61 }
 0x486   :  { %v6555_v36 = vmax.f32 %v5994_v52, 0.0  ;;  %7376 = vmatpush1.bf16.msra.mxu0 %v11265_v19  ;;  %7414 = vmatprep.subr.bf16.mxu1 %v11318_v7 }
 0x487   :  { %v11381_v41 = vpack.c.bf16 %v6554_v25, %v6528_v57  ;;  %7377 = vmatprep.subr.bf16.mxu0 %v11291_v26 }
 0x488   :  { %v11384_v20 = vpack.c.bf16 %v6555_v36, %v6529_v63  ;;  %v5997_v62 = vpop.f32.mrb[136].mxu0 }
 0x489   :  { %v5998_v44 = vadd.f32 %v5997_v62, %v11144_v16  ;;  %v5999_v24 = vpop.f32.mrb[137].mxu0  ;;  %7415 = vmatpush1.bf16.msra.mxu1 %v11291_v26 }
 0x48a   :  { %v6000_v8 = vadd.f32 %v5999_v24, %v11144_v16  ;;  %v6001_v60 = vpop.f32.mrb[138].mxu0  ;;  %7378 = vmatpush1.bf16.msra.mxu0 %v11287_v32  ;;  %7416 = vmatprep.subr.bf16.mxu1 %v11337_v35 }
 0x48b   :  { %v6002_v19 = vadd.f32 %v6001_v60, %v11153_v5  ;;  %v6003_v45 = vpop.f32.mrb[139].mxu0  ;;  %v6050_v3 = vpop.f32.mrb[132].mxu1  ;;  %7379 = vmatprep.subr.bf16.mxu0 %v11315_v9  ;;  %v6580_v12 = vmax.f32 %v5998_v44, 0.0 }
 0x48c   :  { %v6004_v33 = vadd.f32 %v6003_v45, %v11153_v5  ;;  %v6051_v42 = vadd.f32 %v6050_v3, %v11123_v30  ;;  %v6052_v4 = vpop.f32.mrb[133].mxu1  ;;  %v6581_v32 = vmax.f32 %v6000_v8, 0.0 }
 0x48d   :  { %v6606_v10 = vmax.f32 %v6002_v19, 0.0  ;;  %v6053_v58 = vadd.f32 %v6052_v4, %v11123_v30  ;;  %v6054_v53 = vpop.f32.mrb[134].mxu1  ;;  %7417 = vmatpush1.bf16.msra.mxu1 %v11315_v9 }
 0x48e   :  { %v6607_v18 = vmax.f32 %v6004_v33, 0.0  ;;  %v6055_v17 = vadd.f32 %v6054_v53, %v11130_v37  ;;  %v6056_v54 = vpop.f32.mrb[135].mxu1  ;;  %7380 = vmatpush1.bf16.msra.mxu0 %v11311_v31  ;;  %7418 = vmatprep.subr.bf16.mxu1 %v11300_v27  ;;  %v6530_v50 = vmax.f32 %v6051_v42, 0.0 }
 0x48f   :  { %v11400_v2 = vpack.c.bf16 %v6606_v10, %v6580_v12  ;;  %v6057_v28 = vadd.f32 %v6056_v54, %v11130_v37  ;;  %7381 = vmatprep.subr.bf16.mxu0 %v11295_v14  ;;  %v6531_v46 = vmax.f32 %v6053_v58, 0.0 }
 0x490   :  { %v11404_v23 = vpack.c.bf16 %v6607_v18, %v6581_v32  ;;  %v6556_v15 = vmax.f32 %v6055_v17, 0.0  ;;  %v6007_v11 = vpop.f32.mrb[140].mxu0 }
 0x491   :  { %v6557_v34 = vmax.f32 %v6057_v28, 0.0  ;;  %v6008_v13 = vadd.f32 %v6007_v11, %v11171_v40  ;;  %v6009_v0 = vpop.f32.mrb[141].mxu0  ;;  %7419 = vmatpush1.bf16.msra.mxu1 %v11295_v14 }
 0x492   :  { %v11408_v31 = vpack.c.bf16 %v6556_v15, %v6530_v50  ;;  %v6010_v43 = vadd.f32 %v6009_v0, %v11171_v40  ;;  %v6011_v49 = vpop.f32.mrb[142].mxu0  ;;  %7382 = vmatpush1.bf16.msra.mxu0 %v11268_v61  ;;  %7420 = vmatprep.subr.bf16.mxu1 %v11322_v55 }
 0x493   :  { %v11413_v21 = vpack.c.bf16 %v6557_v34, %v6531_v46  ;;  %v6012_v38 = vadd.f32 %v6011_v49, %v11177_v6  ;;  %v6013_v59 = vpop.f32.mrb[143].mxu0  ;;  %v6060_v48 = vpop.f32.mrb[136].mxu1  ;;  %7383 = vmatprep.subr.bf16.mxu0 %v11318_v7  ;;  %v6632_v51 = vmax.f32 %v6008_v13, 0.0 }
 0x494   :  { %v6014_v39 = vadd.f32 %v6013_v59, %v11177_v6  ;;  %v6061_v47 = vadd.f32 %v6060_v48, %v11144_v16  ;;  %v6062_v29 = vpop.f32.mrb[137].mxu1  ;;  %v6633_v25 = vmax.f32 %v6010_v43, 0.0 }
 0x495   :  { %v6658_v52 = vmax.f32 %v6012_v38, 0.0  ;;  %v6063_v57 = vadd.f32 %v6062_v29, %v11144_v16  ;;  %v6064_v61 = vpop.f32.mrb[138].mxu1  ;;  %7421 = vmatpush1.bf16.msra.mxu1 %v11318_v7 }
 0x496   :  { %v6659_v63 = vmax.f32 %v6014_v39, 0.0  ;;  %v6065_v36 = vadd.f32 %v6064_v61, %v11153_v5  ;;  %v6066_v62 = vpop.f32.mrb[139].mxu1  ;;  %7384 = vmatpush1.bf16.msra.mxu0 %v11291_v26  ;;  %7422 = vmatprep.subr.bf16.mxu1 %v11341_v22  ;;  %v6582_v60 = vmax.f32 %v6061_v47, 0.0 }
 0x497   :  { %v11424_v44 = vpack.c.bf16 %v6658_v52, %v6632_v51  ;;  %v6067_v24 = vadd.f32 %v6066_v62, %v11153_v5  ;;  %7385 = vmatprep.subr.bf16.mxu0 %v11337_v35  ;;  %v6583_v45 = vmax.f32 %v6063_v57, 0.0 }
 0x498   :  { %v11428_v8 = vpack.c.bf16 %v6659_v63, %v6633_v25  ;;  %v6608_v19 = vmax.f32 %v6065_v36, 0.0 }
 0x499   :  { %v6609_v3 = vmax.f32 %v6067_v24, 0.0  ;;  %7423 = vmatpush1.bf16.msra.mxu1 %v11337_v35 }
 0x49a   :  { %v11431_v33 = vpack.c.bf16 %v6608_v19, %v6582_v60  ;;  %7386 = vmatpush1.bf16.msra.mxu0 %v11315_v9  ;;  %7424 = vmatprep.subr.bf16.mxu1 %v11381_v41 }
 0x49b   :  { %v11435_v26 = vpack.c.bf16 %v6609_v3, %v6583_v45  ;;  %v6070_v42 = vpop.f32.mrb[140].mxu1  ;;  %7449 = vmatprep.subr.bf16.mxu0 %v11300_v27 }
 0x49c   :  { %v6071_v4 = vadd.f32 %v6070_v42, %v11171_v40  ;;  %v6072_v12 = vpop.f32.mrb[141].mxu1 }
 0x49d   :  { %v6073_v10 = vadd.f32 %v6072_v12, %v11171_v40  ;;  %v6074_v58 = vpop.f32.mrb[142].mxu1  ;;  %7396 = vmatmul.mubr.bf16.vlgmr.msra.gmra.mrb[192].mxu0 %v11347_v56  ;;  %7425 = vmatpush1.bf16.msra.mxu1 %v11300_v27 }
 0x49e   :  { %v6075_v53 = vadd.f32 %v6074_v58, %v11177_v6  ;;  %v6076_v9 = vpop.f32.mrb[143].mxu1  ;;  %7426 = vmatprep.subr.bf16.mxu1 %v11400_v2  ;;  %7450 = vmatpush1.bf16.msra.mxu0 %v11295_v14  ;;  %v6634_v18 = vmax.f32 %v6071_v4, 0.0 }
 0x49f   :  { %v6077_v32 = vadd.f32 %v6076_v9, %v11177_v6  ;;  %7451 = vmatprep.subr.bf16.mxu0 %v11322_v55  ;;  %8564 = vmatprep.mubr.msk.bf16.mxu0 %vm5691_vm4, %v11261_v1  ;;  %v6635_v54 = vmax.f32 %v6073_v10, 0.0 }
 0x4a0   :  { %v6660_v17 = vmax.f32 %v6075_v53, 0.0 }
 0x4a1   :  { %v6661_v28 = vmax.f32 %v6077_v32, 0.0  ;;  %7427 = vmatpush1.bf16.msra.mxu1 %v11322_v55 }
 0x4a2   :  { %v11450_v50 = vpack.c.bf16 %v6660_v17, %v6634_v18  ;;  %7428 = vmatprep.subr.bf16.mxu1 %v11424_v44  ;;  %7452 = vmatpush1.bf16.msra.mxu0 %v11318_v7 }
 0x4a3   :  { %v11454_v14 = vpack.c.bf16 %v6661_v28, %v6635_v54  ;;  %7453 = vmatprep.subr.bf16.mxu0 %v11341_v22 }
 0x4a5   :  { %7429 = vmatpush1.bf16.msra.mxu1 %v11341_v22 }
 0x4a6   :  { %7454 = vmatpush1.bf16.msra.mxu0 %v11337_v35  ;;  %7492 = vmatprep.subr.bf16.mxu1 %v11384_v20 }
 0x4a7   :  { %7455 = vmatprep.subr.bf16.mxu0 %v11381_v41 }
 0x4a8   :  { %7439 = vmatmul.mubr.bf16.vlgmr.msra.gmra.mrb[184].mxu1 %v11347_v56 }
 0x4a9   :  { %7493 = vmatpush1.bf16.msra.mxu1 %v11381_v41  ;;  %8565 = vmatprep.mubr.msk.bf16.mxu1 %vm5691_vm4, %v11261_v1 }
 0x4aa   :  { %7456 = vmatpush1.bf16.msra.mxu0 %v11300_v27  ;;  %7494 = vmatprep.subr.bf16.mxu1 %v11404_v23 }
 0x4ab   :  { %7457 = vmatprep.subr.bf16.mxu0 %v11400_v2 }
 0x4ad   :  { %7495 = vmatpush1.bf16.msra.mxu1 %v11400_v2 }
 0x4ae   :  { %7458 = vmatpush1.bf16.msra.mxu0 %v11322_v55  ;;  %7496 = vmatprep.subr.bf16.mxu1 %v11428_v8 }
 0x4af   :  { %7459 = vmatprep.subr.bf16.mxu0 %v11424_v44 }
 0x4b0   :  { %v6113_v7 = vpop.f32.mrb[144].mxu0 }
 0x4b1   :  { %v6114_v35 = vadd.f32 %v6113_v7, %v11123_v30  ;;  %v6115_v15 = vpop.f32.mrb[145].mxu0  ;;  %7497 = vmatpush1.bf16.msra.mxu1 %v11424_v44 }
 0x4b2   :  { %v6116_v27 = vadd.f32 %v6115_v15, %v11123_v30  ;;  %v6117_v11 = vpop.f32.mrb[146].mxu0  ;;  %7460 = vmatpush1.bf16.msra.mxu0 %v11341_v22  ;;  %7498 = vmatprep.subr.bf16.mxu1 %v11408_v31 }
 0x4b3   :  { %v6118_v46 = vadd.f32 %v6117_v11, %v11130_v37  ;;  %v6119_v55 = vpop.f32.mrb[147].mxu0  ;;  %7461 = vmatprep.subr.bf16.mxu0 %v11384_v20  ;;  %v6532_v13 = vmax.f32 %v6114_v35, 0.0 }
 0x4b4   :  { %v6120_v34 = vadd.f32 %v6119_v55, %v11130_v37  ;;  %v6533_v43 = vmax.f32 %v6116_v27, 0.0 }
 0x4b5   :  { %v6558_v0 = vmax.f32 %v6118_v46, 0.0  ;;  %7499 = vmatpush1.bf16.msra.mxu1 %v11384_v20 }
 0x4b6   :  { %v6559_v49 = vmax.f32 %v6120_v34, 0.0  ;;  %7462 = vmatpush1.bf16.msra.mxu0 %v11381_v41  ;;  %7500 = vmatprep.subr.bf16.mxu1 %v11431_v33 }
 0x4b7   :  { %v11483_v22 = vpack.c.bf16 %v6558_v0, %v6532_v13  ;;  %7463 = vmatprep.subr.bf16.mxu0 %v11404_v23 }
 0x4b8   :  { %v11486_v38 = vpack.c.bf16 %v6559_v49, %v6533_v43  ;;  %v6123_v59 = vpop.f32.mrb[148].mxu0 }
 0x4b9   :  { %v6124_v48 = vadd.f32 %v6123_v59, %v11144_v16  ;;  %v6125_v39 = vpop.f32.mrb[149].mxu0  ;;  %7501 = vmatpush1.bf16.msra.mxu1 %v11404_v23 }
 0x4ba   :  { %v6126_v47 = vadd.f32 %v6125_v39, %v11144_v16  ;;  %v6127_v29 = vpop.f32.mrb[150].mxu0  ;;  %7464 = vmatpush1.bf16.msra.mxu0 %v11400_v2  ;;  %7502 = vmatprep.subr.bf16.mxu1 %v11450_v50 }
 0x4bb   :  { %v6128_v41 = vadd.f32 %v6127_v29, %v11153_v5  ;;  %v6129_v51 = vpop.f32.mrb[151].mxu0  ;;  %v6176_v52 = vpop.f32.mrb[144].mxu1  ;;  %7465 = vmatprep.subr.bf16.mxu0 %v11428_v8  ;;  %v6584_v63 = vmax.f32 %v6124_v48, 0.0 }
 0x4bc   :  { %v6130_v57 = vadd.f32 %v6129_v51, %v11153_v5  ;;  %v6177_v61 = vadd.f32 %v6176_v52, %v11123_v30  ;;  %v6178_v25 = vpop.f32.mrb[145].mxu1  ;;  %v6585_v2 = vmax.f32 %v6126_v47, 0.0 }
 0x4bd   :  { %v6610_v36 = vmax.f32 %v6128_v41, 0.0  ;;  %v6179_v62 = vadd.f32 %v6178_v25, %v11123_v30  ;;  %v6180_v24 = vpop.f32.mrb[146].mxu1  ;;  %7503 = vmatpush1.bf16.msra.mxu1 %v11428_v8 }
 0x4be   :  { %v6611_v60 = vmax.f32 %v6130_v57, 0.0  ;;  %v6181_v19 = vadd.f32 %v6180_v24, %v11130_v37  ;;  %v6182_v45 = vpop.f32.mrb[147].mxu1  ;;  %7466 = vmatpush1.bf16.msra.mxu0 %v11424_v44  ;;  %7504 = vmatprep.subr.bf16.mxu1 %v11413_v21  ;;  %v6534_v12 = vmax.f32 %v6177_v61, 0.0 }
 0x4bf   :  { %v11502_v3 = vpack.c.bf16 %v6610_v36, %v6584_v63  ;;  %v6183_v42 = vadd.f32 %v6182_v45, %v11130_v37  ;;  %7467 = vmatprep.subr.bf16.mxu0 %v11408_v31  ;;  %v6535_v53 = vmax.f32 %v6179_v62, 0.0 }
 0x4c0   :  { %v11506_v4 = vpack.c.bf16 %v6611_v60, %v6585_v2  ;;  %v6560_v10 = vmax.f32 %v6181_v19, 0.0  ;;  %v6133_v58 = vpop.f32.mrb[152].mxu0 }
 0x4c1   :  { %v6561_v9 = vmax.f32 %v6183_v42, 0.0  ;;  %v6134_v32 = vadd.f32 %v6133_v58, %v11171_v40  ;;  %v6135_v18 = vpop.f32.mrb[153].mxu0  ;;  %7505 = vmatpush1.bf16.msra.mxu1 %v11408_v31 }
 0x4c2   :  { %v11510_v44 = vpack.c.bf16 %v6560_v10, %v6534_v12  ;;  %v6136_v17 = vadd.f32 %v6135_v18, %v11171_v40  ;;  %v6137_v54 = vpop.f32.mrb[154].mxu0  ;;  %7468 = vmatpush1.bf16.msra.mxu0 %v11384_v20  ;;  %7506 = vmatprep.subr.bf16.mxu1 %v11435_v26 }
 0x4c3   :  { %v11515_v28 = vpack.c.bf16 %v6561_v9, %v6535_v53  ;;  %v6138_v7 = vadd.f32 %v6137_v54, %v11177_v6  ;;  %v6139_v35 = vpop.f32.mrb[155].mxu0  ;;  %v6186_v15 = vpop.f32.mrb[148].mxu1  ;;  %7469 = vmatprep.subr.bf16.mxu0 %v11431_v33  ;;  %v6636_v55 = vmax.f32 %v6134_v32, 0.0 }
 0x4c4   :  { %v6140_v27 = vadd.f32 %v6139_v35, %v11177_v6  ;;  %v6187_v11 = vadd.f32 %v6186_v15, %v11144_v16  ;;  %v6188_v46 = vpop.f32.mrb[149].mxu1  ;;  %v6637_v0 = vmax.f32 %v6136_v17, 0.0 }
 0x4c5   :  { %v6662_v34 = vmax.f32 %v6138_v7, 0.0  ;;  %v6189_v13 = vadd.f32 %v6188_v46, %v11144_v16  ;;  %v6190_v20 = vpop.f32.mrb[150].mxu1  ;;  %7507 = vmatpush1.bf16.msra.mxu1 %v11431_v33 }
 0x4c6   :  { %v6663_v43 = vmax.f32 %v6140_v27, 0.0  ;;  %v6191_v49 = vadd.f32 %v6190_v20, %v11153_v5  ;;  %v6192_v59 = vpop.f32.mrb[151].mxu1  ;;  %7470 = vmatpush1.bf16.msra.mxu0 %v11404_v23  ;;  %7508 = vmatprep.subr.bf16.mxu1 %v11454_v14  ;;  %v6586_v29 = vmax.f32 %v6187_v11, 0.0 }
 0x4c7   :  { %v11526_v48 = vpack.c.bf16 %v6662_v34, %v6636_v55  ;;  %v6193_v39 = vadd.f32 %v6192_v59, %v11153_v5  ;;  %7471 = vmatprep.subr.bf16.mxu0 %v11450_v50  ;;  %v6587_v51 = vmax.f32 %v6189_v13, 0.0 }
 0x4c8   :  { %v11530_v47 = vpack.c.bf16 %v6663_v43, %v6637_v0  ;;  %v6612_v41 = vmax.f32 %v6191_v49, 0.0 }
 0x4c9   :  { %v6613_v52 = vmax.f32 %v6193_v39, 0.0  ;;  %7509 = vmatpush1.bf16.msra.mxu1 %v11450_v50 }
 0x4ca   :  { %v11533_v57 = vpack.c.bf16 %v6612_v41, %v6586_v29  ;;  %7472 = vmatpush1.bf16.msra.mxu0 %v11428_v8  ;;  %7510 = vmatprep.subr.bf16.mxu1 %v11483_v22 }
 0x4cb   :  { %v11537_v23 = vpack.c.bf16 %v6613_v52, %v6587_v51  ;;  %v6196_v61 = vpop.f32.mrb[152].mxu1  ;;  %7535 = vmatprep.subr.bf16.mxu0 %v11413_v21 }
 0x4cc   :  { %v6197_v25 = vadd.f32 %v6196_v61, %v11171_v40  ;;  %v6198_v63 = vpop.f32.mrb[153].mxu1 }
 0x4cd   :  { %v6199_v36 = vadd.f32 %v6198_v63, %v11171_v40  ;;  %v6200_v62 = vpop.f32.mrb[154].mxu1  ;;  %7482 = vmatmul.mubr.bf16.vlgmr.msra.gmra.mrb[196].mxu0 %v11347_v56  ;;  %7511 = vmatpush1.bf16.msra.mxu1 %v11413_v21 }
 0x4ce   :  { %v6201_v24 = vadd.f32 %v6200_v62, %v11177_v6  ;;  %v6202_v8 = vpop.f32.mrb[155].mxu1  ;;  %7512 = vmatprep.subr.bf16.mxu1 %v11502_v3  ;;  %7536 = vmatpush1.bf16.msra.mxu0 %v11408_v31  ;;  %v6638_v60 = vmax.f32 %v6197_v25, 0.0 }
 0x4cf   :  { %v6203_v2 = vadd.f32 %v6202_v8, %v11177_v6  ;;  %7537 = vmatprep.subr.bf16.mxu0 %v11435_v26  ;;  %8566 = vmatprep.mubr.msk.bf16.mxu0 %vm5691_vm4, %v11261_v1  ;;  %v6639_v45 = vmax.f32 %v6199_v36, 0.0 }
 0x4d0   :  { %v6664_v19 = vmax.f32 %v6201_v24, 0.0 }
 0x4d1   :  { %v6665_v42 = vmax.f32 %v6203_v2, 0.0  ;;  %7513 = vmatpush1.bf16.msra.mxu1 %v11435_v26 }
 0x4d2   :  { %v11552_v12 = vpack.c.bf16 %v6664_v19, %v6638_v60  ;;  %7514 = vmatprep.subr.bf16.mxu1 %v11526_v48  ;;  %7538 = vmatpush1.bf16.msra.mxu0 %v11431_v33 }
 0x4d3   :  { %v11556_v31 = vpack.c.bf16 %v6665_v42, %v6639_v45  ;;  %7539 = vmatprep.subr.bf16.mxu0 %v11454_v14 }
 0x4d5   :  { %7515 = vmatpush1.bf16.msra.mxu1 %v11454_v14 }
 0x4d6   :  { %7540 = vmatpush1.bf16.msra.mxu0 %v11450_v50  ;;  %7578 = vmatprep.subr.bf16.mxu1 %v11486_v38 }
 0x4d7   :  { %7541 = vmatprep.subr.bf16.mxu0 %v11483_v22 }
 0x4d8   :  { %7525 = vmatmul.mubr.bf16.vlgmr.msra.gmra.mrb[188].mxu1 %v11347_v56 }
 0x4d9   :  { %7579 = vmatpush1.bf16.msra.mxu1 %v11483_v22  ;;  %8567 = vmatprep.mubr.msk.bf16.mxu1 %vm5691_vm4, %v11261_v1 }
 0x4da   :  { %7542 = vmatpush1.bf16.msra.mxu0 %v11413_v21  ;;  %7580 = vmatprep.subr.bf16.mxu1 %v11506_v4 }
 0x4db   :  { %7543 = vmatprep.subr.bf16.mxu0 %v11502_v3 }
 0x4dd   :  { %7581 = vmatpush1.bf16.msra.mxu1 %v11502_v3 }
 0x4de   :  { %7544 = vmatpush1.bf16.msra.mxu0 %v11435_v26  ;;  %7582 = vmatprep.subr.bf16.mxu1 %v11530_v47 }
 0x4df   :  { %7545 = vmatprep.subr.bf16.mxu0 %v11526_v48 }
 0x4e0   :  { %v6239_v33 = vpop.f32.mrb[156].mxu0 }
 0x4e1   :  { %v6240_v50 = vadd.f32 %v6239_v33, %v11123_v30  ;;  %v6241_v10 = vpop.f32.mrb[157].mxu0  ;;  %7583 = vmatpush1.bf16.msra.mxu1 %v11526_v48 }
 0x4e2   :  { %v6242_v1 = vadd.f32 %v6241_v10, %v11123_v30  ;;  %v6243_v21 = vpop.f32.mrb[158].mxu0  ;;  %7546 = vmatpush1.bf16.msra.mxu0 %v11454_v14  ;;  %7584 = vmatprep.subr.bf16.mxu1 %v11510_v44 }
 0x4e3   :  { %v6244_v58 = vadd.f32 %v6243_v21, %v11130_v37  ;;  %v6245_v26 = vpop.f32.mrb[159].mxu0  ;;  %7547 = vmatprep.subr.bf16.mxu0 %v11486_v38  ;;  %v6536_v9 = vmax.f32 %v6240_v50, 0.0 }
 0x4e4   :  { %v6246_v53 = vadd.f32 %v6245_v26, %v11130_v37  ;;  %v6537_v18 = vmax.f32 %v6242_v1, 0.0 }
 0x4e5   :  { %v6562_v32 = vmax.f32 %v6244_v58, 0.0  ;;  %7585 = vmatpush1.bf16.msra.mxu1 %v11486_v38 }
 0x4e6   :  { %v6563_v17 = vmax.f32 %v6246_v53, 0.0  ;;  %7548 = vmatpush1.bf16.msra.mxu0 %v11483_v22  ;;  %7586 = vmatprep.subr.bf16.mxu1 %v11533_v57 }
 0x4e7   :  { %v11585_v14 = vpack.c.bf16 %v6562_v32, %v6536_v9  ;;  %7549 = vmatprep.subr.bf16.mxu0 %v11506_v4 }
 0x4e8   :  { %v11588_v54 = vpack.c.bf16 %v6563_v17, %v6537_v18  ;;  %v6249_v7 = vpop.f32.mrb[160].mxu0 }
 0x4e9   :  { %v6250_v35 = vadd.f32 %v6249_v7, %v11144_v16  ;;  %v6251_v15 = vpop.f32.mrb[161].mxu0  ;;  %7587 = vmatpush1.bf16.msra.mxu1 %v11506_v4 }
 0x4ea   :  { %v6252_v27 = vadd.f32 %v6251_v15, %v11144_v16  ;;  %v6253_v11 = vpop.f32.mrb[162].mxu0  ;;  %7550 = vmatpush1.bf16.msra.mxu0 %v11502_v3  ;;  %7588 = vmatprep.subr.bf16.mxu1 %v11552_v12 }
 0x4eb   :  { %v6254_v22 = vadd.f32 %v6253_v11, %v11153_v5  ;;  %v6255_v46 = vpop.f32.mrb[163].mxu0  ;;  %v6302_v55 = vpop.f32.mrb[156].mxu1  ;;  %7551 = vmatprep.subr.bf16.mxu0 %v11530_v47  ;;  %v6588_v0 = vmax.f32 %v6250_v35, 0.0 }
 0x4ec   :  { %v6256_v34 = vadd.f32 %v6255_v46, %v11153_v5  ;;  %v6303_v13 = vadd.f32 %v6302_v55, %v11123_v30  ;;  %v6304_v20 = vpop.f32.mrb[157].mxu1  ;;  %v6589_v3 = vmax.f32 %v6252_v27, 0.0 }
 0x4ed   :  { %v6614_v43 = vmax.f32 %v6254_v22, 0.0  ;;  %v6305_v49 = vadd.f32 %v6304_v20, %v11123_v30  ;;  %v6306_v59 = vpop.f32.mrb[158].mxu1  ;;  %7589 = vmatpush1.bf16.msra.mxu1 %v11530_v47 }
 0x4ee   :  { %v6615_v39 = vmax.f32 %v6256_v34, 0.0  ;;  %v6307_v29 = vadd.f32 %v6306_v59, %v11130_v37  ;;  %v6308_v41 = vpop.f32.mrb[159].mxu1  ;;  %7552 = vmatpush1.bf16.msra.mxu0 %v11526_v48  ;;  %7590 = vmatprep.subr.bf16.mxu1 %v11515_v28  ;;  %v6538_v25 = vmax.f32 %v6303_v13, 0.0 }
 0x4ef   :  { %v11604_v51 = vpack.c.bf16 %v6614_v43, %v6588_v0  ;;  %v6309_v52 = vadd.f32 %v6308_v41, %v11130_v37  ;;  %7553 = vmatprep.subr.bf16.mxu0 %v11510_v44  ;;  %v6539_v62 = vmax.f32 %v6305_v49, 0.0 }
 0x4f0   :  { %v11608_v61 = vpack.c.bf16 %v6615_v39, %v6589_v3  ;;  %v6564_v63 = vmax.f32 %v6307_v29, 0.0  ;;  %v6259_v36 = vpop.f32.mrb[164].mxu0  ;;  %v11654_v3 = vld [vmem:[%s11983_s5 + $0x4] ss:$8 sps:$4 sm:$0xff]  }
 0x4f1   :  { %v6565_v24 = vmax.f32 %v6309_v52, 0.0  ;;  %v6260_v8 = vadd.f32 %v6259_v36, %v11171_v40  ;;  %v6261_v2 = vpop.f32.mrb[165].mxu0  ;;  %7591 = vmatpush1.bf16.msra.mxu1 %v11510_v44 }
 0x4f2   :  { %v11612_v48 = vpack.c.bf16 %v6564_v63, %v6538_v25  ;;  %v6262_v60 = vadd.f32 %v6261_v2, %v11171_v40  ;;  %v6263_v19 = vpop.f32.mrb[166].mxu0  ;;  %7554 = vmatpush1.bf16.msra.mxu0 %v11486_v38  ;;  %7592 = vmatprep.subr.bf16.mxu1 %v11537_v23 }
 0x4f3   :  { %v11617_v45 = vpack.c.bf16 %v6565_v24, %v6539_v62  ;;  %v6264_v42 = vadd.f32 %v6263_v19, %v11177_v6  ;;  %v6265_v33 = vpop.f32.mrb[167].mxu0  ;;  %v6312_v50 = vpop.f32.mrb[160].mxu1  ;;  %7555 = vmatprep.subr.bf16.mxu0 %v11533_v57  ;;  %v6640_v58 = vmax.f32 %v6260_v8, 0.0 }
 0x4f4   :  { %v6266_v10 = vadd.f32 %v6265_v33, %v11177_v6  ;;  %v6313_v1 = vadd.f32 %v6312_v50, %v11144_v16  ;;  %v6314_v21 = vpop.f32.mrb[161].mxu1  ;;  %v6641_v9 = vmax.f32 %v6262_v60, 0.0 }
 0x4f5   :  { %v6666_v26 = vmax.f32 %v6264_v42, 0.0  ;;  %v6315_v53 = vadd.f32 %v6314_v21, %v11144_v16  ;;  %v6316_v38 = vpop.f32.mrb[162].mxu1  ;;  %7593 = vmatpush1.bf16.msra.mxu1 %v11533_v57 }
 0x4f6   :  { %v6667_v32 = vmax.f32 %v6266_v10, 0.0  ;;  %v6317_v18 = vadd.f32 %v6316_v38, %v11153_v5  ;;  %v6318_v17 = vpop.f32.mrb[163].mxu1  ;;  %7556 = vmatpush1.bf16.msra.mxu0 %v11506_v4  ;;  %7594 = vmatprep.subr.bf16.mxu1 %v11556_v31  ;;  %v6590_v27 = vmax.f32 %v6313_v1, 0.0 }
 0x4f7   :  { %v11628_v7 = vpack.c.bf16 %v6666_v26, %v6640_v58  ;;  %v6319_v35 = vadd.f32 %v6318_v17, %v11153_v5  ;;  %7557 = vmatprep.subr.bf16.mxu0 %v11552_v12  ;;  %v6591_v22 = vmax.f32 %v6315_v53, 0.0 }
 0x4f8   :  { %v11632_v15 = vpack.c.bf16 %v6667_v32, %v6641_v9  ;;  %v6616_v11 = vmax.f32 %v6317_v18, 0.0 }
 0x4f9   :  { %v6617_v46 = vmax.f32 %v6319_v35, 0.0  ;;  %7595 = vmatpush1.bf16.msra.mxu1 %v11552_v12 }
 0x4fa   :  { %v11635_v55 = vpack.c.bf16 %v6616_v11, %v6590_v27  ;;  %7558 = vmatpush1.bf16.msra.mxu0 %v11530_v47  ;;  %7596 = vmatprep.subr.bf16.mxu1 %v11585_v14 }
 0x4fb   :  { %v11639_v4 = vpack.c.bf16 %v6617_v46, %v6591_v22  ;;  %v6322_v34 = vpop.f32.mrb[164].mxu1  ;;  %7621 = vmatprep.subr.bf16.mxu0 %v11515_v28 }
 0x4fc   :  { %v6323_v13 = vadd.f32 %v6322_v34, %v11171_v40  ;;  %v6324_v20 = vpop.f32.mrb[165].mxu1 }
 0x4fd   :  { %v6325_v0 = vadd.f32 %v6324_v20, %v11171_v40  ;;  %v6326_v43 = vpop.f32.mrb[166].mxu1  ;;  %7568 = vmatmul.mubr.bf16.vlgmr.msra.gmra.mrb[200].mxu0 %v11347_v56  ;;  %7597 = vmatpush1.bf16.msra.mxu1 %v11515_v28 }
 0x4fe   :  { %v6327_v49 = vadd.f32 %v6326_v43, %v11177_v6  ;;  %v6328_v47 = vpop.f32.mrb[167].mxu1  ;;  %7598 = vmatprep.subr.bf16.mxu1 %v11604_v51  ;;  %7622 = vmatpush1.bf16.msra.mxu0 %v11510_v44  ;;  %v6642_v39 = vmax.f32 %v6323_v13, 0.0 }
 0x4ff   :  { %v6329_v59 = vadd.f32 %v6328_v47, %v11177_v6  ;;  %7623 = vmatprep.subr.bf16.mxu0 %v11537_v23  ;;  %8568 = vmatprep.mubr.msk.bf16.mxu0 %vm5691_vm4, %v11654_v3  ;;  %v6643_v41 = vmax.f32 %v6325_v0, 0.0 }
 0x500   :  { %v6668_v29 = vmax.f32 %v6327_v49, 0.0 }
 0x501   :  { %v6669_v52 = vmax.f32 %v6329_v59, 0.0  ;;  %7599 = vmatpush1.bf16.msra.mxu1 %v11537_v23 }
 0x502   :  { %v11659_v25 = vpack.c.bf16 %v6668_v29, %v6642_v39  ;;  %7600 = vmatprep.subr.bf16.mxu1 %v11628_v7  ;;  %7624 = vmatpush1.bf16.msra.mxu0 %v11533_v57 }
 0x503   :  { %v11663_v44 = vpack.c.bf16 %v6669_v52, %v6643_v41  ;;  %7625 = vmatprep.subr.bf16.mxu0 %v11556_v31 }
 0x505   :  { %7601 = vmatpush1.bf16.msra.mxu1 %v11556_v31 }
 0x506   :  { %7626 = vmatpush1.bf16.msra.mxu0 %v11552_v12  ;;  %7664 = vmatprep.subr.bf16.mxu1 %v11588_v54 }
 0x507   :  { %7627 = vmatprep.subr.bf16.mxu0 %v11585_v14 }
 0x508   :  { %7611 = vmatmul.mubr.bf16.vlgmr.msra.gmra.mrb[192].mxu1 %v11347_v56 }
 0x509   :  { %7665 = vmatpush1.bf16.msra.mxu1 %v11585_v14  ;;  %8569 = vmatprep.mubr.msk.bf16.mxu1 %vm5691_vm4, %v11654_v3 }
 0x50a   :  { %7628 = vmatpush1.bf16.msra.mxu0 %v11515_v28  ;;  %7666 = vmatprep.subr.bf16.mxu1 %v11608_v61 }
 0x50b   :  { %7629 = vmatprep.subr.bf16.mxu0 %v11604_v51 }
 0x50d   :  { %7667 = vmatpush1.bf16.msra.mxu1 %v11604_v51 }
 0x50e   :  { %7630 = vmatpush1.bf16.msra.mxu0 %v11537_v23  ;;  %7668 = vmatprep.subr.bf16.mxu1 %v11632_v15 }
 0x50f   :  { %7631 = vmatprep.subr.bf16.mxu0 %v11628_v7 }
 0x510   :  { %v6365_v56 = vpop.f32.mrb[168].mxu0 }
 0x511   :  { %v6366_v57 = vadd.f32 %v6365_v56, %v11123_v30  ;;  %v6367_v12 = vpop.f32.mrb[169].mxu0  ;;  %7669 = vmatpush1.bf16.msra.mxu1 %v11628_v7 }
 0x512   :  { %v6368_v28 = vadd.f32 %v6367_v12, %v11123_v30  ;;  %v6369_v63 = vpop.f32.mrb[170].mxu0  ;;  %7632 = vmatpush1.bf16.msra.mxu0 %v11556_v31  ;;  %7670 = vmatprep.subr.bf16.mxu1 %v11612_v48 }
 0x513   :  { %v6370_v36 = vadd.f32 %v6369_v63, %v11130_v37  ;;  %v6371_v23 = vpop.f32.mrb[171].mxu0  ;;  %7633 = vmatprep.subr.bf16.mxu0 %v11588_v54  ;;  %v6540_v24 = vmax.f32 %v6366_v57, 0.0 }
 0x514   :  { %v6372_v62 = vadd.f32 %v6371_v23, %v11130_v37  ;;  %v6541_v2 = vmax.f32 %v6368_v28, 0.0 }
 0x515   :  { %v6566_v8 = vmax.f32 %v6370_v36, 0.0  ;;  %7671 = vmatpush1.bf16.msra.mxu1 %v11588_v54 }
 0x516   :  { %v6567_v60 = vmax.f32 %v6372_v62, 0.0  ;;  %7634 = vmatpush1.bf16.msra.mxu0 %v11585_v14  ;;  %7672 = vmatprep.subr.bf16.mxu1 %v11635_v55 }
 0x517   :  { %v11692_v31 = vpack.c.bf16 %v6566_v8, %v6540_v24  ;;  %7635 = vmatprep.subr.bf16.mxu0 %v11608_v61 }
 0x518   :  { %v11695_v19 = vpack.c.bf16 %v6567_v60, %v6541_v2  ;;  %v6375_v42 = vpop.f32.mrb[172].mxu0 }
 0x519   :  { %v6376_v33 = vadd.f32 %v6375_v42, %v11144_v16  ;;  %v6377_v50 = vpop.f32.mrb[173].mxu0  ;;  %7673 = vmatpush1.bf16.msra.mxu1 %v11608_v61 }
 0x51a   :  { %v6378_v10 = vadd.f32 %v6377_v50, %v11144_v16  ;;  %v6379_v1 = vpop.f32.mrb[174].mxu0  ;;  %7636 = vmatpush1.bf16.msra.mxu0 %v11604_v51  ;;  %7674 = vmatprep.subr.bf16.mxu1 %v11659_v25 }
 0x51b   :  { %v6380_v14 = vadd.f32 %v6379_v1, %v11153_v5  ;;  %v6381_v21 = vpop.f32.mrb[175].mxu0  ;;  %v6428_v58 = vpop.f32.mrb[168].mxu1  ;;  %7637 = vmatprep.subr.bf16.mxu0 %v11632_v15  ;;  %v6592_v9 = vmax.f32 %v6376_v33, 0.0 }
 0x51c   :  { %v6382_v26 = vadd.f32 %v6381_v21, %v11153_v5  ;;  %v6429_v53 = vadd.f32 %v6428_v58, %v11123_v30  ;;  %v6430_v38 = vpop.f32.mrb[169].mxu1  ;;  %v6593_v51 = vmax.f32 %v6378_v10, 0.0 }
 0x51d   :  { %v6618_v32 = vmax.f32 %v6380_v14, 0.0  ;;  %v6431_v18 = vadd.f32 %v6430_v38, %v11123_v30  ;;  %v6432_v17 = vpop.f32.mrb[170].mxu1  ;;  %7675 = vmatpush1.bf16.msra.mxu1 %v11632_v15 }
 0x51e   :  { %v6619_v35 = vmax.f32 %v6382_v26, 0.0  ;;  %v6433_v27 = vadd.f32 %v6432_v17, %v11130_v37  ;;  %v6434_v11 = vpop.f32.mrb[171].mxu1  ;;  %7638 = vmatpush1.bf16.msra.mxu0 %v11628_v7  ;;  %7676 = vmatprep.subr.bf16.mxu1 %v11617_v45  ;;  %v6542_v13 = vmax.f32 %v6429_v53, 0.0 }
 0x51f   :  { %v11711_v22 = vpack.c.bf16 %v6618_v32, %v6592_v9  ;;  %v6435_v46 = vadd.f32 %v6434_v11, %v11130_v37  ;;  %7639 = vmatprep.subr.bf16.mxu0 %v11612_v48  ;;  %v6543_v43 = vmax.f32 %v6431_v18, 0.0  ;;  %v11754_v18 = vld [vmem:[%s11983_s5] ss:$8 sps:$4 sm:$0xff]  }
 0x520   :  { %v11715_v34 = vpack.c.bf16 %v6619_v35, %v6593_v51  ;;  %v6568_v20 = vmax.f32 %v6433_v27, 0.0  ;;  %v6385_v0 = vpop.f32.mrb[176].mxu0 }
 0x521   :  { %v6569_v49 = vmax.f32 %v6435_v46, 0.0  ;;  %v6386_v47 = vadd.f32 %v6385_v0, %v11171_v40  ;;  %v6387_v59 = vpop.f32.mrb[177].mxu0  ;;  %7677 = vmatpush1.bf16.msra.mxu1 %v11612_v48 }
 0x522   :  { %v11719_v7 = vpack.c.bf16 %v6568_v20, %v6542_v13  ;;  %v6388_v39 = vadd.f32 %v6387_v59, %v11171_v40  ;;  %v6389_v29 = vpop.f32.mrb[178].mxu0  ;;  %7640 = vmatpush1.bf16.msra.mxu0 %v11588_v54  ;;  %7678 = vmatprep.subr.bf16.mxu1 %v11639_v4 }
 0x523   :  { %v11724_v41 = vpack.c.bf16 %v6569_v49, %v6543_v43  ;;  %v6390_v52 = vadd.f32 %v6389_v29, %v11177_v6  ;;  %v6391_v56 = vpop.f32.mrb[179].mxu0  ;;  %v6438_v57 = vpop.f32.mrb[172].mxu1  ;;  %7641 = vmatprep.subr.bf16.mxu0 %v11635_v55  ;;  %v6644_v36 = vmax.f32 %v6386_v47, 0.0 }
 0x524   :  { %v6392_v12 = vadd.f32 %v6391_v56, %v11177_v6  ;;  %v6439_v28 = vadd.f32 %v6438_v57, %v11144_v16  ;;  %v6440_v63 = vpop.f32.mrb[173].mxu1  ;;  %v6645_v24 = vmax.f32 %v6388_v39, 0.0  ;;  %v11806_v57 = vpop.permute.xlu0 %7838 }
 0x525   :  { %v6670_v23 = vmax.f32 %v6390_v52, 0.0  ;;  %v6441_v62 = vadd.f32 %v6440_v63, %v11144_v16  ;;  %v6442_v54 = vpop.f32.mrb[174].mxu1  ;;  %7679 = vmatpush1.bf16.msra.mxu1 %v11635_v55 }
 0x526   :  { %v6671_v8 = vmax.f32 %v6392_v12, 0.0  ;;  %v6443_v2 = vadd.f32 %v6442_v54, %v11153_v5  ;;  %v6444_v60 = vpop.f32.mrb[175].mxu1  ;;  %7642 = vmatpush1.bf16.msra.mxu0 %v11608_v61  ;;  %7680 = vmatprep.subr.bf16.mxu1 %v11663_v44  ;;  %v6594_v10 = vmax.f32 %v6439_v28, 0.0 }
 0x527   :  { %v11735_v42 = vpack.c.bf16 %v6670_v23, %v6644_v36  ;;  %v6445_v33 = vadd.f32 %v6444_v60, %v11153_v5  ;;  %7643 = vmatprep.subr.bf16.mxu0 %v11659_v25  ;;  %v6595_v14 = vmax.f32 %v6441_v62, 0.0 }
 0x528   :  { %v11739_v50 = vpack.c.bf16 %v6671_v8, %v6645_v24  ;;  %v6620_v1 = vmax.f32 %v6443_v2, 0.0  ;;  %v11815_v24 = vpop.permute.xlu1 %7843 }
 0x529   :  { %v6621_v21 = vmax.f32 %v6445_v33, 0.0  ;;  %7681 = vmatpush1.bf16.msra.mxu1 %v11659_v25 }
 0x52a   :  { %v11742_v58 = vpack.c.bf16 %v6620_v1, %v6594_v10  ;;  %7644 = vmatpush1.bf16.msra.mxu0 %v11632_v15  ;;  %7682 = vmatprep.subr.bf16.mxu1 %v11692_v31 }
 0x52b   :  { %v11746_v61 = vpack.c.bf16 %v6621_v21, %v6595_v14  ;;  %v6448_v26 = vpop.f32.mrb[176].mxu1  ;;  %7707 = vmatprep.subr.bf16.mxu0 %v11617_v45 }
 0x52c   :  { %v6449_v53 = vadd.f32 %v6448_v26, %v11171_v40  ;;  %v6450_v38 = vpop.f32.mrb[177].mxu1 }
 0x52d   :  { %v6451_v9 = vadd.f32 %v6450_v38, %v11171_v40  ;;  %v6452_v32 = vpop.f32.mrb[178].mxu1  ;;  %7654 = vmatmul.mubr.bf16.vlgmr.msra.gmra.mrb[204].mxu0 %v11754_v18  ;;  %7683 = vmatpush1.bf16.msra.mxu1 %v11617_v45 }
 0x52e   :  { %v6453_v15 = vadd.f32 %v6452_v32, %v11177_v6  ;;  %v6454_v17 = vpop.f32.mrb[179].mxu1  ;;  %7684 = vmatprep.subr.bf16.mxu1 %v11711_v22  ;;  %7708 = vmatpush1.bf16.msra.mxu0 %v11612_v48  ;;  %v6646_v35 = vmax.f32 %v6449_v53, 0.0 }
 0x52f   :  { %v6455_v51 = vadd.f32 %v6454_v17, %v11177_v6  ;;  %7709 = vmatprep.subr.bf16.mxu0 %v11639_v4  ;;  %8570 = vmatprep.mubr.msk.bf16.mxu0 %vm5691_vm4, %v11654_v3  ;;  %v6647_v11 = vmax.f32 %v6451_v9, 0.0 }
 0x530   :  { %v6672_v27 = vmax.f32 %v6453_v15, 0.0 }
 0x531   :  { %v6673_v46 = vmax.f32 %v6455_v51, 0.0  ;;  %7685 = vmatpush1.bf16.msra.mxu1 %v11639_v4 }
 0x532   :  { %v11766_v13 = vpack.c.bf16 %v6672_v27, %v6646_v35  ;;  %7686 = vmatprep.subr.bf16.mxu1 %v11735_v42  ;;  %7710 = vmatpush1.bf16.msra.mxu0 %v11635_v55 }
 0x533   :  { %v11770_v48 = vpack.c.bf16 %v6673_v46, %v6647_v11  ;;  %7711 = vmatprep.subr.bf16.mxu0 %v11663_v44 }
 0x535   :  { %7687 = vmatpush1.bf16.msra.mxu1 %v11663_v44 }
 0x536   :  { %7712 = vmatpush1.bf16.msra.mxu0 %v11659_v25  ;;  %7750 = vmatprep.subr.bf16.mxu1 %v11695_v19 }
 0x537   :  { %7713 = vmatprep.subr.bf16.mxu0 %v11692_v31 }
 0x538   :  { %7697 = vmatmul.mubr.bf16.vlgmr.msra.gmra.mrb[196].mxu1 %v11754_v18 }
 0x539   :  { %7751 = vmatpush1.bf16.msra.mxu1 %v11692_v31  ;;  %8571 = vmatprep.mubr.msk.bf16.mxu1 %vm5691_vm4, %v11654_v3 }
 0x53a   :  { %7714 = vmatpush1.bf16.msra.mxu0 %v11617_v45  ;;  %7752 = vmatprep.subr.bf16.mxu1 %v11715_v34 }
 0x53b   :  { %7715 = vmatprep.subr.bf16.mxu0 %v11711_v22 }
 0x53d   :  { %7753 = vmatpush1.bf16.msra.mxu1 %v11711_v22 }
 0x53e   :  { %7716 = vmatpush1.bf16.msra.mxu0 %v11639_v4  ;;  %7754 = vmatprep.subr.bf16.mxu1 %v11739_v50 }
 0x53f   :  { %7717 = vmatprep.subr.bf16.mxu0 %v11735_v42 }
 0x540   :  { %v6491_v55 = vpop.f32.mrb[180].mxu0 }
 0x541   :  { %v6492_v25 = vadd.f32 %v6491_v55, %v11123_v30  ;;  %v6493_v20 = vpop.f32.mrb[181].mxu0  ;;  %7755 = vmatpush1.bf16.msra.mxu1 %v11735_v42 }
 0x542   :  { %v6494_v45 = vadd.f32 %v6493_v20, %v11123_v30  ;;  %v6495_v0 = vpop.f32.mrb[182].mxu0  ;;  %7718 = vmatpush1.bf16.msra.mxu0 %v11663_v44  ;;  %7756 = vmatprep.subr.bf16.mxu1 %v11719_v7 }
 0x543   :  { %v6496_v43 = vadd.f32 %v6495_v0, %v11130_v37  ;;  %v6497_v4 = vpop.f32.mrb[183].mxu0  ;;  %7719 = vmatprep.subr.bf16.mxu0 %v11695_v19  ;;  %v6544_v47 = vmax.f32 %v6492_v25, 0.0 }
 0x544   :  { %v6498_v49 = vadd.f32 %v6497_v4, %v11130_v37  ;;  %v6545_v39 = vmax.f32 %v6494_v45, 0.0 }
 0x545   :  { %v6570_v59 = vmax.f32 %v6496_v43, 0.0  ;;  %7757 = vmatpush1.bf16.msra.mxu1 %v11695_v19 }
 0x546   :  { %v6571_v29 = vmax.f32 %v6498_v49, 0.0  ;;  %7720 = vmatpush1.bf16.msra.mxu0 %v11692_v31  ;;  %7758 = vmatprep.subr.bf16.mxu1 %v11742_v58 }
 0x547   :  { %v11799_v30 = vpack.c.bf16 %v6570_v59, %v6544_v47  ;;  %7721 = vmatprep.subr.bf16.mxu0 %v11715_v34 }
 0x548   :  { %v11802_v44 = vpack.c.bf16 %v6571_v29, %v6545_v39  ;;  %v6501_v52 = vpop.f32.mrb[184].mxu0 }
 0x549   :  { %v6502_v56 = vadd.f32 %v6501_v52, %v11144_v16  ;;  %v6503_v37 = vpop.f32.mrb[185].mxu0  ;;  %7759 = vmatpush1.bf16.msra.mxu1 %v11715_v34 }
 0x54a   :  { %v6504_v12 = vadd.f32 %v6503_v37, %v11144_v16  ;;  %v6505_v28 = vpop.f32.mrb[186].mxu0  ;;  %7722 = vmatpush1.bf16.msra.mxu0 %v11711_v22  ;;  %7760 = vmatprep.subr.bf16.mxu1 %v11766_v13 }
 0x54b   :  { %v6506_v31 = vadd.f32 %v6505_v28, %v11153_v5  ;;  %v6507_v63 = vpop.f32.mrb[187].mxu0  ;;  %v7354_v36 = vpop.f32.mrb[180].mxu1  ;;  %7723 = vmatprep.subr.bf16.mxu0 %v11739_v50  ;;  %v6596_v8 = vmax.f32 %v6502_v56, 0.0 }
 0x54c   :  { %v6508_v23 = vadd.f32 %v6507_v63, %v11153_v5  ;;  %v7846_v62 = vadd.f32 %v11806_v57, %v7354_v36  ;;  %v7356_v54 = vpop.f32.mrb[181].mxu1  ;;  %v6597_v60 = vmax.f32 %v6504_v12, 0.0 }
 0x54d   :  { %v6622_v16 = vmax.f32 %v6506_v31, 0.0  ;;  %v7852_v2 = vadd.f32 %v11806_v57, %v7356_v54  ;;  %v7358_v22 = vpop.f32.mrb[182].mxu1  ;;  %7761 = vmatpush1.bf16.msra.mxu1 %v11739_v50 }
 0x54e   :  { %v6623_v33 = vmax.f32 %v6508_v23, 0.0  ;;  %v7847_v10 = vadd.f32 %v11815_v24, %v7358_v22  ;;  %v7360_v1 = vpop.f32.mrb[183].mxu1  ;;  %7724 = vmatpush1.bf16.msra.mxu0 %v11735_v42  ;;  %7762 = vmatprep.subr.bf16.mxu1 %v11724_v41  ;;  %v7848_v26 = vmax.f32 %v7846_v62, 0.0 }
 0x54f   :  { %v11822_v5 = vpack.c.bf16 %v6622_v16, %v6596_v8  ;;  %v7853_v14 = vadd.f32 %v11815_v24, %v7360_v1  ;;  %7725 = vmatprep.subr.bf16.mxu0 %v11719_v7  ;;  %v7854_v9 = vmax.f32 %v7852_v2, 0.0  ;;  %v12043_v8 = vmov 0.0   ;;  %v9275_v16 = vld [vmem:[%s11984_s7 + $0x4] ss:$12 sps:$4 sm:$0xff]  }
 0x550   :  { %v11826_v21 = vpack.c.bf16 %v6623_v33, %v6597_v60  ;;  %v7849_v53 = vmax.f32 %v7847_v10, 0.0  ;;  %v6511_v38 = vpop.f32.mrb[188].mxu0 }
 0x551   :  { %v7855_v32 = vmax.f32 %v7853_v14, 0.0  ;;  %v6512_v15 = vadd.f32 %v6511_v38, %v11171_v40  ;;  %v6513_v17 = vpop.f32.mrb[189].mxu0  ;;  %7763 = vmatpush1.bf16.msra.mxu1 %v11719_v7 }
 0x552   :  { %v11830_v42 = vpack.c.bf16 %v7849_v53, %v7848_v26  ;;  %v6514_v51 = vadd.f32 %v6513_v17, %v11171_v40  ;;  %v6515_v35 = vpop.f32.mrb[190].mxu0  ;;  %7726 = vmatpush1.bf16.msra.mxu0 %v11695_v19  ;;  %7764 = vmatprep.subr.bf16.mxu1 %v11746_v61 }
 0x553   :  { %v11835_v27 = vpack.c.bf16 %v7855_v32, %v7854_v9  ;;  %v6516_v11 = vadd.f32 %v6515_v35, %v11177_v6  ;;  %v6517_v46 = vpop.f32.mrb[191].mxu0  ;;  %7727 = vmatprep.subr.bf16.mxu0 %v11742_v58  ;;  %v6648_v25 = vmax.f32 %v6512_v15, 0.0 }
 0x554   :  { %v6518_v55 = vadd.f32 %v6517_v46, %v11177_v6  ;;  %v6649_v45 = vmax.f32 %v6514_v51, 0.0  ;;  %v12042_v6 = vmov 0  }
 0x555   :  { %v6674_v20 = vmax.f32 %v6516_v11, 0.0  ;;  %7765 = vmatpush1.bf16.msra.mxu1 %v11742_v58 }
 0x556   :  { %v6675_v40 = vmax.f32 %v6518_v55, 0.0  ;;  %7728 = vmatpush1.bf16.msra.mxu0 %v11715_v34  ;;  %7766 = vmatprep.subr.bf16.mxu1 %v11770_v48 }
 0x557   :  { %v6752_v19 = vpack.c.bf16 %v6674_v20, %v6648_v25  ;;  %7729 = vmatprep.subr.bf16.mxu0 %v11766_v13 }
 0x558   :  { %v6753_v0 = vpack.c.bf16 %v6675_v40, %v6649_v45 }
 0x559   :  { %7767 = vmatpush1.bf16.msra.mxu1 %v11766_v13 }
 0x55a   :  { %7730 = vmatpush1.bf16.msra.mxu0 %v11739_v50  ;;  %7768 = vmatprep.subr.bf16.mxu1 %v11799_v30 }
 0x55b   :  { %7793 = vmatprep.subr.bf16.mxu0 %v12042_v6 }
 0x55d   :  { %7740 = vmatmul.mubr.bf16.vlgmr.msra.gmra.mrb[208].mxu0 %v11754_v18  ;;  %7769 = vmatpush1.bf16.msra.mxu1 %v11724_v41 }
 0x55e   :  { %7770 = vmatprep.subr.bf16.mxu1 %v11822_v5  ;;  %7794 = vmatpush1.bf16.msra.mxu0 %v11719_v7 }
 0x55f   :  { %7795 = vmatprep.subr.bf16.mxu0 %v12042_v6  ;;  %8572 = vmatprep.mubr.msk.bf16.mxu0 %vm5691_vm4, %v11654_v3 }
 0x561   :  { %7771 = vmatpush1.bf16.msra.mxu1 %v11746_v61 }
 0x562   :  { %7772 = vmatprep.subr.bf16.mxu1 %v6752_v19  ;;  %7796 = vmatpush1.bf16.msra.mxu0 %v11742_v58 }
 0x563   :  { %7797 = vmatprep.subr.bf16.mxu0 %v12042_v6 }
 0x565   :  { %7773 = vmatpush1.bf16.msra.mxu1 %v11770_v48 }
 0x566   :  { %7798 = vmatpush1.bf16.msra.mxu0 %v11766_v13 }
 0x567   :  { %7799 = vmatprep.subr.bf16.mxu0 %v12042_v6 }
 0x568   :  { %7783 = vmatmul.mubr.bf16.vlgmr.msra.gmra.mrb[200].mxu1 %v11754_v18 }
 0x569   :  { %8095 = vmatprep.mubr.bf16.mxu1 %v9275_v16 }
 0x56a   :  { %7800 = vmatpush1.bf16.msra.mxu0 %v11724_v41 }
 0x56b   :  { %7801 = vmatprep.subr.bf16.mxu0 %v12042_v6 }
 0x56e   :  { %7802 = vmatpush1.bf16.msra.mxu0 %v11746_v61 }
 0x56f   :  { %7803 = vmatprep.subr.bf16.mxu0 %v12042_v6 }
 0x570   :  { %v7397_v3 = vpop.f32.mrb[192].mxu0 }
 0x571   :  { %v7858_v34 = vadd.f32 %v11806_v57, %v7397_v3  ;;  %v7399_v7 = vpop.f32.mrb[193].mxu0 }
 0x572   :  { %v7864_v50 = vadd.f32 %v11806_v57, %v7399_v7  ;;  %v7401_v58 = vpop.f32.mrb[194].mxu0  ;;  %7804 = vmatpush1.bf16.msra.mxu0 %v11770_v48 }
 0x573   :  { %v7859_v13 = vadd.f32 %v11815_v24, %v7401_v58  ;;  %v7403_v43 = vpop.f32.mrb[195].mxu0  ;;  %7805 = vmatprep.subr.bf16.mxu0 %v12042_v6  ;;  %v7860_v4 = vmax.f32 %v7858_v34, 0.0 }
 0x574   :  { %v7865_v41 = vadd.f32 %v11815_v24, %v7403_v43  ;;  %v7866_v49 = vmax.f32 %v7864_v50, 0.0 }
 0x575   :  { %v7861_v61 = vmax.f32 %v7859_v13, 0.0 }
 0x576   :  { %v7867_v47 = vmax.f32 %v7865_v41, 0.0  ;;  %7806 = vmatpush1.bf16.msra.mxu0 %v11799_v30 }
 0x577   :  { %v11873_v59 = vpack.c.bf16 %v7861_v61, %v7860_v4  ;;  %7807 = vmatprep.subr.bf16.mxu0 %v12042_v6 }
 0x578   :  { %v11876_v39 = vpack.c.bf16 %v7867_v47, %v7866_v49 }
 0x57a   :  { %7808 = vmatpush1.bf16.msra.mxu0 %v11822_v5 }
 0x57b   :  { %v7440_v48 = vpop.f32.mrb[184].mxu1  ;;  %7809 = vmatprep.subr.bf16.mxu0 %v12042_v6 }
 0x57c   :  { %v7870_v29 = vadd.f32 %v11806_v57, %v7440_v48  ;;  %v7442_v52 = vpop.f32.mrb[185].mxu1 }
 0x57d   :  { %v7876_v56 = vadd.f32 %v11806_v57, %v7442_v52  ;;  %v7444_v37 = vpop.f32.mrb[186].mxu1 }
 0x57e   :  { %v7871_v12 = vadd.f32 %v11815_v24, %v7444_v37  ;;  %v7446_v30 = vpop.f32.mrb[187].mxu1  ;;  %7810 = vmatpush1.bf16.msra.mxu0 %v6752_v19  ;;  %v7872_v31 = vmax.f32 %v7870_v29, 0.0 }
 0x57f   :  { %v7877_v28 = vadd.f32 %v11815_v24, %v7446_v30  ;;  %7811 = vmatprep.subr.bf16.mxu0 %v12042_v6  ;;  %v7878_v36 = vmax.f32 %v7876_v56, 0.0 }
 0x580   :  { %v7873_v63 = vmax.f32 %v7871_v12, 0.0 }
 0x581   :  { %v7879_v23 = vmax.f32 %v7877_v28, 0.0 }
 0x582   :  { %v11885_v62 = vpack.c.bf16 %v7873_v63, %v7872_v31  ;;  %7812 = vmatpush1.bf16.msra.mxu0 %v11802_v44 }
 0x583   :  { %v11888_v54 = vpack.c.bf16 %v7879_v23, %v7878_v36  ;;  %7813 = vmatprep.subr.bf16.mxu0 %v12042_v6 }
 0x586   :  { %7814 = vmatpush1.bf16.msra.mxu0 %v11826_v21 }
 0x587   :  { %7815 = vmatprep.subr.bf16.mxu0 %v12042_v6 }
 0x58a   :  { %7816 = vmatpush1.bf16.msra.mxu0 %v6753_v0 }
 0x58b   :  { %8716 = vmatprep.subr.bf16.mxu0 %v12043_v8 }
 0x58d   :  { %7826 = vmatmul.mubr.bf16.vlgmr.msra.gmra.mrb[212].mxu0 %v11754_v18 }
 0x58e   :  { %8720 = vmatprep.mubr.msk.bf16.mxu0 %vm9297_vm3, %v12043_v8 }
 0x5a0   :  { %v7483_v44 = vpop.f32.mrb[196].mxu0 }
 0x5a1   :  { %v7882_v2 = vadd.f32 %v11806_v57, %v7483_v44  ;;  %v7485_v22 = vpop.f32.mrb[197].mxu0 }
 0x5a2   :  { %v7888_v60 = vadd.f32 %v11806_v57, %v7485_v22  ;;  %v7487_v33 = vpop.f32.mrb[198].mxu0 }
 0x5a3   :  { %v7883_v10 = vadd.f32 %v11815_v24, %v7487_v33  ;;  %v7489_v1 = vpop.f32.mrb[199].mxu0  ;;  %v7884_v5 = vmax.f32 %v7882_v2, 0.0 }
 0x5a4   :  { %v7889_v18 = vadd.f32 %v11815_v24, %v7489_v1  ;;  %v7890_v21 = vmax.f32 %v7888_v60, 0.0 }
 0x5a5   :  { %v7885_v14 = vmax.f32 %v7883_v10, 0.0 }
 0x5a6   :  { %v7891_v26 = vmax.f32 %v7889_v18, 0.0 }
 0x5a7   :  { %v11904_v53 = vpack.c.bf16 %v7885_v14, %v7884_v5 }
 0x5a8   :  { %v11906_v38 = vpack.c.bf16 %v7891_v26, %v7890_v21  ;;  %v7988_v21 = vld [vmem:[%s11984_s7 + $0x18] sm:$0xff] }
 0x5ab   :  { %v7526_v9 = vpop.f32.mrb[188].mxu1 }
 0x5ac   :  { %v7894_v32 = vadd.f32 %v11806_v57, %v7526_v9  ;;  %v7528_v15 = vpop.f32.mrb[189].mxu1 }
 0x5ad   :  { %v7900_v17 = vadd.f32 %v11806_v57, %v7528_v15  ;;  %v7530_v51 = vpop.f32.mrb[190].mxu1 }
 0x5ae   :  { %v7895_v35 = vadd.f32 %v11815_v24, %v7530_v51  ;;  %v7532_v11 = vpop.f32.mrb[191].mxu1  ;;  %v7896_v55 = vmax.f32 %v7894_v32, 0.0 }
 0x5af   :  { %v7901_v46 = vadd.f32 %v11815_v24, %v7532_v11  ;;  %v7902_v20 = vmax.f32 %v7900_v17, 0.0  ;;  %v9273_v17 = vld [vmem:[%s11984_s7] ss:$12 sps:$4 sm:$0xff]  }
 0x5b0   :  { %v7897_v25 = vmax.f32 %v7895_v35, 0.0 }
 0x5b1   :  { %v7903_v45 = vmax.f32 %v7901_v46, 0.0 }
 0x5b2   :  { %v7898_v40 = vpack.c.bf16 %v7897_v25, %v7896_v55 }
 0x5b3   :  { %v7904_v19 = vpack.c.bf16 %v7903_v45, %v7902_v20 }
 0x5b4   :  { %8600 = vmatprep.subr.bf16.mxu1 %v7898_v40 }
 0x5b5   :  { %8601 = vmatpush3.bf16.msra.mxu1 %v11830_v42 }
 0x5b6   :  { %8602 = vmatprep.subr.bf16.mxu1 %v7904_v19  ;;  %v8576_v19 = vcombine.low %v7988_v21, %v7988_v21 }
 0x5b9   :  { %8603 = vmatpush3.bf16.msra.mxu1 %v11835_v27 }
 0x5d0   :  { %v7569_v0 = vpop.f32.mrb[200].mxu0 }
 0x5d1   :  { %v7906_v6 = vadd.f32 %v11806_v57, %v7569_v0  ;;  %v7571_v3 = vpop.f32.mrb[201].mxu0  ;;  %v9278_v0 = vld [vmem:[%s11984_s7 + $0x8] ss:$12 sps:$4 sm:$0xff]  }
 0x5d2   :  { %v7912_v34 = vadd.f32 %v11806_v57, %v7571_v3  ;;  %v7573_v7 = vpop.f32.mrb[202].mxu0 }
 0x5d3   :  { %v7907_v50 = vadd.f32 %v11815_v24, %v7573_v7  ;;  %v7575_v58 = vpop.f32.mrb[203].mxu0  ;;  %v7908_v43 = vmax.f32 %v7906_v6, 0.0 }
 0x5d4   :  { %v7913_v13 = vadd.f32 %v11815_v24, %v7575_v58  ;;  %v7914_v4 = vmax.f32 %v7912_v34, 0.0 }
 0x5d5   :  { %v7909_v41 = vmax.f32 %v7907_v50, 0.0 }
 0x5d6   :  { %v7915_v61 = vmax.f32 %v7913_v13, 0.0 }
 0x5d7   :  { %v7910_v42 = vpack.c.bf16 %v7909_v41, %v7908_v43 }
 0x5d8   :  { %v7916_v49 = vpack.c.bf16 %v7915_v61, %v7914_v4 }
 0x5d9   :  { %8604 = vmatprep.subr.bf16.mxu1 %v7910_v42 }
 0x5da   :  { %8605 = vmatpush3.bf16.msra.mxu1 %v11873_v59 }
 0x5db   :  { %v7612_v27 = vpop.f32.mrb[192].mxu1  ;;  %8606 = vmatprep.subr.bf16.mxu1 %v7916_v49 }
 0x5dc   :  { %v7918_v47 = vadd.f32 %v11806_v57, %v7612_v27  ;;  %v7614_v48 = vpop.f32.mrb[193].mxu1 }
 0x5dd   :  { %v7924_v29 = vadd.f32 %v11806_v57, %v7614_v48  ;;  %v7616_v52 = vpop.f32.mrb[194].mxu1 }
 0x5de   :  { %v7919_v56 = vadd.f32 %v11815_v24, %v7616_v52  ;;  %v7618_v37 = vpop.f32.mrb[195].mxu1  ;;  %8607 = vmatpush3.bf16.msra.mxu1 %v11876_v39  ;;  %v7920_v30 = vmax.f32 %v7918_v47, 0.0 }
 0x5df   :  { %v7925_v12 = vadd.f32 %v11815_v24, %v7618_v37  ;;  %v7926_v31 = vmax.f32 %v7924_v29, 0.0 }
 0x5e0   :  { %v7921_v28 = vmax.f32 %v7919_v56, 0.0 }
 0x5e1   :  { %v7927_v63 = vmax.f32 %v7925_v12, 0.0 }
 0x5e2   :  { %v7922_v59 = vpack.c.bf16 %v7921_v28, %v7920_v30 }
 0x5e3   :  { %v7928_v36 = vpack.c.bf16 %v7927_v63, %v7926_v31 }
 0x5e4   :  { %8608 = vmatprep.subr.bf16.mxu1 %v7922_v59 }
 0x5e5   :  { %8609 = vmatpush3.bf16.msra.mxu1 %v11885_v62 }
 0x5e6   :  { %8610 = vmatprep.subr.bf16.mxu1 %v7928_v36 }
 0x5e9   :  { %8611 = vmatpush3.bf16.msra.mxu1 %v11888_v54 }
 0x600   :  { %v7655_v23 = vpop.f32.mrb[204].mxu0 }
 0x601   :  { %v7930_v16 = vadd.f32 %v11806_v57, %v7655_v23  ;;  %v7657_v44 = vpop.f32.mrb[205].mxu0 }
 0x602   :  { %v7936_v39 = vadd.f32 %v11806_v57, %v7657_v44  ;;  %v7659_v2 = vpop.f32.mrb[206].mxu0 }
 0x603   :  { %v7931_v22 = vadd.f32 %v11815_v24, %v7659_v2  ;;  %v7661_v60 = vpop.f32.mrb[207].mxu0  ;;  %v7932_v10 = vmax.f32 %v7930_v16, 0.0 }
 0x604   :  { %v7937_v33 = vadd.f32 %v11815_v24, %v7661_v60  ;;  %v7938_v18 = vmax.f32 %v7936_v39, 0.0 }
 0x605   :  { %v7933_v1 = vmax.f32 %v7931_v22, 0.0 }
 0x606   :  { %v7939_v5 = vmax.f32 %v7937_v33, 0.0 }
 0x607   :  { %v7934_v62 = vpack.c.bf16 %v7933_v1, %v7932_v10  ;;  %v9279_v1 = vld [vmem:[%s11984_s7 + $0x20] ss:$0 sps:$4 sm:$0xff]  }
 0x608   :  { %v7940_v14 = vpack.c.bf16 %v7939_v5, %v7938_v18 }
 0x609   :  { %8612 = vmatprep.subr.bf16.mxu1 %v7934_v62 }
 0x60a   :  { %8613 = vmatpush3.bf16.msra.mxu1 %v11904_v53  ;;  %v8577_v53 = vcombine.high %v7988_v21, %v7988_v21 }
 0x60b   :  { %v7698_v54 = vpop.f32.mrb[196].mxu1  ;;  %8614 = vmatprep.subr.bf16.mxu1 %v7940_v14 }
 0x60c   :  { %v7942_v26 = vadd.f32 %v11806_v57, %v7698_v54  ;;  %v7700_v9 = vpop.f32.mrb[197].mxu1 }
 0x60d   :  { %v7948_v32 = vadd.f32 %v11806_v57, %v7700_v9  ;;  %v7702_v15 = vpop.f32.mrb[198].mxu1 }
 0x60e   :  { %v7943_v51 = vadd.f32 %v11815_v24, %v7702_v15  ;;  %v7704_v35 = vpop.f32.mrb[199].mxu1  ;;  %8615 = vmatpush3.bf16.msra.mxu1 %v11906_v38  ;;  %v7944_v46 = vmax.f32 %v7942_v26, 0.0  ;;  %v8019_v15 = vpop.permute.xlu0 %8018 }
 0x60f   :  { %v7949_v11 = vadd.f32 %v11815_v24, %v7704_v35  ;;  %v7950_v25 = vmax.f32 %v7948_v32, 0.0 }
 0x610   :  { %v7945_v55 = vmax.f32 %v7943_v51, 0.0 }
 0x611   :  { %v7951_v20 = vmax.f32 %v7949_v11, 0.0  ;;  %8096 = vmatmul.mubr.bf16.vlgmr.msra.gmra.mrb[204].mxu1 %v9273_v17  ;;  %v8024_v11 = vpop.permute.xlu1 %8023 }
 0x612   :  { %v7946_v45 = vpack.c.bf16 %v7945_v55, %v7944_v46  ;;  %8103 = vmatprep.mubr.bf16.mxu1 %v8577_v53  ;;  %v8029_v17 = vpop.permute.xlu0 %8028 }
 0x613   :  { %v7952_v40 = vpack.c.bf16 %v7951_v20, %v7950_v25 }
 0x614   :  { %8698 = vmatprep.subr.bf16.mxu1 %v7946_v45 }
 0x615   :  { %8699 = vmatpush3.bf16.msra.mxu1 %v7946_v45 }
 0x616   :  { %8700 = vmatprep.subr.bf16.mxu1 %v7952_v40 }
 0x619   :  { %8104 = vmatmul.mubr.bf16.gmra.mrb[208].mxu1 %v8576_v19 }
 0x61a   :  { %8701 = vmatpush3.bf16.msra.mxu1 %v7952_v40  ;;  %8712 = vmatprep.mubr.msk.bf16.mxu1 %vm8056_vm5, %v9278_v0 }
 0x630   :  { %v7741_v38 = vpop.f32.mrb[208].mxu0 }
 0x631   :  { %v7954_v6 = vadd.f32 %v11806_v57, %v7741_v38  ;;  %v7743_v3 = vpop.f32.mrb[209].mxu0 }
 0x632   :  { %v7960_v34 = vadd.f32 %v11806_v57, %v7743_v3  ;;  %v7745_v7 = vpop.f32.mrb[210].mxu0 }
 0x633   :  { %v7955_v50 = vadd.f32 %v11815_v24, %v7745_v7  ;;  %v7747_v58 = vpop.f32.mrb[211].mxu0  ;;  %v7956_v43 = vmax.f32 %v7954_v6, 0.0 }
 0x634   :  { %v7961_v13 = vadd.f32 %v11815_v24, %v7747_v58  ;;  %v7962_v4 = vmax.f32 %v7960_v34, 0.0  ;;  %v8171_v58 = vpop.permute.xlu1 %8170 }
 0x635   :  { %v7957_v41 = vmax.f32 %v7955_v50, 0.0  ;;  %v9280_v50 = vld [vmem:[%s11985_s9] sm:$0x3f]  }
 0x636   :  { %v7963_v61 = vmax.f32 %v7961_v13, 0.0 }
 0x637   :  { %v7958_v42 = vpack.c.bf16 %v7957_v41, %v7956_v43 }
 0x638   :  { %v7964_v49 = vpack.c.bf16 %v7963_v61, %v7962_v4  ;;  %v8176_v4 = vpop.permute.xlu0 %8175 }
 0x639   :  { %8702 = vmatprep.subr.bf16.mxu1 %v7958_v42 }
 0x63a   :  { %8703 = vmatpush3.bf16.msra.mxu1 %v7958_v42 }
 0x63b   :  { %v7784_v27 = vpop.f32.mrb[200].mxu1  ;;  %8704 = vmatprep.subr.bf16.mxu1 %v7964_v49 }
 0x63c   :  { %v7966_v47 = vadd.f32 %v11806_v57, %v7784_v27  ;;  %v7786_v48 = vpop.f32.mrb[201].mxu1 }
 0x63d   :  { %v7972_v29 = vadd.f32 %v11806_v57, %v7786_v48  ;;  %v7788_v52 = vpop.f32.mrb[202].mxu1 }
 0x63e   :  { %v7967_v56 = vadd.f32 %v11815_v24, %v7788_v52  ;;  %v7790_v37 = vpop.f32.mrb[203].mxu1  ;;  %8705 = vmatpush3.bf16.msra.mxu1 %v7964_v49  ;;  %v7968_v30 = vmax.f32 %v7966_v47, 0.0  ;;  %v8235_v52 = vld [vmem:[%s11986_s11] sm:$0x1] }
 0x63f   :  { %v7973_v12 = vadd.f32 %v11815_v24, %v7790_v37  ;;  %v7974_v31 = vmax.f32 %v7972_v29, 0.0  ;;  %v8240_v37 = vpop.permute.xlu1 %8239 }
 0x640   :  { %v7969_v28 = vmax.f32 %v7967_v56, 0.0 }
 0x641   :  { %v7975_v63 = vmax.f32 %v7973_v12, 0.0 }
 0x642   :  { %v7970_v59 = vpack.c.bf16 %v7969_v28, %v7968_v30 }
 0x643   :  { %v7976_v36 = vpack.c.bf16 %v7975_v63, %v7974_v31 }
 0x644   :  { %8706 = vmatprep.subr.bf16.mxu1 %v7970_v59 }
 0x645   :  { %8707 = vmatpush3.bf16.msra.mxu1 %v7970_v59 }
 0x646   :  { %8708 = vmatprep.subr.bf16.mxu1 %v7976_v36 }
 0x649   :  { %8709 = vmatpush3.bf16.msra.mxu1 %v7976_v36 }
 0x660   :  { %v7827_v23 = vpop.f32.mrb[212].mxu0 }
 0x661   :  { %v7978_v16 = vadd.f32 %v11806_v57, %v7827_v23  ;;  %v7829_v44 = vpop.f32.mrb[213].mxu0 }
 0x662   :  { %v7830_v39 = vpop.f32.mrb[214].mxu0 }
 0x663   :  { %v7979_v2 = vadd.f32 %v11815_v24, %v7830_v39  ;;  %v7832_v22 = vpop.f32.mrb[215].mxu0  ;;  %v7980_v60 = vmax.f32 %v7978_v16, 0.0 }
 0x665   :  { %v7981_v33 = vmax.f32 %v7979_v2, 0.0 }
 0x667   :  { %v7982_v10 = vpack.c.bf16 %v7981_v33, %v7980_v60 }
 0x669   :  { %8710 = vmatprep.subr.bf16.mxu1 %v7982_v10 }
 0x66a   :  { %8711 = vmatpush3.bf16.msra.mxu1 %v7982_v10 }
 0x66d   :  { %8713 = vmatmul.mubr.msk.bf16.vlgmr.msra.gmra.mrb[212].mxu1 %vm8056_vm5, %v9279_v1 }
 0x6e4   :  { %v8616_v18 = vpop.f32.mrb[204].mxu1 }
 0x6e5   :  { %v8617_v5 = vpop.f32.mrb[205].mxu1 }
 0x6e6   :  { %v8618_v62 = vadd.f32 %v8617_v5, %v8616_v18  ;;  %v8619_v57 = vpop.f32.mrb[206].mxu1 }
 0x6e7   :  { %v8620_v14 = vpop.f32.mrb[207].mxu1 }
 0x6e8   :  { %v8621_v54 = vadd.f32 %v8620_v14, %v8619_v57  ;;  %v8098_v53 = vadd.f32 %v8618_v62, %v8019_v15 }
 0x6ea   :  { %v8101_v45 = vadd.f32 %v8621_v54, %v8024_v11 }
 0x6ec   :  { %v8622_v21 = vpop.f32.mrb[208].mxu1 }
 0x6ed   :  { %v8623_v24 = vpop.f32.mrb[209].mxu1 }
 0x6ee   :  { %v8624_v26 = vadd.f32 %v8623_v24, %v8622_v21  ;;  %v8625_v9 = vpop.f32.mrb[210].mxu1 }
 0x6ef   :  { %v8626_v32 = vpop.f32.mrb[211].mxu1 }
 0x6f0   :  { %v8106_v51 = vadd.f32 %v8624_v26, %v8029_v17 }
 0x740   :  { %v8714_v35 = vpop.f32.mrb[212].mxu1 }
 0x741   :  { %v8154_v46 = vadd.f32 %v8714_v35, %v8106_v51  ;;  %v8145_v55 = vpop.f32.mrb[213].mxu1 }
 0x742   :  { %v8146_v25 = vadd.f32 %v8145_v55, %v8098_v53  ;;  %v8715_v20 = vpop.f32.mrb[214].mxu1 }
 0x743   :  { %v8148_v40 = vpop.f32.mrb[215].mxu1  ;;  %v8161_v0 = vmax.f32 %v8154_v46, 0.0 }
 0x744   :  { %v8149_v19 = vadd.f32 %v8148_v40, %v8101_v45  ;;  %v8159_v38 = vmax.f32 %v8146_v25, 0.0 }
 0x745   :  { %v8163_v34 = vpack.c.bf16 %v8161_v0, %v8161_v0 }
 0x746   :  { %v8160_v6 = vmax.f32 %v8149_v19, 0.0 }
 0x747   :  { %v8189_v7 = vsel %vm8187_vm6, %v8163_v34, 0 }
 0x748   :  { %v8162_v3 = vpack.c.bf16 %v8160_v6, %v8159_v38 }
 0x74a   :  { %8717 = vmatpush3.bf16.msra.mxu0 %v8162_v3 }
 0x74b   :  { %8718 = vmatprep.subr.bf16.mxu0 %v12043_v8 }
 0x74e   :  { %8719 = vmatpush3.bf16.msra.mxu0 %v8189_v7 }
 0x74f   :  { %8724 = vmatprep.subr.bf16.mxu0 %v12043_v8 }
 0x751   :  { %8721 = vmatmul.mubr.msk.bf16.vlgmr.msra.gmra.mrb[216].mxu0 %vm8183_vm7, %v9280_v50 }
 0x752   :  { %8726 = vmatprep.mubr.msk.bf16.mxu0 %vm9297_vm3, %v12043_v8  ;;  %v12044_v8 = vld [vmem:[#allocation6_spill] sm:$0xff] }
 0x753   :  { %v8244_v56 = vsub.s32 0, %v12044_v8 }
 0x755   :  { %v8245_v12 = vrot.slane %v8240_v37, %v8244_v56 }
 0x824   :  { %v8225_v13 = vpop.f32.mrb[216].mxu0 }
 0x825   :  { %v8226_v43 = vadd.f32 %v8225_v13, %v8171_v58  ;;  %v8722_v41 = vpop.f32.mrb[217].mxu0 }
 0x826   :  { %v8228_v61 = vpop.f32.mrb[218].mxu0 }
 0x827   :  { %v8229_v42 = vadd.f32 %v8228_v61, %v8176_v4  ;;  %v8723_v49 = vpop.f32.mrb[219].mxu0  ;;  %v8232_v27 = vmax.f32 %v8226_v43, 0.0 }
 0x829   :  { %v8233_v47 = vmax.f32 %v8229_v42, 0.0 }
 0x82b   :  { %v8234_v48 = vpack.c.bf16 %v8233_v47, %v8232_v27 }
 0x82d   :  { %v8252_v29 = vsel %vm8250_vm8, %v8234_v48, 0 }
 0x82e   :  { %8725 = vmatpush3.bf16.msra.mxu0 %v8252_v29 }
 0x831   :  { %8727 = vmatmul.mubr.msk.bf16.vlgmr.msra.gmra.mrb[220].mxu0 %vm8246_vm9, %v8235_v52 }
 0x904   :  { %v8288_v30 = vpop.f32.mrb[220].mxu0 }
 0x905   :  { %v8289_v28 = vadd.f32 %v8288_v30, %v8245_v12  ;;  %v8728_v31 = vpop.f32.mrb[221].mxu0 }
 0x906   :  { %v8291_v63 = vpop.f32.mrb[222].mxu0 }
 0x907   :  { %v8294_v59 = vsub.f32 0.0, %v8289_v28  ;;  %v8729_v36 = vpop.f32.mrb[223].mxu0 }
 0x909   :  { %v8295_v23 = vmul.f32 1.442695, %v8294_v59 }
 0x90b   :  { %9281 = vpow2.f32 %v8295_v23 }
 0x915   :  { %v9282_v16 = vpop.eup %9281 }
 0x916   :  { %v8297_v44 = vadd.f32 1.0, %v9282_v16 }
 0x918   :  { %9283 = vrcp.f32 %v8297_v44 }
 0x922   :  { %v9284_v39 = vpop.eup %9283 }
 0x923   :  { %8299 = vst [vmem:[%s11987_s13] sm:$0x1] %v9284_v39 }

</bundles_post_ra>
